<compile_context>
chip_gen: v7x
topology: tpu7x:2x2x1
jax: 0.10.0
libtpu: 0.0.40
codegen_flags: <defaults>
</compile_context>

<pallas_src>
import functools
import math

import jax
import jax.numpy as jnp
from jax.experimental import pallas as pl
from jax.experimental.pallas import tpu as pltpu

# ----------------------------- small config ---------------------------------
BATCH = 2
IMG_H = IMG_W = 256             # small images; stride-32 -> 8x8 feature map
STRIDE = 32                     # ResNet-50 output stride
FEAT_C = 128                    # stand-in for the 2048-channel backbone output
SIZES = (32.0, 64.0, 128.0, 256.0, 512.0)
RATIOS = (0.5, 1.0, 2.0)
NUM_ANCHORS = len(SIZES) * len(RATIOS)     # 15 == num_anchors_per_location()[0]
NMS_THRESH = 0.7
MIN_SIZE = 1e-3
PRE_NMS_TOP_N = 1000            # 'testing' setting
POST_NMS_TOP_N = 1000           # 'testing' setting (forward-only / eval path)
BBOX_XFORM_CLIP = math.log(1000.0 / 16.0)

VMEM_LIMIT = 32 * 1024 * 1024   # explicit scoped-VMEM budget (safe on v5e/v6e/v7x)


def _round_up(x, m):
    return ((x + m - 1) // m) * m


# ----------------------------- Pallas kernels --------------------------------
def _linear_kernel(x_ref, w_ref, b_ref, o_ref, acc_ref, *, relu):
    """One (tm, C) output tile; K is the (arbitrary) reduction grid axis."""
    @pl.when(pl.program_id(1) == 0)
    def _():
        acc_ref[...] = jnp.zeros_like(acc_ref)

    acc_ref[...] += jnp.dot(x_ref[...], w_ref[...],
                            preferred_element_type=jnp.float32)

    @pl.when(pl.program_id(1) == pl.num_programs(1) - 1)
    def _():
        out = acc_ref[...] + b_ref[...]      # bias/ReLU epilogue stays out of the K loop
        if relu:
            out = jnp.maximum(out, 0.0)
        o_ref[...] = out.astype(o_ref.dtype)


def linear_pallas(x, w, b, *, relu=False, out_dtype=jnp.float32, tm=128, tk=1024):
    """y = act(x @ w + b), x:[N,K] bf16, w:[K,C] bf16, b:[1,C] f32.

    128-row M tiles, K-tiled f32 accumulator (the weight never needs to be
    VMEM-resident as a single block -> VMEM-budget portable to v7x);
    the row grid axis is marked parallel (megacore sharding)."""
    N, K = x.shape
    C = w.shape[1]
    Np, Kp = _round_up(N, tm), _round_up(K, tk)
    x = jnp.pad(x, ((0, Np - N), (0, Kp - K)))
    w = jnp.pad(w, ((0, Kp - K), (0, 0)))
    out = pl.pallas_call(
        functools.partial(_linear_kernel, relu=relu),
        out_shape=jax.ShapeDtypeStruct((Np, C), out_dtype),
        grid=(Np // tm, Kp // tk),
        in_specs=[
            pl.BlockSpec((tm, tk), lambda i, k: (i, k)),
            pl.BlockSpec((tk, C), lambda i, k: (k, 0)),
            pl.BlockSpec((1, C), lambda i, k: (0, 0)),
        ],
        out_specs=pl.BlockSpec((tm, C), lambda i, k: (i, 0)),
        scratch_shapes=[pltpu.VMEM((tm, C), jnp.float32)],
        compiler_params=pltpu.CompilerParams(
            dimension_semantics=("parallel", "arbitrary"),
            vmem_limit_bytes=VMEM_LIMIT),
    )(x, w, b)
    return out[:N]


_HALO_GUARD = 8   # extra zero rows at front/back of the flattened feature map


def _rpn_head_kernel(flat_ref, wconv_ref, bconv_ref, whead_ref, bhead_ref,
                     out_ref, *, hf, wf, cin):
    """Fused RPN head for one image.

    flat_ref : (1, (hf+2)*wf + 2*_HALO_GUARD, C) bf16  H-padded, row-flattened features
    wconv_ref: (9, C, C)   bf16   3x3 conv taps (dy-major, dx-minor)
    whead_ref: (C, OUT)    bf16   fused [cls | box] 1x1 conv, lane-padded to 128
    out_ref  : (1, hf*wf, OUT) f32

    The 3x3 conv is 9 shifted (hf*wf, C) @ (C, C) matmuls over the flattened map;
    horizontal out-of-image taps are masked to zero, so im2col is fused in-kernel."""
    n = hf * wf
    # Column masks hoisted out of the tap loop (left/right borders wrap in the
    # flattened layout and must be zeroed).
    x_idx = jax.lax.broadcasted_iota(jnp.int32, (n, 1), 0) % wf
    mask_l = x_idx != 0            # tap reads x-1: invalid at x == 0
    mask_r = x_idx != (wf - 1)     # tap reads x+1: invalid at x == wf-1

    acc = jnp.zeros((n, cin), jnp.float32)
    for ky in range(3):
        for kx in range(3):
            start = ky * wf + (kx - 1) + _HALO_GUARD     # static slice offset
            tap = flat_ref[0, pl.ds(start, n), :]
            if kx == 0:
                tap = jnp.where(mask_l, tap, jnp.zeros_like(tap))
            elif kx == 2:
                tap = jnp.where(mask_r, tap, jnp.zeros_like(tap))
            acc = acc + jnp.dot(tap, wconv_ref[ky * 3 + kx],
                                preferred_element_type=jnp.float32)

    h = jnp.maximum(acc + bconv_ref[...], 0.0).astype(jnp.bfloat16)
    out = jnp.dot(h, whead_ref[...], preferred_element_type=jnp.float32)
    out_ref[0, :, :] = out + bhead_ref[...]


def rpn_head_pallas(feat, w_conv, b_conv, w_head, b_head):
    """feat: (B, hf, wf, C) bf16 -> fused (B, hf*wf, OUT) f32 logits ([cls|box], padded)."""
    B, hf, wf, C = feat.shape
    n = hf * wf
    out_pad = w_head.shape[1]
    feat_hp = jnp.pad(feat, ((0, 0), (1, 1), (0, 0), (0, 0)))             # pad H only
    flat = feat_hp.reshape(B, (hf + 2) * wf, C)
    flat = jnp.pad(flat, ((0, 0), (_HALO_GUARD, _HALO_GUARD), (0, 0)))    # guard rows
    flat_rows = flat.shape[1]
    return pl.pallas_call(
        functools.partial(_rpn_head_kernel, hf=hf, wf=wf, cin=C),
        out_shape=jax.ShapeDtypeStruct((B, n, out_pad), jnp.float32),
        grid=(B,),
        in_specs=[
            pl.BlockSpec((1, flat_rows, C), lambda b: (b, 0, 0)),
            pl.BlockSpec((9, C, C), lambda b: (0, 0, 0)),
            pl.BlockSpec((1, C), lambda b: (0, 0)),
            pl.BlockSpec((C, out_pad), lambda b: (0, 0)),
            pl.BlockSpec((1, out_pad), lambda b: (0, 0)),
        ],
        out_specs=pl.BlockSpec((1, n, out_pad), lambda b: (b, 0, 0)),
        compiler_params=pltpu.CompilerParams(
            dimension_semantics=("parallel",),        # batch axis -> both TCs on v7x
            vmem_limit_bytes=VMEM_LIMIT),
    )(flat, w_conv, b_conv, w_head, b_head)


# ----------------------------- plain-JAX glue ---------------------------------
def make_cell_anchors(sizes, ratios):
    scales = jnp.asarray(sizes, jnp.float32)
    ar = jnp.asarray(ratios, jnp.float32)
    h_ratios = jnp.sqrt(ar)
    w_ratios = 1.0 / h_ratios
    ws = (w_ratios[:, None] * scales[None, :]).reshape(-1)
    hs = (h_ratios[:, None] * scales[None, :]).reshape(-1)
    base = jnp.stack([-ws, -hs, ws, hs], axis=1) / 2.0
    return jnp.round(base)                       # [A, 4]


def grid_anchors(cell_anchors, hf, wf, stride):
    sx = jnp.arange(wf, dtype=jnp.float32) * stride
    sy = jnp.arange(hf, dtype=jnp.float32) * stride
    shift_y, shift_x = jnp.meshgrid(sy, sx, indexing="ij")
    shift_x = shift_x.reshape(-1)
    shift_y = shift_y.reshape(-1)
    shifts = jnp.stack([shift_x, shift_y, shift_x, shift_y], axis=1)
    anchors = (shifts[:, None, :] + cell_anchors[None, :, :]).reshape(-1, 4)
    return anchors                                # [hf*wf*A, 4]


def decode_boxes(deltas, anchors):
    widths = anchors[:, 2] - anchors[:, 0]
    heights = anchors[:, 3] - anchors[:, 1]
    ctr_x = anchors[:, 0] + 0.5 * widths
    ctr_y = anchors[:, 1] + 0.5 * heights
    dx, dy, dw, dh = deltas[:, 0], deltas[:, 1], deltas[:, 2], deltas[:, 3]
    dw = jnp.minimum(dw, BBOX_XFORM_CLIP)
    dh = jnp.minimum(dh, BBOX_XFORM_CLIP)
    pcx = dx * widths + ctr_x
    pcy = dy * heights + ctr_y
    pw = jnp.exp(dw) * widths
    ph = jnp.exp(dh) * heights
    return jnp.stack([pcx - 0.5 * pw, pcy - 0.5 * ph,
                      pcx + 0.5 * pw, pcy + 0.5 * ph], axis=1)


def box_iou(a, b):
    area_a = (a[:, 2] - a[:, 0]) * (a[:, 3] - a[:, 1])
    area_b = (b[:, 2] - b[:, 0]) * (b[:, 3] - b[:, 1])
    lt = jnp.maximum(a[:, None, :2], b[None, :, :2])
    rb = jnp.minimum(a[:, None, 2:], b[None, :, 2:])
    wh = jnp.clip(rb - lt, 0.0)
    inter = wh[..., 0] * wh[..., 1]
    return inter / (area_a[:, None] + area_b[None, :] - inter + 1e-9)


def proposals_one_image(boxes, scores, valid, *, pre_k, post_k, iou_thresh=NMS_THRESH):
    # torchvision-style pre_nms_top_n cut BEFORE the O(n^2) IoU / sequential NMS loop.
    scores = jnp.where(valid, scores, -jnp.inf)
    _, order = jax.lax.top_k(scores, pre_k)
    boxes = boxes[order]
    valid = valid[order]
    ious = box_iou(boxes, boxes)
    idxs = jnp.arange(pre_k)

    def body(i, keep):
        suppressed = jnp.any((ious[i] > iou_thresh) & keep & (idxs < i))
        return keep.at[i].set(valid[i] & jnp.logical_not(suppressed))

    keep = jax.lax.fori_loop(0, pre_k, body, jnp.zeros((pre_k,), bool))
    # kept boxes first (stable argsort keeps score order); suppressed slots zeroed.
    # TODO(synk): torchvision returns a variable-length kept list; here the output is a
    #             fixed-size, zero-box-padded list (jit-friendly).
    reorder = jnp.argsort(jnp.logical_not(keep))
    out = (boxes * keep[:, None].astype(boxes.dtype))[reorder]
    return out[:post_k]


def init_params(key):
    kb, k1, kc, kx = jax.random.split(key, 4)
    patch_k = 3 * STRIDE * STRIDE
    # bf16 weights feed the MXU; biases stay f32 (in-kernel accumulation is f32).
    return {
        "w_backbone": (0.01 * jax.random.normal(kb, (patch_k, FEAT_C), jnp.float32)
                       ).astype(jnp.bfloat16),
        "b_backbone": jnp.zeros((1, FEAT_C), jnp.float32),
        "w_conv": (0.01 * jax.random.normal(k1, (9, FEAT_C, FEAT_C), jnp.float32)
                   ).astype(jnp.bfloat16),
        "b_conv": jnp.zeros((1, FEAT_C), jnp.float32),
        "w_cls": (0.01 * jax.random.normal(kc, (FEAT_C, NUM_ANCHORS), jnp.float32)
                  ).astype(jnp.bfloat16),
        "b_cls": jnp.zeros((1, NUM_ANCHORS), jnp.float32),
        "w_box": (0.01 * jax.random.normal(kx, (FEAT_C, 4 * NUM_ANCHORS), jnp.float32)
                  ).astype(jnp.bfloat16),
        "b_box": jnp.zeros((1, 4 * NUM_ANCHORS), jnp.float32),
    }


def custom_rpn_forward(images_nchw, params):
    B, _, H, W = images_nchw.shape
    hf, wf = H // STRIDE, W // STRIDE

    x = jnp.transpose(images_nchw, (0, 2, 3, 1))           # NCHW -> NHWC

    # ---- backbone (stride-32 patchify conv + ReLU; Pallas K-tiled matmul) ----
    patches = x.reshape(B, hf, STRIDE, wf, STRIDE, 3)
    patches = jnp.transpose(patches, (0, 1, 3, 2, 4, 5)).reshape(
        B * hf * wf, STRIDE * STRIDE * 3).astype(jnp.bfloat16)
    feat = linear_pallas(patches, params["w_backbone"], params["b_backbone"],
                         relu=True, out_dtype=jnp.bfloat16)
    feat = feat.reshape(B, hf, wf, FEAT_C)

    # ---- RPN head: fused 3x3 conv + ReLU + lane-dense fused cls/bbox 1x1 conv ----
    out_pad = _round_up(5 * NUM_ANCHORS, 128)               # cls(A)+box(4A)=75 -> 128 lanes
    w_head = jnp.concatenate([params["w_cls"], params["w_box"]], axis=1)
    w_head = jnp.pad(w_head, ((0, 0), (0, out_pad - 5 * NUM_ANCHORS)))
    b_head = jnp.concatenate([params["b_cls"], params["b_box"]], axis=1)
    b_head = jnp.pad(b_head, ((0, 0), (0, out_pad - 5 * NUM_ANCHORS)))
    head = rpn_head_pallas(feat, params["w_conv"], params["b_conv"], w_head, b_head)
    cls = head[..., :NUM_ANCHORS]                            # (B, hf*wf, A)
    box = head[..., NUM_ANCHORS:5 * NUM_ANCHORS]             # (B, hf*wf, 4A)
    objectness = cls.reshape(B, hf * wf * NUM_ANCHORS)       # (H, W, A) order
    deltas = box.reshape(B, hf * wf * NUM_ANCHORS, 4)

    # ---- anchors, decode, clip, filter, pre-NMS top-k, NMS (plain JAX) ----
    anchors = grid_anchors(make_cell_anchors(SIZES, RATIOS), hf, wf, STRIDE)
    boxes = jax.vmap(lambda d: decode_boxes(d, anchors))(deltas)
    boxes = jnp.stack([jnp.clip(boxes[..., 0], 0.0, W),
                       jnp.clip(boxes[..., 1], 0.0, H),
                       jnp.clip(boxes[..., 2], 0.0, W),
                       jnp.clip(boxes[..., 3], 0.0, H)], axis=-1)
    scores = jax.nn.sigmoid(objectness)
    ws = boxes[..., 2] - boxes[..., 0]
    hs = boxes[..., 3] - boxes[..., 1]
    valid = (ws >= MIN_SIZE) & (hs >= MIN_SIZE)

    n_total = hf * wf * NUM_ANCHORS
    pre_k = min(PRE_NMS_TOP_N, n_total)
    post_k = min(POST_NMS_TOP_N, pre_k)
    proposals = jax.vmap(functools.partial(proposals_one_image,
                                           pre_k=pre_k, post_k=post_k))(
        boxes, scores, valid)                                # [B, post_k, 4]
    return proposals


if __name__ == "__main__":
    key = jax.random.PRNGKey(0)
    k_img, k_par = jax.random.split(key)
    images = jax.random.normal(k_img, (BATCH, 3, IMG_H, IMG_W), jnp.float32)  # NCHW
    params = init_params(k_par)

    proposals = jax.jit(custom_rpn_forward)(images, params)
    jax.block_until_ready(proposals)
    n_total = (IMG_H // STRIDE) * (IMG_W // STRIDE) * NUM_ANCHORS
    expected_k = min(POST_NMS_TOP_N, min(PRE_NMS_TOP_N, n_total))
    assert proposals.shape == (BATCH, expected_k, 4)
    assert bool(jnp.all(jnp.isfinite(proposals)))
    print("KERNEL_OK")
</pallas_src>

<mosaic_0001>
module attributes {stable_mosaic.version = 11 : i64} {
  func.func private @main(%arg0: i32) attributes {dimension_semantics = [#tpu.dimension_semantics<core_parallel>], iteration_bounds = array<i64: 2>, tpu.core_type = #tpu.core_type<sc_scalar_subcore>, window_params = []} {
    return
  }
}

module attributes {stable_mosaic.version = 11 : i64} {
  func.func private @main(%arg0: i32) attributes {dimension_semantics = [#tpu.dimension_semantics<core_parallel>], iteration_bounds = array<i64: 2>, tpu.core_type = #tpu.core_type<sc_scalar_subcore>, window_params = []} {
    return
  }
}

module attributes {stable_mosaic.version = 11 : i64} {
  func.func @_linear_kernel(%arg0: i32, %arg1: i32, %arg2: memref<128x1024xbf16, #tpu.memory_space<vmem>>, %arg3: memref<1024x128xbf16, #tpu.memory_space<vmem>>, %arg4: memref<1x128xf32, #tpu.memory_space<vmem>>, %arg5: memref<128x128xbf16, #tpu.memory_space<vmem>>, %arg6: memref<128x128xf32, #tpu.memory_space<vmem>>) attributes {dimension_semantics = [#tpu.dimension_semantics<parallel>, #tpu.dimension_semantics<arbitrary>], iteration_bounds = array<i64: 1, 3>, scalar_prefetch = 0 : i64, scratch_operands = 1 : i64, tpu.core_type = #tpu.core_type<tc>, window_params = [{transform_indices = @transform_0, window_bounds = array<i64: 128, 1024>}, {transform_indices = @transform_1, window_bounds = array<i64: 1024, 128>}, {pipeline_mode = #tpu.pipeline_mode<synchronous>, transform_indices = @transform_2, window_bounds = array<i64: 1, 128>}, {transform_indices = @transform_3, window_bounds = array<i64: 128, 128>}]} {
    %c0_i32 = arith.constant 0 : i32
    %0 = arith.cmpi eq, %arg1, %c0_i32 : i32
    %1 = arith.extui %0 : i1 to i32
    %c0_i32_0 = arith.constant 0 : i32
    %2 = arith.cmpi ne, %1, %c0_i32_0 : i32
    scf.if %2 {
      %cst_9 = arith.constant 0.000000e+00 : f32
      %12 = vector.broadcast %cst_9 : f32 to vector<128x128xf32>
      %c0_10 = arith.constant 0 : index
      %c0_11 = arith.constant 0 : index
      %13 = vector.load %arg6[%c0_10, %c0_11] : memref<128x128xf32, #tpu.memory_space<vmem>>, vector<128x128xf32>
      tpu.vector_store %arg6[%c0_10, %c0_11], %12 {strides = array<i32>} : memref<128x128xf32, #tpu.memory_space<vmem>>, vector<128x128xf32>,
    } else {
    }
    %c0 = arith.constant 0 : index
    %c0_1 = arith.constant 0 : index
    %3 = vector.load %arg6[%c0, %c0_1] : memref<128x128xf32, #tpu.memory_space<vmem>>, vector<128x128xf32>
    %c0_2 = arith.constant 0 : index
    %c0_3 = arith.constant 0 : index
    %4 = vector.load %arg2[%c0_2, %c0_3] : memref<128x1024xbf16, #tpu.memory_space<vmem>>, vector<128x1024xbf16>
    %c0_4 = arith.constant 0 : index
    %c0_5 = arith.constant 0 : index
    %5 = vector.load %arg3[%c0_4, %c0_5] : memref<1024x128xbf16, #tpu.memory_space<vmem>>, vector<1024x128xbf16>
    %cst = arith.constant dense<0.000000e+00> : vector<128x128xf32>
    %6 = tpu.matmul %4, %5, %cst {dimension_numbers = #tpu.dot_dimension_numbers<[1], [0], [0], [1], [0, 0, 1, 1], [], []>} : vector<128x1024xbf16>, vector<1024x128xbf16>, vector<128x128xf32> -> vector<128x128xf32>
    %7 = arith.addf %3, %6 : vector<128x128xf32>
    %c0_6 = arith.constant 0 : index
    %c0_7 = arith.constant 0 : index
    %8 = vector.load %arg6[%c0_6, %c0_7] : memref<128x128xf32, #tpu.memory_space<vmem>>, vector<128x128xf32>
    tpu.vector_store %arg6[%c0_6, %c0_7], %7 {strides = array<i32>} : memref<128x128xf32, #tpu.memory_space<vmem>>, vector<128x128xf32>,
    %c2_i32 = arith.constant 2 : i32
    %9 = arith.cmpi eq, %arg1, %c2_i32 : i32
    %10 = arith.extui %9 : i1 to i32
    %c0_i32_8 = arith.constant 0 : i32
    %11 = arith.cmpi ne, %10, %c0_i32_8 : i32
    scf.if %11 {
      %c0_9 = arith.constant 0 : index
      %c0_10 = arith.constant 0 : index
      %12 = vector.load %arg6[%c0_9, %c0_10] : memref<128x128xf32, #tpu.memory_space<vmem>>, vector<128x128xf32>
      %c0_11 = arith.constant 0 : index
      %c0_12 = arith.constant 0 : index
      %13 = vector.load %arg4[%c0_11, %c0_12] : memref<1x128xf32, #tpu.memory_space<vmem>>, vector<1x128xf32>
      %14 = vector.broadcast %13 : vector<1x128xf32> to vector<128x128xf32>
      %15 = arith.addf %12, %14 : vector<128x128xf32>
      %cst_13 = arith.constant 0.000000e+00 : f32
      %16 = vector.broadcast %cst_13 : f32 to vector<128x128xf32>
      %17 = arith.maximumf %15, %16 : vector<128x128xf32>
      %18 = arith.truncf %17 : vector<128x128xf32> to vector<128x128xbf16>
      %c0_14 = arith.constant 0 : index
      %c0_15 = arith.constant 0 : index
      %19 = vector.load %arg5[%c0_14, %c0_15] : memref<128x128xbf16, #tpu.memory_space<vmem>>, vector<128x128xbf16>
      tpu.vector_store %arg5[%c0_14, %c0_15], %18 {strides = array<i32>} : memref<128x128xbf16, #tpu.memory_space<vmem>>, vector<128x128xbf16>,
    } else {
    }
    return
  }
  func.func @transform_0(%arg0: i32, %arg1: i32) -> (i32, i32) {
    %c0_i32 = arith.constant 0 : i32
    return %arg0, %arg1 : i32, i32
  }
  func.func @transform_1(%arg0: i32, %arg1: i32) -> (i32, i32) {
    %c0_i32 = arith.constant 0 : i32
    %c0_i32_0 = arith.constant 0 : i32
    return %arg1, %c0_i32 : i32, i32
  }
  func.func @transform_2(%arg0: i32, %arg1: i32) -> (i32, i32) {
    %c0_i32 = arith.constant 0 : i32
    %c0_i32_0 = arith.constant 0 : i32
    %c0_i32_1 = arith.constant 0 : i32
    return %c0_i32, %c0_i32_0 : i32, i32
  }
  func.func @transform_3(%arg0: i32, %arg1: i32) -> (i32, i32) {
    %c0_i32 = arith.constant 0 : i32
    %c0_i32_0 = arith.constant 0 : i32
    return %arg0, %c0_i32 : i32, i32
  }
}

module attributes {stable_mosaic.version = 11 : i64} {
  func.func @_rpn_head_kernel(%arg0: i32, %arg1: memref<1x96x128xbf16, #tpu.memory_space<vmem>>, %arg2: memref<9x128x128xbf16, #tpu.memory_space<vmem>>, %arg3: memref<1x128xf32, #tpu.memory_space<vmem>>, %arg4: memref<128x128xbf16, #tpu.memory_space<vmem>>, %arg5: memref<1x128xf32, #tpu.memory_space<vmem>>, %arg6: memref<1x64x128xf32, #tpu.memory_space<vmem>>) attributes {dimension_semantics = [#tpu.dimension_semantics<parallel>], iteration_bounds = array<i64: 2>, scalar_prefetch = 0 : i64, scratch_operands = 0 : i64, tpu.core_type = #tpu.core_type<tc>, window_params = [{transform_indices = @transform_0, window_bounds = array<i64: 1, 96, 128>}, {pipeline_mode = #tpu.pipeline_mode<synchronous>, transform_indices = @transform_1, window_bounds = array<i64: 9, 128, 128>}, {pipeline_mode = #tpu.pipeline_mode<synchronous>, transform_indices = @transform_2, window_bounds = array<i64: 1, 128>}, {pipeline_mode = #tpu.pipeline_mode<synchronous>, transform_indices = @transform_3, window_bounds = array<i64: 128, 128>}, {pipeline_mode = #tpu.pipeline_mode<synchronous>, transform_indices = @transform_4, window_bounds = array<i64: 1, 128>}, {transform_indices = @transform_5, window_bounds = array<i64: 1, 64, 128>}]} {
    %0 = tpu.iota {dimensions = array<i32: 0>} : vector<64x1xi32>
    %c8_i32 = arith.constant 8 : i32
    %c0_i32 = arith.constant 0 : i32
    %1 = arith.cmpi eq, %c8_i32, %c0_i32 : i32
    %c1_i32 = arith.constant 1 : i32
    %2 = arith.select %1, %c1_i32, %c8_i32 : i32
    %3 = vector.broadcast %2 : i32 to vector<64x1xi32>
    %4 = arith.remsi %0, %3 : vector<64x1xi32>
    %c0_i32_0 = arith.constant 0 : i32
    %5 = vector.broadcast %c0_i32_0 : i32 to vector<64x1xi32>
    %6 = arith.cmpi ne, %4, %5 : vector<64x1xi32>
    %c0_i32_1 = arith.constant 0 : i32
    %7 = vector.broadcast %c0_i32_1 : i32 to vector<64x1xi32>
    %8 = arith.cmpi slt, %4, %7 : vector<64x1xi32>
    %c0_i32_2 = arith.constant 0 : i32
    %9 = arith.cmpi slt, %2, %c0_i32_2 : i32
    %10 = vector.broadcast %9 : i1 to vector<64x1xi1>
    %11 = vector.broadcast %10 : vector<64x1xi1> to vector<64x1xi1>
    %12 = arith.xori %8, %11 : vector<64x1xi1>
    %13 = arith.andi %12, %6 : vector<64x1xi1>
    %14 = vector.broadcast %2 : i32 to vector<64x1xi32>
    %15 = arith.addi %4, %14 : vector<64x1xi32>
    %16 = arith.select %13, %15, %4 : vector<64x1xi1>, vector<64x1xi32>
    %c0_i32_3 = arith.constant 0 : i32
    %17 = vector.broadcast %c0_i32_3 : i32 to vector<64x1xi32>
    %18 = arith.cmpi ne, %16, %17 : vector<64x1xi32>
    %c7_i32 = arith.constant 7 : i32
    %19 = vector.broadcast %c7_i32 : i32 to vector<64x1xi32>
    %20 = arith.cmpi ne, %16, %19 : vector<64x1xi32>
    %cst = arith.constant 0.000000e+00 : f32
    %21 = vector.broadcast %cst : f32 to vector<64x128xf32>
    %c0 = arith.constant 0 : index
    %c7 = arith.constant 7 : index
    %c0_4 = arith.constant 0 : index
    %22 = vector.load %arg1[%c0, %c7, %c0_4] : memref<1x96x128xbf16, #tpu.memory_space<vmem>>, vector<1x64x128xbf16>
    %23 = vector.shape_cast %22 : vector<1x64x128xbf16> to vector<64x128xbf16>
    %cst_5 = arith.constant 0.000000e+00 : bf16
    %24 = vector.broadcast %cst_5 : bf16 to vector<64x128xbf16>
    %25 = vector.shape_cast %18 : vector<64x1xi1> to vector<64x1xi1>
    %26 = vector.broadcast %25 : vector<64x1xi1> to vector<64x128xi1>
    %27 = arith.select %26, %23, %24 : vector<64x128xi1>, vector<64x128xbf16>
    %c0_6 = arith.constant 0 : index
    %c0_7 = arith.constant 0 : index
    %c0_8 = arith.constant 0 : index
    %28 = vector.load %arg2[%c0_6, %c0_7, %c0_8] : memref<9x128x128xbf16, #tpu.memory_space<vmem>>, vector<1x128x128xbf16>
    %29 = vector.shape_cast %28 : vector<1x128x128xbf16> to vector<128x128xbf16>
    %cst_9 = arith.constant dense<0.000000e+00> : vector<64x128xf32>
    %30 = tpu.matmul %27, %29, %cst_9 {dimension_numbers = #tpu.dot_dimension_numbers<[1], [0], [0], [1], [0, 0, 1, 1], [], []>} : vector<64x128xbf16>, vector<128x128xbf16>, vector<64x128xf32> -> vector<64x128xf32>
    %31 = arith.addf %21, %30 : vector<64x128xf32>
    %c0_10 = arith.constant 0 : index
    %c8 = arith.constant 8 : index
    %c0_11 = arith.constant 0 : index
    %32 = vector.load %arg1[%c0_10, %c8, %c0_11] : memref<1x96x128xbf16, #tpu.memory_space<vmem>>, vector<1x64x128xbf16>
    %33 = vector.shape_cast %32 : vector<1x64x128xbf16> to vector<64x128xbf16>
    %c1 = arith.constant 1 : index
    %c0_12 = arith.constant 0 : index
    %c0_13 = arith.constant 0 : index
    %34 = vector.load %arg2[%c1, %c0_12, %c0_13] : memref<9x128x128xbf16, #tpu.memory_space<vmem>>, vector<1x128x128xbf16>
    %35 = vector.shape_cast %34 : vector<1x128x128xbf16> to vector<128x128xbf16>
    %cst_14 = arith.constant dense<0.000000e+00> : vector<64x128xf32>
    %36 = tpu.matmul %33, %35, %cst_14 {dimension_numbers = #tpu.dot_dimension_numbers<[1], [0], [0], [1], [0, 0, 1, 1], [], []>} : vector<64x128xbf16>, vector<128x128xbf16>, vector<64x128xf32> -> vector<64x128xf32>
    %37 = arith.addf %31, %36 : vector<64x128xf32>
    %c0_15 = arith.constant 0 : index
    %c9 = arith.constant 9 : index
    %c0_16 = arith.constant 0 : index
    %38 = vector.load %arg1[%c0_15, %c9, %c0_16] : memref<1x96x128xbf16, #tpu.memory_space<vmem>>, vector<1x64x128xbf16>
    %39 = vector.shape_cast %38 : vector<1x64x128xbf16> to vector<64x128xbf16>
    %cst_17 = arith.constant 0.000000e+00 : bf16
    %40 = vector.broadcast %cst_17 : bf16 to vector<64x128xbf16>
    %41 = vector.shape_cast %20 : vector<64x1xi1> to vector<64x1xi1>
    %42 = vector.broadcast %41 : vector<64x1xi1> to vector<64x128xi1>
    %43 = arith.select %42, %39, %40 : vector<64x128xi1>, vector<64x128xbf16>
    %c2 = arith.constant 2 : index
    %c0_18 = arith.constant 0 : index
    %c0_19 = arith.constant 0 : index
    %44 = vector.load %arg2[%c2, %c0_18, %c0_19] : memref<9x128x128xbf16, #tpu.memory_space<vmem>>, vector<1x128x128xbf16>
    %45 = vector.shape_cast %44 : vector<1x128x128xbf16> to vector<128x128xbf16>
    %cst_20 = arith.constant dense<0.000000e+00> : vector<64x128xf32>
    %46 = tpu.matmul %43, %45, %cst_20 {dimension_numbers = #tpu.dot_dimension_numbers<[1], [0], [0], [1], [0, 0, 1, 1], [], []>} : vector<64x128xbf16>, vector<128x128xbf16>, vector<64x128xf32> -> vector<64x128xf32>
    %47 = arith.addf %37, %46 : vector<64x128xf32>
    %c0_21 = arith.constant 0 : index
    %c15 = arith.constant 15 : index
    %c0_22 = arith.constant 0 : index
    %48 = vector.load %arg1[%c0_21, %c15, %c0_22] : memref<1x96x128xbf16, #tpu.memory_space<vmem>>, vector<1x64x128xbf16>
    %49 = vector.shape_cast %48 : vector<1x64x128xbf16> to vector<64x128xbf16>
    %cst_23 = arith.constant 0.000000e+00 : bf16
    %50 = vector.broadcast %cst_23 : bf16 to vector<64x128xbf16>
    %51 = vector.shape_cast %18 : vector<64x1xi1> to vector<64x1xi1>
    %52 = vector.broadcast %51 : vector<64x1xi1> to vector<64x128xi1>
    %53 = arith.select %52, %49, %50 : vector<64x128xi1>, vector<64x128xbf16>
    %c3 = arith.constant 3 : index
    %c0_24 = arith.constant 0 : index
    %c0_25 = arith.constant 0 : index
    %54 = vector.load %arg2[%c3, %c0_24, %c0_25] : memref<9x128x128xbf16, #tpu.memory_space<vmem>>, vector<1x128x128xbf16>
    %55 = vector.shape_cast %54 : vector<1x128x128xbf16> to vector<128x128xbf16>
    %cst_26 = arith.constant dense<0.000000e+00> : vector<64x128xf32>
    %56 = tpu.matmul %53, %55, %cst_26 {dimension_numbers = #tpu.dot_dimension_numbers<[1], [0], [0], [1], [0, 0, 1, 1], [], []>} : vector<64x128xbf16>, vector<128x128xbf16>, vector<64x128xf32> -> vector<64x128xf32>
    %57 = arith.addf %47, %56 : vector<64x128xf32>
    %c0_27 = arith.constant 0 : index
    %c16 = arith.constant 16 : index
    %c0_28 = arith.constant 0 : index
    %58 = vector.load %arg1[%c0_27, %c16, %c0_28] : memref<1x96x128xbf16, #tpu.memory_space<vmem>>, vector<1x64x128xbf16>
    %59 = vector.shape_cast %58 : vector<1x64x128xbf16> to vector<64x128xbf16>
    %c4 = arith.constant 4 : index
    %c0_29 = arith.constant 0 : index
    %c0_30 = arith.constant 0 : index
    %60 = vector.load %arg2[%c4, %c0_29, %c0_30] : memref<9x128x128xbf16, #tpu.memory_space<vmem>>, vector<1x128x128xbf16>
    %61 = vector.shape_cast %60 : vector<1x128x128xbf16> to vector<128x128xbf16>
    %cst_31 = arith.constant dense<0.000000e+00> : vector<64x128xf32>
    %62 = tpu.matmul %59, %61, %cst_31 {dimension_numbers = #tpu.dot_dimension_numbers<[1], [0], [0], [1], [0, 0, 1, 1], [], []>} : vector<64x128xbf16>, vector<128x128xbf16>, vector<64x128xf32> -> vector<64x128xf32>
    %63 = arith.addf %57, %62 : vector<64x128xf32>
    %c0_32 = arith.constant 0 : index
    %c17 = arith.constant 17 : index
    %c0_33 = arith.constant 0 : index
    %64 = vector.load %arg1[%c0_32, %c17, %c0_33] : memref<1x96x128xbf16, #tpu.memory_space<vmem>>, vector<1x64x128xbf16>
    %65 = vector.shape_cast %64 : vector<1x64x128xbf16> to vector<64x128xbf16>
    %cst_34 = arith.constant 0.000000e+00 : bf16
    %66 = vector.broadcast %cst_34 : bf16 to vector<64x128xbf16>
    %67 = vector.shape_cast %20 : vector<64x1xi1> to vector<64x1xi1>
    %68 = vector.broadcast %67 : vector<64x1xi1> to vector<64x128xi1>
    %69 = arith.select %68, %65, %66 : vector<64x128xi1>, vector<64x128xbf16>
    %c5 = arith.constant 5 : index
    %c0_35 = arith.constant 0 : index
    %c0_36 = arith.constant 0 : index
    %70 = vector.load %arg2[%c5, %c0_35, %c0_36] : memref<9x128x128xbf16, #tpu.memory_space<vmem>>, vector<1x128x128xbf16>
    %71 = vector.shape_cast %70 : vector<1x128x128xbf16> to vector<128x128xbf16>
    %cst_37 = arith.constant dense<0.000000e+00> : vector<64x128xf32>
    %72 = tpu.matmul %69, %71, %cst_37 {dimension_numbers = #tpu.dot_dimension_numbers<[1], [0], [0], [1], [0, 0, 1, 1], [], []>} : vector<64x128xbf16>, vector<128x128xbf16>, vector<64x128xf32> -> vector<64x128xf32>
    %73 = arith.addf %63, %72 : vector<64x128xf32>
    %c0_38 = arith.constant 0 : index
    %c23 = arith.constant 23 : index
    %c0_39 = arith.constant 0 : index
    %74 = vector.load %arg1[%c0_38, %c23, %c0_39] : memref<1x96x128xbf16, #tpu.memory_space<vmem>>, vector<1x64x128xbf16>
    %75 = vector.shape_cast %74 : vector<1x64x128xbf16> to vector<64x128xbf16>
    %cst_40 = arith.constant 0.000000e+00 : bf16
    %76 = vector.broadcast %cst_40 : bf16 to vector<64x128xbf16>
    %77 = vector.shape_cast %18 : vector<64x1xi1> to vector<64x1xi1>
    %78 = vector.broadcast %77 : vector<64x1xi1> to vector<64x128xi1>
    %79 = arith.select %78, %75, %76 : vector<64x128xi1>, vector<64x128xbf16>
    %c6 = arith.constant 6 : index
    %c0_41 = arith.constant 0 : index
    %c0_42 = arith.constant 0 : index
    %80 = vector.load %arg2[%c6, %c0_41, %c0_42] : memref<9x128x128xbf16, #tpu.memory_space<vmem>>, vector<1x128x128xbf16>
    %81 = vector.shape_cast %80 : vector<1x128x128xbf16> to vector<128x128xbf16>
    %cst_43 = arith.constant dense<0.000000e+00> : vector<64x128xf32>
    %82 = tpu.matmul %79, %81, %cst_43 {dimension_numbers = #tpu.dot_dimension_numbers<[1], [0], [0], [1], [0, 0, 1, 1], [], []>} : vector<64x128xbf16>, vector<128x128xbf16>, vector<64x128xf32> -> vector<64x128xf32>
    %83 = arith.addf %73, %82 : vector<64x128xf32>
    %c0_44 = arith.constant 0 : index
    %c24 = arith.constant 24 : index
    %c0_45 = arith.constant 0 : index
    %84 = vector.load %arg1[%c0_44, %c24, %c0_45] : memref<1x96x128xbf16, #tpu.memory_space<vmem>>, vector<1x64x128xbf16>
    %85 = vector.shape_cast %84 : vector<1x64x128xbf16> to vector<64x128xbf16>
    %c7_46 = arith.constant 7 : index
    %c0_47 = arith.constant 0 : index
    %c0_48 = arith.constant 0 : index
    %86 = vector.load %arg2[%c7_46, %c0_47, %c0_48] : memref<9x128x128xbf16, #tpu.memory_space<vmem>>, vector<1x128x128xbf16>
    %87 = vector.shape_cast %86 : vector<1x128x128xbf16> to vector<128x128xbf16>
    %cst_49 = arith.constant dense<0.000000e+00> : vector<64x128xf32>
    %88 = tpu.matmul %85, %87, %cst_49 {dimension_numbers = #tpu.dot_dimension_numbers<[1], [0], [0], [1], [0, 0, 1, 1], [], []>} : vector<64x128xbf16>, vector<128x128xbf16>, vector<64x128xf32> -> vector<64x128xf32>
    %89 = arith.addf %83, %88 : vector<64x128xf32>
    %c0_50 = arith.constant 0 : index
    %c25 = arith.constant 25 : index
    %c0_51 = arith.constant 0 : index
    %90 = vector.load %arg1[%c0_50, %c25, %c0_51] : memref<1x96x128xbf16, #tpu.memory_space<vmem>>, vector<1x64x128xbf16>
    %91 = vector.shape_cast %90 : vector<1x64x128xbf16> to vector<64x128xbf16>
    %cst_52 = arith.constant 0.000000e+00 : bf16
    %92 = vector.broadcast %cst_52 : bf16 to vector<64x128xbf16>
    %93 = vector.shape_cast %20 : vector<64x1xi1> to vector<64x1xi1>
    %94 = vector.broadcast %93 : vector<64x1xi1> to vector<64x128xi1>
    %95 = arith.select %94, %91, %92 : vector<64x128xi1>, vector<64x128xbf16>
    %c8_53 = arith.constant 8 : index
    %c0_54 = arith.constant 0 : index
    %c0_55 = arith.constant 0 : index
    %96 = vector.load %arg2[%c8_53, %c0_54, %c0_55] : memref<9x128x128xbf16, #tpu.memory_space<vmem>>, vector<1x128x128xbf16>
    %97 = vector.shape_cast %96 : vector<1x128x128xbf16> to vector<128x128xbf16>
    %cst_56 = arith.constant dense<0.000000e+00> : vector<64x128xf32>
    %98 = tpu.matmul %95, %97, %cst_56 {dimension_numbers = #tpu.dot_dimension_numbers<[1], [0], [0], [1], [0, 0, 1, 1], [], []>} : vector<64x128xbf16>, vector<128x128xbf16>, vector<64x128xf32> -> vector<64x128xf32>
    %99 = arith.addf %89, %98 : vector<64x128xf32>
    %c0_57 = arith.constant 0 : index
    %c0_58 = arith.constant 0 : index
    %100 = vector.load %arg3[%c0_57, %c0_58] : memref<1x128xf32, #tpu.memory_space<vmem>>, vector<1x128xf32>
    %101 = vector.broadcast %100 : vector<1x128xf32> to vector<64x128xf32>
    %102 = arith.addf %99, %101 : vector<64x128xf32>
    %cst_59 = arith.constant 0.000000e+00 : f32
    %103 = vector.broadcast %cst_59 : f32 to vector<64x128xf32>
    %104 = arith.maximumf %102, %103 : vector<64x128xf32>
    %105 = arith.truncf %104 : vector<64x128xf32> to vector<64x128xbf16>
    %c0_60 = arith.constant 0 : index
    %c0_61 = arith.constant 0 : index
    %106 = vector.load %arg4[%c0_60, %c0_61] : memref<128x128xbf16, #tpu.memory_space<vmem>>, vector<128x128xbf16>
    %cst_62 = arith.constant dense<0.000000e+00> : vector<64x128xf32>
    %107 = tpu.matmul %105, %106, %cst_62 {dimension_numbers = #tpu.dot_dimension_numbers<[1], [0], [0], [1], [0, 0, 1, 1], [], []>} : vector<64x128xbf16>, vector<128x128xbf16>, vector<64x128xf32> -> vector<64x128xf32>
    %c0_63 = arith.constant 0 : index
    %c0_64 = arith.constant 0 : index
    %108 = vector.load %arg5[%c0_63, %c0_64] : memref<1x128xf32, #tpu.memory_space<vmem>>, vector<1x128xf32>
    %109 = vector.broadcast %108 : vector<1x128xf32> to vector<64x128xf32>
    %110 = arith.addf %107, %109 : vector<64x128xf32>
    %c0_65 = arith.constant 0 : index
    %c0_66 = arith.constant 0 : index
    %c0_67 = arith.constant 0 : index
    %111 = vector.load %arg6[%c0_65, %c0_66, %c0_67] : memref<1x64x128xf32, #tpu.memory_space<vmem>>, vector<1x64x128xf32>
    %112 = vector.shape_cast %111 : vector<1x64x128xf32> to vector<64x128xf32>
    %113 = vector.shape_cast %110 : vector<64x128xf32> to vector<1x64x128xf32>
    tpu.vector_store %arg6[%c0_65, %c0_66, %c0_67], %113 {strides = array<i32>} : memref<1x64x128xf32, #tpu.memory_space<vmem>>, vector<1x64x128xf32>,
    return
  }
  func.func @transform_0(%arg0: i32) -> (i32, i32, i32) {
    %c0_i32 = arith.constant 0 : i32
    %c0_i32_0 = arith.constant 0 : i32
    %c0_i32_1 = arith.constant 0 : i32
    return %arg0, %c0_i32, %c0_i32_0 : i32, i32, i32
  }
  func.func @transform_1(%arg0: i32) -> (i32, i32, i32) {
    %c0_i32 = arith.constant 0 : i32
    %c0_i32_0 = arith.constant 0 : i32
    %c0_i32_1 = arith.constant 0 : i32
    %c0_i32_2 = arith.constant 0 : i32
    return %c0_i32, %c0_i32_0, %c0_i32_1 : i32, i32, i32
  }
  func.func @transform_2(%arg0: i32) -> (i32, i32) {
    %c0_i32 = arith.constant 0 : i32
    %c0_i32_0 = arith.constant 0 : i32
    %c0_i32_1 = arith.constant 0 : i32
    return %c0_i32, %c0_i32_0 : i32, i32
  }
  func.func @transform_3(%arg0: i32) -> (i32, i32) {
    %c0_i32 = arith.constant 0 : i32
    %c0_i32_0 = arith.constant 0 : i32
    %c0_i32_1 = arith.constant 0 : i32
    return %c0_i32, %c0_i32_0 : i32, i32
  }
  func.func @transform_4(%arg0: i32) -> (i32, i32) {
    %c0_i32 = arith.constant 0 : i32
    %c0_i32_0 = arith.constant 0 : i32
    %c0_i32_1 = arith.constant 0 : i32
    return %c0_i32, %c0_i32_0 : i32, i32
  }
  func.func @transform_5(%arg0: i32) -> (i32, i32, i32) {
    %c0_i32 = arith.constant 0 : i32
    %c0_i32_0 = arith.constant 0 : i32
    %c0_i32_1 = arith.constant 0 : i32
    return %arg0, %c0_i32, %c0_i32_0 : i32, i32, i32
  }
}

</mosaic_0001>

<bundles_post_ra>
// kernel: custom_rpn_forward.2
= control target key start
LH: loop header
LB: loop body
LE: loop exit
PB: predicated region body
PF: predicated region fallthrough
CT: control target
= control target key end

     0   :  { %8 = vsyncpa [#allocation5], 0  ;;  %s3232_s0 = inlined_call_operand.vmem [shape: bf16[128,3072], index: 0, kind: input, shape index: {}]   ;;  %s3233_s1 = inlined_call_operand.hbm [shape: bf16[3072,128], index: 1, kind: input, shape index: {}]   ;;  %s3234_s2 = inlined_call_operand.hbm [shape: f32[1,128], index: 2, kind: input, shape index: {}]   ;;  %s3235_s3 = inlined_call_operand.vmem [shape: bf16[128,128], index: 3, kind: output, shape index: {}]  }
   0x1   :  { %10 = vsyncpa [#allocation5 + $0x1], 0 }
   0x2   :  { %11 = vsyncpa [#allocation7], 0  ;;  %s2738_s12 = smov 0   ;;  %s2740_s13 = smov 0  }
   0x3   :  { %s2742_s14 = smov 0   ;;  %s2744_s15 = smov 0  }
   0x4   :  { %s2746_s16 = smov 0   ;;  %s2748_s17 = smov 0  }
   0x5 LB: > { %s1987_s18 = sadd.s32 4294967295, %s2711_s17   ;;  %s26_s19 = sadd.s32 1, %s2707_s16  ;;  %s2711_s17 = sphi %s2748_s17, %s17_s17   ;;  %s2707_s16 = sphi %s2746_s16, %s3255_s16   ;;  %s2703_s15 = sphi %s2744_s15, %s3254_s15   ;;  %s2699_s14 = sphi %s2742_s14, %s3253_s14   ;;  %s2695_s13 = sphi %s2740_s13, %s3252_s13   ;;  %s2691_s12 = sphi %s2738_s12, %s3251_s12  }
   0x6   : > { %p27_p0 = scmp.ge.s32.totalorder %s26_s19, 3  ;;  %s38_s20 = sadd.s32 1, %s2699_s14 }
   0x7   : > { %p45_p1 = scmp.ne.s32.totalorder %s2699_s14, %s2695_s13  ;;  %p46_p2 = scmp.eq.s32.totalorder %s2711_s17, 0 }
   0x8   : > { %s3257_s19 = smov (%p27_p0, %s26_s19), 0  ;;  %p77_p4 = scmp.ne.s32.totalorder %s2695_s13, %s2691_s12 }
   0x9   : > { %p2774_p3 = por %p46_p2, %p45_p1  ;;  %s34_s22 = ssub.s32 %s2707_s16, %s3257_s19 }
   0xa   : > { %p2781_p5 = scmp.eq.s32.totalorder %s1987_s18, 0  ;;  %p36_p6 = scmp.eq.s32.totalorder %s34_s22, 0 }
   0xb   : > { %s3241_s21 = scalar_select %p2774_p3, 1, 0 }
   0xc   : > { %s3242_s23 = scalar_select %p2781_p5, 1, 0 }
   0xd   : > { %p1988_p7 = scmp.ge.s32.totalorder %s2711_s17, 1  ;;  %p2788_p8 = por %p2781_p5, %p77_p4 }
   0xe   : > { %p135_p9 = scmp.lt.s32.totalorder %s2711_s17, 4  ;;  %s2713_s27 = smov [#allocation6]  }
   0xf   : > { %s3243_s24 = scalar_select %p2788_p8, 1, 0 }
  0x10   : > { %s2794_s25 = scalar_select %p36_p6, %s2699_s14, %s38_s20  }
  0x11   : > { %p2796_p10 = pnand %p1988_p7, %p135_p9  ;;  %s148_s28 = sshll.u32 %s2713_s27, 4  ;;  %s149_s28 = int_to_ptr.vmem [resolvable:$true] %s148_s28 }
  0x12   : > { %s2601_s5 = scalar_lea.hbm %s3234_s2, 16 }
  0x13   : > { %s3244_s26 = scalar_select %p2796_p10, 1, 0 }
  0x14   : > { %p2479_p11 = pneg %p2796_p10  ;;  %p2602_p13 = scmp.ne.s32.totalorder %s3234_s2, %s2601_s5 }
  0x15   : > { %p2608_p4 = scmp.lt.u32.totalorder %s2601_s5, %s3234_s2 }
  0x16   : > { %p2804_p12 = pnand %p2479_p11, %p2781_p5 }
  0x18   : > { %p2603_p0 = pneg %p2804_p12 }
  0x1a   : > { %p2604_p1 = pnand %p2603_p0, %p2602_p13 }
  0x1c   : > { %p2605_p2 = pneg %p2604_p1 }
  0x1e   : > { %p2610_p6 = pnand %p2608_p4, %p2605_p2 }
  0x20   : > { %2613 = shalt.err (!%p2610_p6)
}
  0x21   : > { %s2614_s10 = scalar_lea.vmem %s149_s28, 16  ;;  %s2621_s11 = scalar_lea.vmem %s149_s28, 32 }
  0x22   : > { %p2615_p7 = scmp.ne.s32.totalorder %s149_s28, %s2614_s10  ;;  %p2622_p5 = scmp.lt.s32.totalorder %s149_s28, %s149_s28 }
  0x23   : > { %p2623_p8 = scmp.lt.s32.totalorder %s2621_s11, %s2614_s10 }
  0x24   : > { %p2617_p9 = pnand %p2615_p7, %p2603_p0 }
  0x25   : > { %p2624_p10 = por %p2623_p8, %p2622_p5 }
  0x26   : > { %p2618_p11 = pneg %p2617_p9 }
  0x28   : > { %p2625_p3 = pnand %p2624_p10, %p2618_p11 }
  0x2a   : > { %2628 = shalt.err (!%p2625_p3)
}
  0x2b   : > { %2482 = dma.hbm_to_vmem [thread:$0]  (!%p2804_p12), %s3234_s2, 16, %s149_s28, [#allocation7]  }
  0x2c   : > { %p1990_p13 = scmp.ge.s32.totalorder %s2711_s17, 3 }
  0x2d   : > { %p3246_p1 = scmp.ne.s32.totalorder (!%p1990_p13), %s3241_s21, 0 }
  0x2e   : > { %155 = sbr.rel (%p1990_p13) target bundleno = 116 (0x74), region = 20 }
  0x35   : > { %158 = sbr.rel (!%p3246_p1) target bundleno = 89 (0x59), region = 24  ;;  %s160_s20 = sand.u32 (%p3246_p1), 1, %s2699_s14  }
  0x36   : > { %s2152_s22 = sshll.u32 (%p3246_p1), %s2707_s16, 5  ;;  %s1991_s27 = sshll.u32 (%p3246_p1), %s160_s20, 9 }
  0x37   : > { %s2832_s5 = scalar_lea.vmem (%p3246_p1), %s3232_s0, %s2152_s22  ;;  %s2837_s28 = scalar_lea.vmem (%p3246_p1), [#allocation3], %s1991_s27 }
  0x38   : > { %v181_v0 = vld [vmem:[%s2832_s5] sm:$0xff] (%p3246_p1)  ;;  %v183_v1 = vld [vmem:[%s2832_s5 + $0x8] sm:$0xff] (%p3246_p1)  ;;  %v185_v2 = vld [vmem:[%s2832_s5 + $0x10] sm:$0xff] (%p3246_p1) }
  0x39   : > { %182 = vst [vmem:[%s2837_s28] sm:$0xff] (%p3246_p1), %v181_v0  ;;  %184 = vst [vmem:[%s2837_s28 + $0x8] sm:$0xff] (%p3246_p1), %v183_v1  ;;  %v187_v3 = vld [vmem:[%s2832_s5 + $0x18] sm:$0xff] (%p3246_p1)  ;;  %v189_v4 = vld [vmem:[%s2832_s5 + $0x60] sm:$0xff] (%p3246_p1) }
  0x3a   : > { %186 = vst [vmem:[%s2837_s28 + $0x10] sm:$0xff] (%p3246_p1), %v185_v2  ;;  %v191_v5 = vld [vmem:[%s2832_s5 + $0x68] sm:$0xff] (%p3246_p1)  ;;  %188 = vst [vmem:[%s2837_s28 + $0x18] sm:$0xff] (%p3246_p1), %v187_v3  ;;  %v193_v6 = vld [vmem:[%s2832_s5 + $0x70] sm:$0xff] (%p3246_p1) }
  0x3b   : > { %190 = vst [vmem:[%s2837_s28 + $0x20] sm:$0xff] (%p3246_p1), %v189_v4  ;;  %192 = vst [vmem:[%s2837_s28 + $0x28] sm:$0xff] (%p3246_p1), %v191_v5  ;;  %v195_v7 = vld [vmem:[%s2832_s5 + $0x78] sm:$0xff] (%p3246_p1)  ;;  %v197_v8 = vld [vmem:[%s2832_s5 + $0xc0] sm:$0xff] (%p3246_p1) }
  0x3c   : > { %194 = vst [vmem:[%s2837_s28 + $0x30] sm:$0xff] %v193_v6  ;;  %196 = vst [vmem:[%s2837_s28 + $0x38] sm:$0xff] %v195_v7  ;;  %v199_v9 = vld [vmem:[%s2832_s5 + $0xc8] sm:$0xff]  ;;  %v201_v10 = vld [vmem:[%s2832_s5 + $0xd0] sm:$0xff] }
  0x3d   : > { %198 = vst [vmem:[%s2837_s28 + $0x40] sm:$0xff] %v197_v8  ;;  %v203_v11 = vld [vmem:[%s2832_s5 + $0xd8] sm:$0xff]  ;;  %200 = vst [vmem:[%s2837_s28 + $0x48] sm:$0xff] %v199_v9  ;;  %v205_v12 = vld [vmem:[%s2832_s5 + $0x120] sm:$0xff] }
  0x3e   : > { %202 = vst [vmem:[%s2837_s28 + $0x50] sm:$0xff] %v201_v10  ;;  %204 = vst [vmem:[%s2837_s28 + $0x58] sm:$0xff] %v203_v11  ;;  %v207_v13 = vld [vmem:[%s2832_s5 + $0x128] sm:$0xff]  ;;  %v209_v14 = vld [vmem:[%s2832_s5 + $0x130] sm:$0xff] }
  0x3f   : > { %206 = vst [vmem:[%s2837_s28 + $0x60] sm:$0xff] %v205_v12  ;;  %208 = vst [vmem:[%s2837_s28 + $0x68] sm:$0xff] %v207_v13  ;;  %v211_v15 = vld [vmem:[%s2832_s5 + $0x138] sm:$0xff]  ;;  %v213_v16 = vld [vmem:[%s2832_s5 + $0x180] sm:$0xff] }
  0x40   : > { %210 = vst [vmem:[%s2837_s28 + $0x70] sm:$0xff] %v209_v14  ;;  %v215_v17 = vld [vmem:[%s2832_s5 + $0x188] sm:$0xff]  ;;  %212 = vst [vmem:[%s2837_s28 + $0x78] sm:$0xff] %v211_v15  ;;  %v217_v18 = vld [vmem:[%s2832_s5 + $0x190] sm:$0xff] }
  0x41   : > { %214 = vst [vmem:[%s2837_s28 + $0x80] sm:$0xff] %v213_v16  ;;  %216 = vst [vmem:[%s2837_s28 + $0x88] sm:$0xff] %v215_v17  ;;  %v219_v19 = vld [vmem:[%s2832_s5 + $0x198] sm:$0xff]  ;;  %v221_v20 = vld [vmem:[%s2832_s5 + $0x1e0] sm:$0xff] }
  0x42   : > { %218 = vst [vmem:[%s2837_s28 + $0x90] sm:$0xff] %v217_v18  ;;  %220 = vst [vmem:[%s2837_s28 + $0x98] sm:$0xff] %v219_v19  ;;  %v223_v21 = vld [vmem:[%s2832_s5 + $0x1e8] sm:$0xff]  ;;  %v225_v22 = vld [vmem:[%s2832_s5 + $0x1f0] sm:$0xff] }
  0x43   : > { %222 = vst [vmem:[%s2837_s28 + $0xa0] sm:$0xff] %v221_v20  ;;  %v227_v23 = vld [vmem:[%s2832_s5 + $0x1f8] sm:$0xff]  ;;  %224 = vst [vmem:[%s2837_s28 + $0xa8] sm:$0xff] %v223_v21  ;;  %v229_v24 = vld [vmem:[%s2832_s5 + $0x240] sm:$0xff] }
  0x44   : > { %226 = vst [vmem:[%s2837_s28 + $0xb0] sm:$0xff] %v225_v22  ;;  %228 = vst [vmem:[%s2837_s28 + $0xb8] sm:$0xff] %v227_v23  ;;  %v231_v25 = vld [vmem:[%s2832_s5 + $0x248] sm:$0xff]  ;;  %v233_v26 = vld [vmem:[%s2832_s5 + $0x250] sm:$0xff] }
  0x45   : > { %230 = vst [vmem:[%s2837_s28 + $0xc0] sm:$0xff] %v229_v24  ;;  %232 = vst [vmem:[%s2837_s28 + $0xc8] sm:$0xff] %v231_v25  ;;  %v235_v27 = vld [vmem:[%s2832_s5 + $0x258] sm:$0xff]  ;;  %v237_v28 = vld [vmem:[%s2832_s5 + $0x2a0] sm:$0xff] }
  0x46   : > { %234 = vst [vmem:[%s2837_s28 + $0xd0] sm:$0xff] %v233_v26  ;;  %v239_v29 = vld [vmem:[%s2832_s5 + $0x2a8] sm:$0xff]  ;;  %236 = vst [vmem:[%s2837_s28 + $0xd8] sm:$0xff] %v235_v27  ;;  %v241_v30 = vld [vmem:[%s2832_s5 + $0x2b0] sm:$0xff] }
  0x47   : > { %238 = vst [vmem:[%s2837_s28 + $0xe0] sm:$0xff] %v237_v28  ;;  %240 = vst [vmem:[%s2837_s28 + $0xe8] sm:$0xff] %v239_v29  ;;  %v243_v31 = vld [vmem:[%s2832_s5 + $0x2b8] sm:$0xff]  ;;  %v245_v32 = vld [vmem:[%s2832_s5 + $0x300] sm:$0xff] }
  0x48   : > { %242 = vst [vmem:[%s2837_s28 + $0xf0] sm:$0xff] %v241_v30  ;;  %244 = vst [vmem:[%s2837_s28 + $0xf8] sm:$0xff] %v243_v31  ;;  %v247_v33 = vld [vmem:[%s2832_s5 + $0x308] sm:$0xff]  ;;  %v249_v34 = vld [vmem:[%s2832_s5 + $0x310] sm:$0xff] }
  0x49   : > { %246 = vst [vmem:[%s2837_s28 + $0x100] sm:$0xff] %v245_v32  ;;  %v251_v35 = vld [vmem:[%s2832_s5 + $0x318] sm:$0xff]  ;;  %248 = vst [vmem:[%s2837_s28 + $0x108] sm:$0xff] %v247_v33  ;;  %v253_v36 = vld [vmem:[%s2832_s5 + $0x360] sm:$0xff] }
  0x4a   : > { %250 = vst [vmem:[%s2837_s28 + $0x110] sm:$0xff] %v249_v34  ;;  %252 = vst [vmem:[%s2837_s28 + $0x118] sm:$0xff] %v251_v35  ;;  %v255_v37 = vld [vmem:[%s2832_s5 + $0x368] sm:$0xff]  ;;  %v257_v38 = vld [vmem:[%s2832_s5 + $0x370] sm:$0xff] }
  0x4b   : > { %254 = vst [vmem:[%s2837_s28 + $0x120] sm:$0xff] %v253_v36  ;;  %256 = vst [vmem:[%s2837_s28 + $0x128] sm:$0xff] %v255_v37  ;;  %v259_v39 = vld [vmem:[%s2832_s5 + $0x378] sm:$0xff]  ;;  %v261_v40 = vld [vmem:[%s2832_s5 + $0x3c0] sm:$0xff] }
  0x4c   : > { %258 = vst [vmem:[%s2837_s28 + $0x130] sm:$0xff] %v257_v38  ;;  %v263_v41 = vld [vmem:[%s2832_s5 + $0x3c8] sm:$0xff]  ;;  %260 = vst [vmem:[%s2837_s28 + $0x138] sm:$0xff] %v259_v39  ;;  %v265_v42 = vld [vmem:[%s2832_s5 + $0x3d0] sm:$0xff] }
  0x4d   : > { %262 = vst [vmem:[%s2837_s28 + $0x140] sm:$0xff] %v261_v40  ;;  %264 = vst [vmem:[%s2837_s28 + $0x148] sm:$0xff] %v263_v41  ;;  %v267_v43 = vld [vmem:[%s2832_s5 + $0x3d8] sm:$0xff]  ;;  %v269_v44 = vld [vmem:[%s2832_s5 + $0x420] sm:$0xff] }
  0x4e   : > { %266 = vst [vmem:[%s2837_s28 + $0x150] sm:$0xff] %v265_v42  ;;  %268 = vst [vmem:[%s2837_s28 + $0x158] sm:$0xff] %v267_v43  ;;  %v271_v45 = vld [vmem:[%s2832_s5 + $0x428] sm:$0xff]  ;;  %v273_v46 = vld [vmem:[%s2832_s5 + $0x430] sm:$0xff] }
  0x4f   : > { %270 = vst [vmem:[%s2837_s28 + $0x160] sm:$0xff] %v269_v44  ;;  %v275_v47 = vld [vmem:[%s2832_s5 + $0x438] sm:$0xff]  ;;  %272 = vst [vmem:[%s2837_s28 + $0x168] sm:$0xff] %v271_v45  ;;  %v277_v48 = vld [vmem:[%s2832_s5 + $0x480] sm:$0xff] }
  0x50   : > { %274 = vst [vmem:[%s2837_s28 + $0x170] sm:$0xff] %v273_v46  ;;  %276 = vst [vmem:[%s2837_s28 + $0x178] sm:$0xff] %v275_v47  ;;  %v279_v49 = vld [vmem:[%s2832_s5 + $0x488] sm:$0xff]  ;;  %v281_v50 = vld [vmem:[%s2832_s5 + $0x490] sm:$0xff] }
  0x51   : > { %278 = vst [vmem:[%s2837_s28 + $0x180] sm:$0xff] %v277_v48  ;;  %280 = vst [vmem:[%s2837_s28 + $0x188] sm:$0xff] %v279_v49  ;;  %v283_v51 = vld [vmem:[%s2832_s5 + $0x498] sm:$0xff]  ;;  %v285_v52 = vld [vmem:[%s2832_s5 + $0x4e0] sm:$0xff] }
  0x52   : > { %282 = vst [vmem:[%s2837_s28 + $0x190] sm:$0xff] %v281_v50  ;;  %v287_v53 = vld [vmem:[%s2832_s5 + $0x4e8] sm:$0xff]  ;;  %284 = vst [vmem:[%s2837_s28 + $0x198] sm:$0xff] %v283_v51  ;;  %v289_v54 = vld [vmem:[%s2832_s5 + $0x4f0] sm:$0xff] }
  0x53   : > { %286 = vst [vmem:[%s2837_s28 + $0x1a0] sm:$0xff] %v285_v52  ;;  %288 = vst [vmem:[%s2837_s28 + $0x1a8] sm:$0xff] %v287_v53  ;;  %v291_v55 = vld [vmem:[%s2832_s5 + $0x4f8] sm:$0xff]  ;;  %v293_v56 = vld [vmem:[%s2832_s5 + $0x540] sm:$0xff] }
  0x54   : > { %290 = vst [vmem:[%s2837_s28 + $0x1b0] sm:$0xff] %v289_v54  ;;  %292 = vst [vmem:[%s2837_s28 + $0x1b8] sm:$0xff] %v291_v55  ;;  %v295_v57 = vld [vmem:[%s2832_s5 + $0x548] sm:$0xff]  ;;  %v297_v58 = vld [vmem:[%s2832_s5 + $0x550] sm:$0xff] }
  0x55   : > { %294 = vst [vmem:[%s2837_s28 + $0x1c0] sm:$0xff] %v293_v56  ;;  %v299_v59 = vld [vmem:[%s2832_s5 + $0x558] sm:$0xff]  ;;  %296 = vst [vmem:[%s2837_s28 + $0x1c8] sm:$0xff] %v295_v57  ;;  %v301_v60 = vld [vmem:[%s2832_s5 + $0x5a0] sm:$0xff] }
  0x56   : > { %298 = vst [vmem:[%s2837_s28 + $0x1d0] sm:$0xff] %v297_v58  ;;  %300 = vst [vmem:[%s2837_s28 + $0x1d8] sm:$0xff] %v299_v59  ;;  %v303_v61 = vld [vmem:[%s2832_s5 + $0x5a8] sm:$0xff]  ;;  %v305_v62 = vld [vmem:[%s2832_s5 + $0x5b0] sm:$0xff] }
  0x57   : > { %302 = vst [vmem:[%s2837_s28 + $0x1e0] sm:$0xff] %v301_v60  ;;  %304 = vst [vmem:[%s2837_s28 + $0x1e8] sm:$0xff] %v303_v61  ;;  %v307_v63 = vld [vmem:[%s2832_s5 + $0x5b8] sm:$0xff] }
  0x58   : > { %306 = vst [vmem:[%s2837_s28 + $0x1f0] sm:$0xff] %v305_v62  ;;  %308 = vst [vmem:[%s2837_s28 + $0x1f8] sm:$0xff] %v307_v63 }
  0x59 PF: > { %s315_s29 = sand.u32 1, %s2699_s14   ;;  %s2153_s6 = sshll.u32 %s2707_s16, 13 }
  0x5a   : > { %s1994_s7 = sshll.u32 %s315_s29, 9  ;;  %s2969_s10 = scalar_lea.hbm %s3233_s1, %s2153_s6 }
  0x5b   : > { %s319_s11 = scalar_lea.vmem [#allocation4], %s1994_s7  ;;  %s2973_s18 = scalar_lea.sflag [#allocation5], %s315_s29 }
  0x5c   : > { %s326_s12 = sshll.u32 %s319_s11, 4  ;;  %s2629_s20 = scalar_lea.hbm %s2969_s10, 8192  ;;  %s2971_s12 = int_to_ptr.vmem [resolvable:$true] %s326_s12 }
  0x5d   : > { %p2630_p3 = scmp.ne.s32.totalorder %s2969_s10, %s2629_s20  ;;  %p3247_p5 = scmp.ne.s32.totalorder %s3241_s21, 0 }
  0x5e   : > { %s2633_s30 = scalar_lea.hbm %s3233_s1, 24576  ;;  %p2634_p12 = scmp.lt.u32.totalorder %s2969_s10, %s3233_s1 }
  0x5f   : > { %p2631_p8 = pnand %p2630_p3, %p3247_p5  ;;  %p2635_p0 = scmp.lt.u32.totalorder %s2633_s30, %s2629_s20 }
  0x60   : > { %p2637_p4 = scmp.lt.u32.totalorder %s2629_s20, %s2969_s10 }
  0x61   : > { %p2632_p10 = pneg %p2631_p8  ;;  %p2636_p2 = por %p2635_p0, %p2634_p12 }
  0x63   : > { %p2638_p6 = por %p2637_p4, %p2636_p2 }
  0x65   : > { %p2639_p7 = pnand %p2638_p6, %p2632_p10 }
  0x67   : > { %2642 = shalt.err (!%p2639_p7)
}
  0x68   : > { %s2643_s28 = scalar_lea.vmem %s2971_s12, 8192  ;;  %s2714_s29 = smov [#allocation4]  }
  0x69   : > { %p2644_p9 = scmp.ne.s32.totalorder %s2971_s12, %s2643_s28  ;;  %s2647_s6 = sshll.u32 %s2714_s29, 4  ;;  %s2648_s6 = int_to_ptr.vmem [resolvable:$false] %s2647_s6 }
  0x6a   : > { %s2649_s7 = scalar_lea.vmem %s2648_s6, 16384  ;;  %p2650_p1 = scmp.lt.s32.totalorder %s2971_s12, %s2648_s6 }
  0x6b   : > { %p2645_p11 = pnand %p2644_p9, %p3247_p5  ;;  %p2651_p3 = scmp.lt.s32.totalorder %s2649_s7, %s2643_s28 }
  0x6d   : > { %p2646_p13 = pneg %p2645_p11  ;;  %p2652_p8 = por %p2651_p3, %p2650_p1 }
  0x6f   : > { %p2653_p12 = pnand %p2652_p8, %p2646_p13 }
  0x71   : > { %2656 = shalt.err (!%p2653_p12)
}
  0x72   : > { %s2715_s8 = smov 64   ;;  %s2716_s9 = smov 4  }
  0x73   : > { %2475 = dma.hbm_to_vmem [thread:$0]  (%p3247_p5), %s2969_s10, 8192, %s2971_s12, %s2973_s18, %s2715_s8, %s2715_s8, %s2716_s9  }
  0x74 PF: > { %p3248_p10 = scmp.ne.s32.totalorder %s3244_s26, 0 }
  0x75   : > { %s341_s11 = sand.u32 (!%p3248_p10), 1, %s2695_s13   ;;  %p3249_p0 = scmp.ne.s32.totalorder (!%p3248_p10), %s3243_s24, 0 }
  0x76   : > { %338 = sbr.rel (%p3248_p10) target bundleno = 531 (0x213), region = 51  ;;  %s1998_s20 = sshll.u32 (!%p3248_p10), %s341_s11, 9 }
  0x77   : > { %s3000_s22 = scalar_lea.vmem (!%p3248_p10), [#allocation3], %s1998_s20  ;;  %s348_s27 = scalar_lea.sflag (!%p3248_p10), [#allocation5], %s341_s11 }
  0x78   : > { %s3002_s30 = scalar_lea.vmem (!%p3248_p10), [#allocation4], %s1998_s20 }
  0x7d   : > { %2682 = dma.done.wait (%p3249_p0), %s348_s27, 8192  }
  0x7e   : > { %2684 = vsyncadd (%p3249_p0), %s348_s27, 4294959104  ;;  %p3250_p5 = scmp.ne.s32.totalorder %s3242_s23, 0 }
  0x80   : > { %2686 = dma.done.wait (%p3250_p5), [#allocation7], 16  }
  0x81   : > { %2688 = vsyncadd (%p3250_p5), [#allocation7], 4294967280  ;;  %p2001_p2 = scmp.ne.s32.totalorder %s2703_s15, 0 }
  0x82   : > { %v2717_v0 = vmov (!%p2001_p2), 0.0  }
  0x83   : > { %395 = sbr.rel (%p2001_p2) target bundleno = 139 (0x8b), region = 67  ;;  %396 = vst [vmem:[#allocation2] sm:$0xff] (!%p2001_p2), %v2717_v0  ;;  %397 = vst [vmem:[#allocation2 + $0x8] sm:$0xff] (!%p2001_p2), %v2717_v0 }
  0x84   : > { %398 = vst [vmem:[#allocation2 + $0x10] sm:$0xff] (!%p2001_p2), %v2717_v0  ;;  %399 = vst [vmem:[#allocation2 + $0x18] sm:$0xff] (!%p2001_p2), %v2717_v0 }
  0x85   : > { %400 = vst [vmem:[#allocation2 + $0x20] sm:$0xff] (!%p2001_p2), %v2717_v0  ;;  %401 = vst [vmem:[#allocation2 + $0x28] sm:$0xff] (!%p2001_p2), %v2717_v0 }
  0x86   : > { %402 = vst [vmem:[#allocation2 + $0x30] sm:$0xff] (!%p2001_p2), %v2717_v0  ;;  %403 = vst [vmem:[#allocation2 + $0x38] sm:$0xff] (!%p2001_p2), %v2717_v0 }
  0x87   : > { %404 = vst [vmem:[#allocation2 + $0x40] sm:$0xff] (!%p2001_p2), %v2717_v0  ;;  %405 = vst [vmem:[#allocation2 + $0x48] sm:$0xff] (!%p2001_p2), %v2717_v0 }
  0x88   : > { %406 = vst [vmem:[#allocation2 + $0x50] sm:$0xff] (!%p2001_p2), %v2717_v0  ;;  %407 = vst [vmem:[#allocation2 + $0x58] sm:$0xff] (!%p2001_p2), %v2717_v0 }
  0x89   : > { %408 = vst [vmem:[#allocation2 + $0x60] sm:$0xff] (!%p2001_p2), %v2717_v0  ;;  %409 = vst [vmem:[#allocation2 + $0x68] sm:$0xff] (!%p2001_p2), %v2717_v0 }
  0x8a   : > { %410 = vst [vmem:[#allocation2 + $0x70] sm:$0xff] %v2717_v0  ;;  %411 = vst [vmem:[#allocation2 + $0x78] sm:$0xff] %v2717_v0 }
  0x8b PF: > { %v2537_v1 = vld [vmem:[%s3002_s30 + $0x40] sm:$0xff]   ;;  %v2541_v5 = vld [vmem:[%s3002_s30 + $0x48] sm:$0xff]   ;;  %v2545_v9 = vld [vmem:[%s3002_s30 + $0x50] sm:$0xff]   ;;  %p2130_p4 = scmp.ne.s32.totalorder %s2703_s15, 2 }
  0x8c   : > { %v2538_v2 = vld [vmem:[%s3002_s30 + $0xc0] sm:$0xff]   ;;  %2217 = vmatprep.subr.bf16.mxu0 %v2537_v1  ;;  %v2542_v6 = vld [vmem:[%s3002_s30 + $0xc8] sm:$0xff]   ;;  %v2546_v10 = vld [vmem:[%s3002_s30 + $0xd0] sm:$0xff]  }
  0x8d   : > { %v2539_v3 = vld [vmem:[%s3002_s30] sm:$0xff]   ;;  %2281 = vmatprep.subr.bf16.mxu1 %v2538_v2  ;;  %v2543_v7 = vld [vmem:[%s3002_s30 + $0x8] sm:$0xff]   ;;  %v2547_v11 = vld [vmem:[%s3002_s30 + $0x10] sm:$0xff]  }
  0x8e   : > { %v2540_v4 = vld [vmem:[%s3002_s30 + $0x80] sm:$0xff]   ;;  %2218 = vmatpush3.bf16.msra.mxu0 %v2539_v3  ;;  %v2544_v8 = vld [vmem:[%s3002_s30 + $0x88] sm:$0xff]   ;;  %v2548_v12 = vld [vmem:[%s3002_s30 + $0x90] sm:$0xff]  }
  0x8f   : > { %2282 = vmatpush3.bf16.msra.mxu1 %v2540_v4  ;;  %2219 = vmatprep.subr.bf16.mxu0 %v2541_v5  ;;  %v2549_v13 = vld [vmem:[%s3002_s30 + $0x58] sm:$0xff]   ;;  %v2553_v17 = vld [vmem:[%s3002_s30 + $0x60] sm:$0xff]   ;;  %v2557_v21 = vld [vmem:[%s3002_s30 + $0x68] sm:$0xff]  }
  0x90   : > { %2283 = vmatprep.subr.bf16.mxu1 %v2542_v6  ;;  %v2550_v14 = vld [vmem:[%s3002_s30 + $0xd8] sm:$0xff]   ;;  %v2554_v18 = vld [vmem:[%s3002_s30 + $0xe0] sm:$0xff]   ;;  %v2558_v22 = vld [vmem:[%s3002_s30 + $0xe8] sm:$0xff]  }
  0x91   : > { %v2551_v15 = vld [vmem:[%s3002_s30 + $0x18] sm:$0xff]   ;;  %v2555_v19 = vld [vmem:[%s3002_s30 + $0x20] sm:$0xff]   ;;  %v2559_v23 = vld [vmem:[%s3002_s30 + $0x28] sm:$0xff]  }
  0x92   : > { %2220 = vmatpush3.bf16.msra.mxu0 %v2543_v7  ;;  %v2552_v16 = vld [vmem:[%s3002_s30 + $0x98] sm:$0xff]   ;;  %v2556_v20 = vld [vmem:[%s3002_s30 + $0xa0] sm:$0xff]   ;;  %v2560_v24 = vld [vmem:[%s3002_s30 + $0xa8] sm:$0xff]  }
  0x93   : > { %2284 = vmatpush3.bf16.msra.mxu1 %v2544_v8  ;;  %2221 = vmatprep.subr.bf16.mxu0 %v2545_v9  ;;  %v2561_v25 = vld [vmem:[%s3002_s30 + $0x70] sm:$0xff]   ;;  %v2565_v29 = vld [vmem:[%s3002_s30 + $0x78] sm:$0xff]   ;;  %v428_v33 = vld [vmem:[%s3000_s22] sm:$0xff] }
  0x94   : > { %2285 = vmatprep.subr.bf16.mxu1 %v2546_v10  ;;  %v2562_v26 = vld [vmem:[%s3002_s30 + $0xf0] sm:$0xff]   ;;  %v2566_v30 = vld [vmem:[%s3002_s30 + $0xf8] sm:$0xff]   ;;  %v432_v34 = vld [vmem:[%s3000_s22 + $0x20] sm:$0xff] }
  0x95   : > { %v2563_v27 = vld [vmem:[%s3002_s30 + $0x30] sm:$0xff]   ;;  %v2567_v31 = vld [vmem:[%s3002_s30 + $0x38] sm:$0xff]   ;;  %v429_v35 = vld [vmem:[%s3000_s22 + $0x8] sm:$0xff]  ;;  %v2002_v36 = vcombine.low %v428_v33, %v432_v34  ;;  %v2003_v37 = vcombine.high %v428_v33, %v432_v34 }
  0x96   : > { %2222 = vmatpush3.bf16.msra.mxu0 %v2547_v11  ;;  %v2564_v28 = vld [vmem:[%s3002_s30 + $0xb0] sm:$0xff]   ;;  %v2568_v32 = vld [vmem:[%s3002_s30 + $0xb8] sm:$0xff]   ;;  %v433_v38 = vld [vmem:[%s3000_s22 + $0x28] sm:$0xff] }
  0x97   : > { %2286 = vmatpush3.bf16.msra.mxu1 %v2548_v12  ;;  %2223 = vmatprep.subr.bf16.mxu0 %v2549_v13  ;;  %v2004_v39 = vcombine.low %v429_v35, %v433_v38  ;;  %v2005_v40 = vcombine.high %v429_v35, %v433_v38  ;;  %v2569_v41 = vld [vmem:[%s3002_s30 + $0x140] sm:$0xff]   ;;  %v437_v48 = vld [vmem:[%s3000_s22 + $0x48] sm:$0xff]  ;;  %v2577_v63 = vld [vmem:[%s3002_s30 + $0x150] sm:$0xff]  }
  0x98   : > { %2287 = vmatprep.subr.bf16.mxu1 %v2550_v14  ;;  %1356 = vmatprep.mubr.bf16.mxu0 %v2003_v37  ;;  %v2570_v42 = vld [vmem:[%s3002_s30 + $0x100] sm:$0xff]   ;;  %v441_v49 = vld [vmem:[%s3000_s22 + $0x68] sm:$0xff]  ;;  %v2578_v0 = vld [vmem:[%s3002_s30 + $0x110] sm:$0xff]  }
  0x99   : > { %1453 = vmatprep.mubr.bf16.mxu1 %v2005_v40  ;;  %v2571_v43 = vld [vmem:[%s3002_s30 + $0x1c0] sm:$0xff]   ;;  %v2013_v50 = vcombine.high %v437_v48, %v441_v49  ;;  %v2573_v51 = vld [vmem:[%s3002_s30 + $0x148] sm:$0xff]   ;;  %v2012_v54 = vcombine.low %v437_v48, %v441_v49  ;;  %v2579_v1 = vld [vmem:[%s3002_s30 + $0x1d0] sm:$0xff]  }
  0x9a   : > { %2224 = vmatpush3.bf16.msra.mxu0 %v2551_v15  ;;  %v2572_v44 = vld [vmem:[%s3002_s30 + $0x180] sm:$0xff]   ;;  %v2574_v53 = vld [vmem:[%s3002_s30 + $0x108] sm:$0xff]   ;;  %v2580_v2 = vld [vmem:[%s3002_s30 + $0x190] sm:$0xff]  }
  0x9b   : > { %2288 = vmatpush3.bf16.msra.mxu1 %v2552_v16  ;;  %2225 = vmatprep.subr.bf16.mxu0 %v2553_v17  ;;  %v436_v45 = vld [vmem:[%s3000_s22 + $0x40] sm:$0xff]  ;;  %v2575_v55 = vld [vmem:[%s3002_s30 + $0x1c8] sm:$0xff]   ;;  %v2581_v11 = vld [vmem:[%s3002_s30 + $0x158] sm:$0xff]  }
  0x9c   : > { %2289 = vmatprep.subr.bf16.mxu1 %v2554_v18  ;;  %v440_v46 = vld [vmem:[%s3000_s22 + $0x60] sm:$0xff]  ;;  %v2576_v56 = vld [vmem:[%s3002_s30 + $0x188] sm:$0xff]   ;;  %v2582_v12 = vld [vmem:[%s3002_s30 + $0x118] sm:$0xff]  }
  0x9d   : > { %v2011_v47 = vcombine.high %v436_v45, %v440_v46  ;;  %v2010_v52 = vcombine.low %v436_v45, %v440_v46  ;;  %v444_v57 = vld [vmem:[%s3000_s22 + $0x80] sm:$0xff]  ;;  %v445_v59 = vld [vmem:[%s3000_s22 + $0x88] sm:$0xff]  ;;  %v2583_v13 = vld [vmem:[%s3002_s30 + $0x1d8] sm:$0xff]  }
  0x9e   : > { %2226 = vmatpush3.bf16.msra.mxu0 %v2555_v19  ;;  %v448_v58 = vld [vmem:[%s3000_s22 + $0xa0] sm:$0xff]  ;;  %v449_v60 = vld [vmem:[%s3000_s22 + $0xa8] sm:$0xff]  ;;  %v2584_v14 = vld [vmem:[%s3002_s30 + $0x198] sm:$0xff]  }
  0x9f   : > { %2290 = vmatpush3.bf16.msra.mxu1 %v2556_v20  ;;  %2227 = vmatprep.subr.bf16.mxu0 %v2557_v21  ;;  %v2019_v61 = vcombine.high %v444_v57, %v448_v58  ;;  %v2021_v62 = vcombine.high %v445_v59, %v449_v60  ;;  %v2018_v3 = vcombine.low %v444_v57, %v448_v58  ;;  %v452_v4 = vld [vmem:[%s3000_s22 + $0xc0] sm:$0xff]  ;;  %v453_v6 = vld [vmem:[%s3000_s22 + $0xc8] sm:$0xff]  ;;  %v2594_v40 = vld [vmem:[%s3002_s30 + $0x130] sm:$0xff]  }
  0xa0   : > { %2291 = vmatprep.subr.bf16.mxu1 %v2558_v22  ;;  %v456_v5 = vld [vmem:[%s3000_s22 + $0xe0] sm:$0xff]  ;;  %v2020_v7 = vcombine.low %v445_v59, %v449_v60  ;;  %v457_v9 = vld [vmem:[%s3000_s22 + $0xe8] sm:$0xff]  ;;  %v2598_v49 = vld [vmem:[%s3002_s30 + $0x138] sm:$0xff]  }
  0xa1   : > { %v2027_v8 = vcombine.high %v452_v4, %v456_v5  ;;  %v2029_v10 = vcombine.high %v453_v6, %v457_v9  ;;  %v460_v15 = vld [vmem:[%s3000_s22 + $0x100] sm:$0xff]  ;;  %v461_v17 = vld [vmem:[%s3000_s22 + $0x108] sm:$0xff]  ;;  %v2026_v20 = vcombine.low %v452_v4, %v456_v5  ;;  %v2028_v22 = vcombine.low %v453_v6, %v457_v9  ;;  %v439_v9 = vld [vmem:[%s3000_s22 + $0x58] sm:$0xff] }
  0xa2   : > { %2228 = vmatpush3.bf16.msra.mxu0 %v2559_v23  ;;  %v464_v16 = vld [vmem:[%s3000_s22 + $0x120] sm:$0xff]  ;;  %v465_v18 = vld [vmem:[%s3000_s22 + $0x128] sm:$0xff] }
  0xa3   : > { %2292 = vmatpush3.bf16.msra.mxu1 %v2560_v24  ;;  %2229 = vmatprep.subr.bf16.mxu0 %v2561_v25  ;;  %v2585_v19 = vld [vmem:[%s3002_s30 + $0x160] sm:$0xff]   ;;  %v2035_v23 = vcombine.high %v460_v15, %v464_v16  ;;  %v2037_v25 = vcombine.high %v461_v17, %v465_v18  ;;  %v2591_v33 = vld [vmem:[%s3002_s30 + $0x1e8] sm:$0xff]   ;;  %v2034_v35 = vcombine.low %v460_v15, %v464_v16  ;;  %v446_v15 = vld [vmem:[%s3000_s22 + $0x90] sm:$0xff] }
  0xa4   : > { %2293 = vmatprep.subr.bf16.mxu1 %v2562_v26  ;;  %v2586_v21 = vld [vmem:[%s3002_s30 + $0x120] sm:$0xff]   ;;  %v2592_v34 = vld [vmem:[%s3002_s30 + $0x1a8] sm:$0xff]   ;;  %v450_v16 = vld [vmem:[%s3000_s22 + $0xb0] sm:$0xff] }
  0xa5   : > { %v2587_v24 = vld [vmem:[%s3002_s30 + $0x1e0] sm:$0xff]   ;;  %v477_v45 = vld [vmem:[%s3000_s22 + $0x188] sm:$0xff] }
  0xa6   : > { %2230 = vmatpush3.bf16.msra.mxu0 %v2563_v27  ;;  %v2588_v26 = vld [vmem:[%s3002_s30 + $0x1a0] sm:$0xff]   ;;  %v481_v46 = vld [vmem:[%s3000_s22 + $0x1a8] sm:$0xff] }
  0xa7   : > { %2294 = vmatpush3.bf16.msra.mxu1 %v2564_v28  ;;  %2231 = vmatprep.subr.bf16.mxu0 %v2565_v29  ;;  %v468_v27 = vld [vmem:[%s3000_s22 + $0x140] sm:$0xff]  ;;  %v2589_v29 = vld [vmem:[%s3002_s30 + $0x168] sm:$0xff]   ;;  %v2052_v60 = vcombine.low %v477_v45, %v481_v46 }
  0xa8   : > { %2295 = vmatprep.subr.bf16.mxu1 %v2566_v30  ;;  %v472_v28 = vld [vmem:[%s3000_s22 + $0x160] sm:$0xff]  ;;  %v469_v30 = vld [vmem:[%s3000_s22 + $0x148] sm:$0xff] }
  0xa9   : > { %v2043_v37 = vcombine.high %v468_v27, %v472_v28  ;;  %v2042_v48 = vcombine.low %v468_v27, %v472_v28  ;;  %v485_v57 = vld [vmem:[%s3000_s22 + $0x1c8] sm:$0xff]  ;;  %v2022_v27 = vcombine.low %v446_v15, %v450_v16 }
  0xaa   : > { %2232 = vmatpush3.bf16.msra.mxu0 %v2567_v31  ;;  %v473_v31 = vld [vmem:[%s3000_s22 + $0x168] sm:$0xff] }
  0xab   : > { %2296 = vmatpush3.bf16.msra.mxu1 %v2568_v32  ;;  %2345 = vmatprep.subr.bf16.mxu0 %v2569_v41  ;;  %v2590_v32 = vld [vmem:[%s3002_s30 + $0x128] sm:$0xff]   ;;  %v2045_v38 = vcombine.high %v469_v30, %v473_v31  ;;  %v2595_v41 = vld [vmem:[%s3002_s30 + $0x1f0] sm:$0xff]  }
  0xac   : > { %2409 = vmatprep.subr.bf16.mxu1 %v2571_v43  ;;  %v480_v43 = vld [vmem:[%s3000_s22 + $0x1a0] sm:$0xff]  ;;  %v489_v58 = vld [vmem:[%s3000_s22 + $0x1e8] sm:$0xff] }
  0xad   : > { %1357 = vmatmul.mubr.bf16.vlgmr.msra.gmra.mrb[0].mxu0 %v2002_v36  ;;  %v2036_v36 = vcombine.low %v461_v17, %v465_v18  ;;  %v2060_v4 = vcombine.low %v485_v57, %v489_v58  ;;  %v447_v17 = vld [vmem:[%s3000_s22 + $0x98] sm:$0xff] }
  0xae   : > { %1454 = vmatmul.mubr.bf16.vlgmr.msra.gmra.mrb[0].mxu1 %v2004_v39  ;;  %2346 = vmatpush3.bf16.msra.mxu0 %v2570_v42  ;;  %v2593_v39 = vld [vmem:[%s3002_s30 + $0x170] sm:$0xff]   ;;  %v476_v42 = vld [vmem:[%s3000_s22 + $0x180] sm:$0xff]  ;;  %v451_v18 = vld [vmem:[%s3000_s22 + $0xb8] sm:$0xff] }
  0xaf   : > { %2410 = vmatpush3.bf16.msra.mxu1 %v2572_v44  ;;  %1364 = vmatprep.mubr.bf16.mxu0 %v2011_v47  ;;  %v2596_v44 = vld [vmem:[%s3002_s30 + $0x1b0] sm:$0xff]   ;;  %v2597_v47 = vld [vmem:[%s3002_s30 + $0x178] sm:$0xff]   ;;  %v2050_v59 = vcombine.low %v476_v42, %v480_v43  ;;  %v2024_v28 = vcombine.low %v447_v17, %v451_v18 }
  0xb0   : > { %1461 = vmatprep.mubr.bf16.mxu1 %v2013_v50  ;;  %2347 = vmatprep.subr.bf16.mxu0 %v2573_v51  ;;  %v2044_v50 = vcombine.low %v469_v30, %v473_v31  ;;  %v2051_v51 = vcombine.high %v476_v42, %v480_v43  ;;  %v462_v31 = vld [vmem:[%s3000_s22 + $0x110] sm:$0xff]  ;;  %v475_v42 = vld [vmem:[%s3000_s22 + $0x178] sm:$0xff] }
  0xb1   : > { %2411 = vmatprep.subr.bf16.mxu1 %v2575_v55  ;;  %v484_v55 = vld [vmem:[%s3000_s22 + $0x1c0] sm:$0xff] }
  0xb2   : > { %2348 = vmatpush3.bf16.msra.mxu0 %v2574_v53  ;;  %v2053_v53 = vcombine.high %v477_v45, %v481_v46 }
  0xb3   : > { %2412 = vmatpush3.bf16.msra.mxu1 %v2576_v56  ;;  %2349 = vmatprep.subr.bf16.mxu0 %v2577_v63  ;;  %v488_v56 = vld [vmem:[%s3000_s22 + $0x1e0] sm:$0xff]  ;;  %v430_v63 = vld [vmem:[%s3000_s22 + $0x10] sm:$0xff] }
  0xb4   : > { %2413 = vmatprep.subr.bf16.mxu1 %v2579_v1  ;;  %v431_v1 = vld [vmem:[%s3000_s22 + $0x18] sm:$0xff] }
  0xb5   : > { %1365 = vmatmul.mubr.bf16.gmra.mrb[4].mxu0 %v2010_v52  ;;  %v2599_v52 = vld [vmem:[%s3002_s30 + $0x1f8] sm:$0xff]  }
  0xb6   : > { %1462 = vmatmul.mubr.bf16.gmra.mrb[4].mxu1 %v2012_v54  ;;  %1372 = vmatprep.mubr.bf16.mxu0 %v2019_v61  ;;  %v2600_v54 = vld [vmem:[%s3002_s30 + $0x1b8] sm:$0xff]   ;;  %v2059_v61 = vcombine.high %v484_v55, %v488_v56 }
  0xb7   : > { %1469 = vmatprep.mubr.bf16.mxu1 %v2021_v62  ;;  %2350 = vmatpush3.bf16.msra.mxu0 %v2578_v0  ;;  %v2061_v62 = vcombine.high %v485_v57, %v489_v58  ;;  %v434_v0 = vld [vmem:[%s3000_s22 + $0x30] sm:$0xff]  ;;  %v487_v57 = vld [vmem:[%s3000_s22 + $0x1d8] sm:$0xff] }
  0xb8   : > { %2414 = vmatpush3.bf16.msra.mxu1 %v2580_v2  ;;  %2351 = vmatprep.subr.bf16.mxu0 %v2581_v11  ;;  %v435_v2 = vld [vmem:[%s3000_s22 + $0x38] sm:$0xff]  ;;  %v2007_v5 = vcombine.high %v430_v63, %v434_v0  ;;  %v2006_v11 = vcombine.low %v430_v63, %v434_v0 }
  0xb9   : > { %2415 = vmatprep.subr.bf16.mxu1 %v2583_v13  ;;  %v2009_v6 = vcombine.high %v431_v1, %v435_v2  ;;  %v491_v58 = vld [vmem:[%s3000_s22 + $0x1f8] sm:$0xff] }
  0xba   : > { %v2064_v0 = vcombine.low %v487_v57, %v491_v58 }
  0xbb   : > { %2352 = vmatpush3.bf16.msra.mxu0 %v2582_v12  ;;  %v2008_v12 = vcombine.low %v431_v1, %v435_v2 }
  0xbc   : > { %2416 = vmatpush3.bf16.msra.mxu1 %v2584_v14  ;;  %2353 = vmatprep.subr.bf16.mxu0 %v2585_v19 }
  0xbd   : > { %1373 = vmatmul.mubr.bf16.gmra.mrb[8].mxu0 %v2018_v3  ;;  %2417 = vmatprep.subr.bf16.mxu1 %v2587_v24  ;;  %v2058_v3 = vcombine.low %v484_v55, %v488_v56  ;;  %v458_v24 = vld [vmem:[%s3000_s22 + $0xf0] sm:$0xff] }
  0xbe   : > { %1470 = vmatmul.mubr.bf16.gmra.mrb[8].mxu1 %v2020_v7  ;;  %1380 = vmatprep.mubr.bf16.mxu0 %v2027_v8  ;;  %v438_v7 = vld [vmem:[%s3000_s22 + $0x50] sm:$0xff] }
  0xbf   : > { %1477 = vmatprep.mubr.bf16.mxu1 %v2029_v10  ;;  %2354 = vmatpush3.bf16.msra.mxu0 %v2586_v21  ;;  %v442_v8 = vld [vmem:[%s3000_s22 + $0x70] sm:$0xff]  ;;  %v443_v10 = vld [vmem:[%s3000_s22 + $0x78] sm:$0xff]  ;;  %v2023_v21 = vcombine.high %v446_v15, %v450_v16 }
  0xc0   : > { %2418 = vmatpush3.bf16.msra.mxu1 %v2588_v26  ;;  %2355 = vmatprep.subr.bf16.mxu0 %v2589_v29  ;;  %v2015_v13 = vcombine.high %v438_v7, %v442_v8  ;;  %v2017_v14 = vcombine.high %v439_v9, %v443_v10  ;;  %v2014_v19 = vcombine.low %v438_v7, %v442_v8  ;;  %v459_v26 = vld [vmem:[%s3000_s22 + $0xf8] sm:$0xff]  ;;  %v486_v55 = vld [vmem:[%s3000_s22 + $0x1d0] sm:$0xff] }
  0xc1   : > { %2419 = vmatprep.subr.bf16.mxu1 %v2591_v33  ;;  %v463_v33 = vld [vmem:[%s3000_s22 + $0x118] sm:$0xff]  ;;  %v490_v56 = vld [vmem:[%s3000_s22 + $0x1f0] sm:$0xff] }
  0xc2   : > { %v2062_v63 = vcombine.low %v486_v55, %v490_v56 }
  0xc3   : > { %2356 = vmatpush3.bf16.msra.mxu0 %v2590_v32  ;;  %v466_v32 = vld [vmem:[%s3000_s22 + $0x130] sm:$0xff] }
  0xc4   : > { %2420 = vmatpush3.bf16.msra.mxu1 %v2592_v34  ;;  %2357 = vmatprep.subr.bf16.mxu0 %v2593_v39  ;;  %v467_v34 = vld [vmem:[%s3000_s22 + $0x138] sm:$0xff]  ;;  %v470_v39 = vld [vmem:[%s3000_s22 + $0x150] sm:$0xff]  ;;  %v2038_v43 = vcombine.low %v462_v31, %v466_v32 }
  0xc5   : > { %1381 = vmatmul.mubr.bf16.gmra.mrb[12].mxu0 %v2026_v20  ;;  %2421 = vmatprep.subr.bf16.mxu1 %v2595_v41  ;;  %v2016_v20 = vcombine.low %v439_v9, %v443_v10  ;;  %v471_v41 = vld [vmem:[%s3000_s22 + $0x158] sm:$0xff] }
  0xc6   : > { %1478 = vmatmul.mubr.bf16.gmra.mrb[12].mxu1 %v2028_v22  ;;  %1388 = vmatprep.mubr.bf16.mxu0 %v2035_v23  ;;  %v2025_v22 = vcombine.high %v447_v17, %v451_v18  ;;  %v454_v23 = vld [vmem:[%s3000_s22 + $0xd0] sm:$0xff]  ;;  %v2049_v46 = vcombine.high %v471_v41, %v475_v42 }
  0xc7   : > { %1485 = vmatprep.mubr.bf16.mxu1 %v2037_v25  ;;  %2358 = vmatpush3.bf16.msra.mxu0 %v2594_v40  ;;  %v455_v25 = vld [vmem:[%s3000_s22 + $0xd8] sm:$0xff]  ;;  %v2031_v29 = vcombine.high %v454_v23, %v458_v24  ;;  %v474_v40 = vld [vmem:[%s3000_s22 + $0x170] sm:$0xff] }
  0xc8   : > { %2422 = vmatpush3.bf16.msra.mxu1 %v2596_v44  ;;  %2359 = vmatprep.subr.bf16.mxu0 %v2597_v47  ;;  %v2033_v30 = vcombine.high %v455_v25, %v459_v26  ;;  %v2040_v44 = vcombine.low %v463_v33, %v467_v34  ;;  %v2047_v45 = vcombine.high %v470_v39, %v474_v40  ;;  %v478_v47 = vld [vmem:[%s3000_s22 + $0x190] sm:$0xff] }
  0xc9   : > { %2423 = vmatprep.subr.bf16.mxu1 %v2599_v52  ;;  %v2048_v52 = vcombine.low %v471_v41, %v475_v42 }
  0xcb   : > { %2360 = vmatpush3.bf16.msra.mxu0 %v2598_v49  ;;  %v479_v49 = vld [vmem:[%s3000_s22 + $0x198] sm:$0xff] }
  0xcc   : > { %2424 = vmatpush3.bf16.msra.mxu1 %v2600_v54 }
  0xcd   : > { %1389 = vmatmul.mubr.bf16.gmra.mrb[16].mxu0 %v2034_v35  ;;  %v2030_v35 = vcombine.low %v454_v23, %v458_v24 }
  0xce   : > { %1486 = vmatmul.mubr.bf16.gmra.mrb[16].mxu1 %v2036_v36  ;;  %1396 = vmatprep.mubr.bf16.mxu0 %v2043_v37  ;;  %v2032_v36 = vcombine.low %v455_v25, %v459_v26  ;;  %v2039_v37 = vcombine.high %v462_v31, %v466_v32 }
  0xcf   : > { %1493 = vmatprep.mubr.bf16.mxu1 %v2045_v38  ;;  %v2041_v38 = vcombine.high %v463_v33, %v467_v34 }
  0xd5   : > { %1397 = vmatmul.mubr.bf16.gmra.mrb[20].mxu0 %v2042_v48  ;;  %v482_v48 = vld [vmem:[%s3000_s22 + $0x1b0] sm:$0xff] }
  0xd6   : > { %1494 = vmatmul.mubr.bf16.gmra.mrb[20].mxu1 %v2044_v50  ;;  %1404 = vmatprep.mubr.bf16.mxu0 %v2051_v51  ;;  %v483_v50 = vld [vmem:[%s3000_s22 + $0x1b8] sm:$0xff]  ;;  %v2046_v51 = vcombine.low %v470_v39, %v474_v40 }
  0xd7   : > { %1501 = vmatprep.mubr.bf16.mxu1 %v2053_v53  ;;  %v2055_v53 = vcombine.high %v478_v47, %v482_v48  ;;  %v2057_v54 = vcombine.high %v479_v49, %v483_v50 }
  0xdd   : > { %1405 = vmatmul.mubr.bf16.gmra.mrb[24].mxu0 %v2050_v59  ;;  %v2054_v59 = vcombine.low %v478_v47, %v482_v48 }
  0xde   : > { %1502 = vmatmul.mubr.bf16.gmra.mrb[24].mxu1 %v2052_v60  ;;  %1412 = vmatprep.mubr.bf16.mxu0 %v2059_v61  ;;  %v2056_v60 = vcombine.low %v479_v49, %v483_v50  ;;  %v2063_v61 = vcombine.high %v486_v55, %v490_v56 }
  0xdf   : > { %1509 = vmatprep.mubr.bf16.mxu1 %v2061_v62  ;;  %v2065_v62 = vcombine.high %v487_v57, %v491_v58 }
  0xe5   : > { %1413 = vmatmul.mubr.bf16.gmra.mrb[28].mxu0 %v2058_v3 }
  0xe6   : > { %1510 = vmatmul.mubr.bf16.gmra.mrb[28].mxu1 %v2060_v4  ;;  %1550 = vmatprep.mubr.bf16.mxu0 %v2007_v5 }
  0xe7   : > { %1647 = vmatprep.mubr.bf16.mxu1 %v2009_v6 }
  0xed   : > { %1551 = vmatmul.mubr.bf16.vlgmr.msra.gmra.mrb[32].mxu0 %v2006_v11 }
  0xee   : > { %1648 = vmatmul.mubr.bf16.vlgmr.msra.gmra.mrb[32].mxu1 %v2008_v12  ;;  %1558 = vmatprep.mubr.bf16.mxu0 %v2015_v13 }
  0xef   : > { %1655 = vmatprep.mubr.bf16.mxu1 %v2017_v14 }
  0xf5   : > { %1559 = vmatmul.mubr.bf16.gmra.mrb[36].mxu0 %v2014_v19 }
  0xf6   : > { %1656 = vmatmul.mubr.bf16.gmra.mrb[36].mxu1 %v2016_v20  ;;  %1566 = vmatprep.mubr.bf16.mxu0 %v2023_v21 }
  0xf7   : > { %1663 = vmatprep.mubr.bf16.mxu1 %v2025_v22 }
  0xfd   : > { %1567 = vmatmul.mubr.bf16.gmra.mrb[40].mxu0 %v2022_v27 }
  0xfe   : > { %1664 = vmatmul.mubr.bf16.gmra.mrb[40].mxu1 %v2024_v28  ;;  %1574 = vmatprep.mubr.bf16.mxu0 %v2031_v29 }
  0xff   : > { %1671 = vmatprep.mubr.bf16.mxu1 %v2033_v30 }
 0x105   : > { %1575 = vmatmul.mubr.bf16.gmra.mrb[44].mxu0 %v2030_v35 }
 0x106   : > { %1672 = vmatmul.mubr.bf16.gmra.mrb[44].mxu1 %v2032_v36  ;;  %1582 = vmatprep.mubr.bf16.mxu0 %v2039_v37 }
 0x107   : > { %1679 = vmatprep.mubr.bf16.mxu1 %v2041_v38 }
 0x10d   : > { %1583 = vmatmul.mubr.bf16.gmra.mrb[48].mxu0 %v2038_v43 }
 0x10e   : > { %1680 = vmatmul.mubr.bf16.gmra.mrb[48].mxu1 %v2040_v44  ;;  %1590 = vmatprep.mubr.bf16.mxu0 %v2047_v45 }
 0x10f   : > { %1687 = vmatprep.mubr.bf16.mxu1 %v2049_v46 }
 0x115   : > { %1591 = vmatmul.mubr.bf16.gmra.mrb[52].mxu0 %v2046_v51 }
 0x116   : > { %1688 = vmatmul.mubr.bf16.gmra.mrb[52].mxu1 %v2048_v52  ;;  %1598 = vmatprep.mubr.bf16.mxu0 %v2055_v53 }
 0x117   : > { %1695 = vmatprep.mubr.bf16.mxu1 %v2057_v54 }
 0x11d   : > { %1599 = vmatmul.mubr.bf16.gmra.mrb[56].mxu0 %v2054_v59 }
 0x11e   : > { %1696 = vmatmul.mubr.bf16.gmra.mrb[56].mxu1 %v2056_v60  ;;  %1606 = vmatprep.mubr.bf16.mxu0 %v2063_v61 }
 0x11f   : > { %1703 = vmatprep.mubr.bf16.mxu1 %v2065_v62 }
 0x125   : > { %1607 = vmatmul.mubr.bf16.gmra.mrb[60].mxu0 %v2062_v63 }
 0x126   : > { %1704 = vmatmul.mubr.bf16.gmra.mrb[60].mxu1 %v2064_v0 }
 0x180   : > { %v2233_v1 = vpop.f32.mrb[0].mxu0 }
 0x181   : > { %v2297_v2 = vpop.f32.mrb[0].mxu1  ;;  %v2234_v3 = vpop.f32.mrb[1].mxu0 }
 0x182   : > { %v2235_v4 = vadd.f32 %v2234_v3, %v2233_v1  ;;  %v2298_v5 = vpop.f32.mrb[1].mxu1  ;;  %v2236_v6 = vpop.f32.mrb[2].mxu0 }
 0x183   : > { %v2299_v7 = vadd.f32 %v2298_v5, %v2297_v2  ;;  %v2300_v8 = vpop.f32.mrb[2].mxu1  ;;  %v2237_v9 = vpop.f32.mrb[3].mxu0 }
 0x184   : > { %v2238_v10 = vadd.f32 %v2237_v9, %v2236_v6  ;;  %v2301_v11 = vpop.f32.mrb[3].mxu1 }
 0x185   : > { %v3141_v12 = vadd.f32 %v2299_v7, %v2235_v4  ;;  %v2302_v13 = vadd.f32 %v2301_v11, %v2300_v8 }
 0x187   : > { %v3143_v14 = vadd.f32 %v2302_v13, %v2238_v10 }
 0x188   : > { %v2239_v15 = vpop.f32.mrb[4].mxu0 }
 0x189   : > { %v2303_v16 = vpop.f32.mrb[4].mxu1  ;;  %v2240_v17 = vpop.f32.mrb[5].mxu0 }
 0x18a   : > { %v2241_v18 = vadd.f32 %v2240_v17, %v2239_v15  ;;  %v2304_v19 = vpop.f32.mrb[5].mxu1  ;;  %v2242_v20 = vpop.f32.mrb[6].mxu0 }
 0x18b   : > { %v2305_v21 = vadd.f32 %v2304_v19, %v2303_v16  ;;  %v2306_v22 = vpop.f32.mrb[6].mxu1  ;;  %v2243_v23 = vpop.f32.mrb[7].mxu0 }
 0x18c   : > { %v2244_v24 = vadd.f32 %v2243_v23, %v2242_v20  ;;  %v2307_v25 = vpop.f32.mrb[7].mxu1 }
 0x18d   : > { %v3145_v26 = vadd.f32 %v2305_v21, %v2241_v18  ;;  %v2308_v27 = vadd.f32 %v2307_v25, %v2306_v22 }
 0x18f   : > { %v3147_v28 = vadd.f32 %v2308_v27, %v2244_v24 }
 0x190   : > { %v2245_v29 = vpop.f32.mrb[8].mxu0 }
 0x191   : > { %v2309_v30 = vpop.f32.mrb[8].mxu1  ;;  %v2246_v31 = vpop.f32.mrb[9].mxu0 }
 0x192   : > { %v2247_v32 = vadd.f32 %v2246_v31, %v2245_v29  ;;  %v2310_v33 = vpop.f32.mrb[9].mxu1  ;;  %v2248_v34 = vpop.f32.mrb[10].mxu0 }
 0x193   : > { %v2311_v35 = vadd.f32 %v2310_v33, %v2309_v30  ;;  %v2312_v36 = vpop.f32.mrb[10].mxu1  ;;  %v2249_v37 = vpop.f32.mrb[11].mxu0 }
 0x194   : > { %v2250_v38 = vadd.f32 %v2249_v37, %v2248_v34  ;;  %v2313_v39 = vpop.f32.mrb[11].mxu1 }
 0x195   : > { %v3149_v40 = vadd.f32 %v2311_v35, %v2247_v32  ;;  %v2314_v41 = vadd.f32 %v2313_v39, %v2312_v36 }
 0x197   : > { %v3151_v42 = vadd.f32 %v2314_v41, %v2250_v38 }
 0x198   : > { %v2251_v43 = vpop.f32.mrb[12].mxu0 }
 0x199   : > { %v2315_v44 = vpop.f32.mrb[12].mxu1  ;;  %v2252_v45 = vpop.f32.mrb[13].mxu0 }
 0x19a   : > { %v2253_v46 = vadd.f32 %v2252_v45, %v2251_v43  ;;  %v2316_v47 = vpop.f32.mrb[13].mxu1  ;;  %v2254_v48 = vpop.f32.mrb[14].mxu0 }
 0x19b   : > { %v2317_v49 = vadd.f32 %v2316_v47, %v2315_v44  ;;  %v2318_v50 = vpop.f32.mrb[14].mxu1  ;;  %v2255_v51 = vpop.f32.mrb[15].mxu0 }
 0x19c   : > { %v2256_v52 = vadd.f32 %v2255_v51, %v2254_v48  ;;  %v2319_v53 = vpop.f32.mrb[15].mxu1 }
 0x19d   : > { %v3153_v54 = vadd.f32 %v2317_v49, %v2253_v46  ;;  %v2320_v55 = vadd.f32 %v2319_v53, %v2318_v50 }
 0x19f   : > { %v3155_v56 = vadd.f32 %v2320_v55, %v2256_v52 }
 0x1a0   : > { %v2257_v57 = vpop.f32.mrb[16].mxu0 }
 0x1a1   : > { %v2321_v58 = vpop.f32.mrb[16].mxu1  ;;  %v2258_v59 = vpop.f32.mrb[17].mxu0 }
 0x1a2   : > { %v2259_v60 = vadd.f32 %v2258_v59, %v2257_v57  ;;  %v2322_v61 = vpop.f32.mrb[17].mxu1  ;;  %v2260_v62 = vpop.f32.mrb[18].mxu0 }
 0x1a3   : > { %v2323_v63 = vadd.f32 %v2322_v61, %v2321_v58  ;;  %v2324_v0 = vpop.f32.mrb[18].mxu1  ;;  %v2261_v1 = vpop.f32.mrb[19].mxu0 }
 0x1a4   : > { %v2262_v2 = vadd.f32 %v2261_v1, %v2260_v62  ;;  %v2325_v3 = vpop.f32.mrb[19].mxu1 }
 0x1a5   : > { %v3157_v4 = vadd.f32 %v2323_v63, %v2259_v60  ;;  %v2326_v5 = vadd.f32 %v2325_v3, %v2324_v0 }
 0x1a7   : > { %v3159_v6 = vadd.f32 %v2326_v5, %v2262_v2 }
 0x1a8   : > { %v2263_v7 = vpop.f32.mrb[20].mxu0 }
 0x1a9   : > { %v2327_v8 = vpop.f32.mrb[20].mxu1  ;;  %v2264_v9 = vpop.f32.mrb[21].mxu0 }
 0x1aa   : > { %v2265_v10 = vadd.f32 %v2264_v9, %v2263_v7  ;;  %v2328_v11 = vpop.f32.mrb[21].mxu1  ;;  %v2266_v13 = vpop.f32.mrb[22].mxu0  ;;  %v412_v7 = vld [vmem:[#allocation2] sm:$0xff] }
 0x1ab   : > { %v2329_v15 = vadd.f32 %v2328_v11, %v2327_v8  ;;  %v2330_v16 = vpop.f32.mrb[22].mxu1  ;;  %v2267_v17 = vpop.f32.mrb[23].mxu0  ;;  %v413_v11 = vld [vmem:[#allocation2 + $0x8] sm:$0xff] }
 0x1ac   : > { %v2268_v18 = vadd.f32 %v2267_v17, %v2266_v13  ;;  %v2331_v19 = vpop.f32.mrb[23].mxu1 }
 0x1ad   : > { %v3161_v20 = vadd.f32 %v2329_v15, %v2265_v10  ;;  %v2332_v21 = vadd.f32 %v2331_v19, %v2330_v16 }
 0x1af   : > { %v3163_v22 = vadd.f32 %v2332_v21, %v2268_v18 }
 0x1b0   : > { %v2269_v23 = vpop.f32.mrb[24].mxu0 }
 0x1b1   : > { %v2333_v24 = vpop.f32.mrb[24].mxu1  ;;  %v2270_v25 = vpop.f32.mrb[25].mxu0 }
 0x1b2   : > { %v2271_v27 = vadd.f32 %v2270_v25, %v2269_v23  ;;  %v2334_v29 = vpop.f32.mrb[25].mxu1  ;;  %v2272_v30 = vpop.f32.mrb[26].mxu0 }
 0x1b3   : > { %v2335_v31 = vadd.f32 %v2334_v29, %v2333_v24  ;;  %v2336_v32 = vpop.f32.mrb[26].mxu1  ;;  %v2273_v33 = vpop.f32.mrb[27].mxu0 }
 0x1b4   : > { %v2274_v34 = vadd.f32 %v2273_v33, %v2272_v30  ;;  %v2337_v35 = vpop.f32.mrb[27].mxu1 }
 0x1b5   : > { %v3165_v36 = vadd.f32 %v2335_v31, %v2271_v27  ;;  %v2338_v37 = vadd.f32 %v2337_v35, %v2336_v32  ;;  %v415_v35 = vld [vmem:[#allocation2 + $0x18] sm:$0xff] }
 0x1b7   : > { %v3167_v38 = vadd.f32 %v2338_v37, %v2274_v34 }
 0x1b8   : > { %v2275_v39 = vpop.f32.mrb[28].mxu0 }
 0x1b9   : > { %v2339_v41 = vpop.f32.mrb[28].mxu1  ;;  %v2276_v43 = vpop.f32.mrb[29].mxu0 }
 0x1ba   : > { %v2277_v44 = vadd.f32 %v2276_v43, %v2275_v39  ;;  %v2340_v45 = vpop.f32.mrb[29].mxu1  ;;  %v2278_v46 = vpop.f32.mrb[30].mxu0 }
 0x1bb   : > { %v2341_v47 = vadd.f32 %v2340_v45, %v2339_v41  ;;  %v2342_v48 = vpop.f32.mrb[30].mxu1  ;;  %v2279_v49 = vpop.f32.mrb[31].mxu0 }
 0x1bc   : > { %v2280_v50 = vadd.f32 %v2279_v49, %v2278_v46  ;;  %v2343_v51 = vpop.f32.mrb[31].mxu1 }
 0x1bd   : > { %v3169_v52 = vadd.f32 %v2341_v47, %v2277_v44  ;;  %v2344_v53 = vadd.f32 %v2343_v51, %v2342_v48 }
 0x1bf   : > { %v3171_v55 = vadd.f32 %v2344_v53, %v2280_v50 }
 0x1c0   : > { %v2361_v57 = vpop.f32.mrb[32].mxu0 }
 0x1c1   : > { %v2425_v58 = vpop.f32.mrb[32].mxu1  ;;  %v2362_v59 = vpop.f32.mrb[33].mxu0 }
 0x1c2   : > { %v2363_v60 = vadd.f32 %v2362_v59, %v2361_v57  ;;  %v2426_v61 = vpop.f32.mrb[33].mxu1  ;;  %v2364_v62 = vpop.f32.mrb[34].mxu0 }
 0x1c3   : > { %v2427_v63 = vadd.f32 %v2426_v61, %v2425_v58  ;;  %v2428_v0 = vpop.f32.mrb[34].mxu1  ;;  %v2365_v1 = vpop.f32.mrb[35].mxu0  ;;  %v417_v61 = vld [vmem:[#allocation2 + $0x28] sm:$0xff] }
 0x1c4   : > { %v1553_v2 = vadd.f32 %v2363_v60, %v3141_v12  ;;  %v2366_v3 = vadd.f32 %v2365_v1, %v2364_v62  ;;  %v2429_v5 = vpop.f32.mrb[35].mxu1 }
 0x1c5   : > { %v2430_v8 = vadd.f32 %v2429_v5, %v2428_v0 }
 0x1c6   : > { %v1650_v9 = vadd.f32 %v2427_v63, %v1553_v2  ;;  %v1556_v10 = vadd.f32 %v2366_v3, %v3143_v14  ;;  %v414_v14 = vld [vmem:[#allocation2 + $0x10] sm:$0xff] }
 0x1c8   : > { %v1712_v13 = vadd.f32 %v1650_v9, %v412_v7  ;;  %v1653_v15 = vadd.f32 %v2430_v8, %v1556_v10  ;;  %v2367_v16 = vpop.f32.mrb[36].mxu0 }
 0x1c9   : > { %v2431_v17 = vpop.f32.mrb[36].mxu1  ;;  %v2368_v18 = vpop.f32.mrb[37].mxu0 }
 0x1ca   : > { %1728 = vst [vmem:[#allocation2] sm:$0xff] %v1712_v13  ;;  %v1713_v19 = vadd.f32 %v1653_v15, %v413_v11  ;;  %v2369_v21 = vadd.f32 %v2368_v18, %v2367_v16  ;;  %v2432_v23 = vpop.f32.mrb[37].mxu1  ;;  %v2370_v24 = vpop.f32.mrb[38].mxu0 }
 0x1cb   : > { %v2433_v25 = vadd.f32 %v2432_v23, %v2431_v17  ;;  %v2434_v12 = vpop.f32.mrb[38].mxu1  ;;  %v2371_v27 = vpop.f32.mrb[39].mxu0 }
 0x1cc   : > { %1729 = vst [vmem:[#allocation2 + $0x8] sm:$0xff] %v1713_v19  ;;  %v1561_v29 = vadd.f32 %v2369_v21, %v3145_v26  ;;  %v2372_v30 = vadd.f32 %v2371_v27, %v2370_v24  ;;  %v2435_v31 = vpop.f32.mrb[39].mxu1  ;;  %v419_v19 = vld [vmem:[#allocation2 + $0x38] sm:$0xff] }
 0x1cd   : > { %v2436_v32 = vadd.f32 %v2435_v31, %v2434_v12 }
 0x1ce   : > { %v1658_v33 = vadd.f32 %v2433_v25, %v1561_v29  ;;  %v1564_v34 = vadd.f32 %v2372_v30, %v3147_v28  ;;  %v416_v28 = vld [vmem:[#allocation2 + $0x20] sm:$0xff] }
 0x1d0   : > { %v1714_v37 = vadd.f32 %v1658_v33, %v414_v14  ;;  %v1661_v39 = vadd.f32 %v2436_v32, %v1564_v34  ;;  %v2373_v41 = vpop.f32.mrb[40].mxu0 }
 0x1d1   : > { %v2437_v43 = vpop.f32.mrb[40].mxu1  ;;  %v2374_v44 = vpop.f32.mrb[41].mxu0 }
 0x1d2   : > { %1730 = vst [vmem:[#allocation2 + $0x10] sm:$0xff] %v1714_v37  ;;  %v1715_v45 = vadd.f32 %v1661_v39, %v415_v35  ;;  %v2375_v46 = vadd.f32 %v2374_v44, %v2373_v41  ;;  %v2438_v47 = vpop.f32.mrb[41].mxu1  ;;  %v2376_v48 = vpop.f32.mrb[42].mxu0 }
 0x1d3   : > { %v2439_v49 = vadd.f32 %v2438_v47, %v2437_v43  ;;  %v2440_v26 = vpop.f32.mrb[42].mxu1  ;;  %v2377_v50 = vpop.f32.mrb[43].mxu0  ;;  %v421_v43 = vld [vmem:[#allocation2 + $0x48] sm:$0xff] }
 0x1d4   : > { %1731 = vst [vmem:[#allocation2 + $0x18] sm:$0xff] %v1715_v45  ;;  %v1569_v51 = vadd.f32 %v2375_v46, %v3149_v40  ;;  %v2378_v53 = vadd.f32 %v2377_v50, %v2376_v48  ;;  %v2441_v57 = vpop.f32.mrb[43].mxu1 }
 0x1d5   : > { %v2442_v58 = vadd.f32 %v2441_v57, %v2440_v26 }
 0x1d6   : > { %v1666_v59 = vadd.f32 %v2439_v49, %v1569_v51  ;;  %v1572_v60 = vadd.f32 %v2378_v53, %v3151_v42  ;;  %v418_v42 = vld [vmem:[#allocation2 + $0x30] sm:$0xff] }
 0x1d8   : > { %v1716_v62 = vadd.f32 %v1666_v59, %v416_v28  ;;  %v1669_v63 = vadd.f32 %v2442_v58, %v1572_v60  ;;  %v2379_v0 = vpop.f32.mrb[44].mxu0 }
 0x1d9   : > { %v2443_v1 = vpop.f32.mrb[44].mxu1  ;;  %v2380_v2 = vpop.f32.mrb[45].mxu0 }
 0x1da   : > { %1732 = vst [vmem:[#allocation2 + $0x20] sm:$0xff] %v1716_v62  ;;  %v1717_v3 = vadd.f32 %v1669_v63, %v417_v61  ;;  %v2381_v5 = vadd.f32 %v2380_v2, %v2379_v0  ;;  %v2444_v7 = vpop.f32.mrb[45].mxu1  ;;  %v2382_v8 = vpop.f32.mrb[46].mxu0  ;;  %v423_v63 = vld [vmem:[#allocation2 + $0x58] sm:$0xff] }
 0x1db   : > { %v2445_v9 = vadd.f32 %v2444_v7, %v2443_v1  ;;  %v2446_v40 = vpop.f32.mrb[46].mxu1  ;;  %v2383_v10 = vpop.f32.mrb[47].mxu0 }
 0x1dc   : > { %1733 = vst [vmem:[#allocation2 + $0x28] sm:$0xff] %v1717_v3  ;;  %v1577_v11 = vadd.f32 %v2381_v5, %v3153_v54  ;;  %v2384_v13 = vadd.f32 %v2383_v10, %v2382_v8  ;;  %v2447_v15 = vpop.f32.mrb[47].mxu1 }
 0x1dd   : > { %v2448_v16 = vadd.f32 %v2447_v15, %v2446_v40 }
 0x1de   : > { %v1674_v17 = vadd.f32 %v2445_v9, %v1577_v11  ;;  %v1580_v18 = vadd.f32 %v2384_v13, %v3155_v56  ;;  %v420_v56 = vld [vmem:[#allocation2 + $0x40] sm:$0xff] }
 0x1e0   : > { %v1718_v21 = vadd.f32 %v1674_v17, %v418_v42  ;;  %v1677_v23 = vadd.f32 %v2448_v16, %v1580_v18  ;;  %v2385_v24 = vpop.f32.mrb[48].mxu0 }
 0x1e1   : > { %v2449_v25 = vpop.f32.mrb[48].mxu1  ;;  %v2386_v12 = vpop.f32.mrb[49].mxu0 }
 0x1e2   : > { %1734 = vst [vmem:[#allocation2 + $0x30] sm:$0xff] %v1718_v21  ;;  %v1719_v27 = vadd.f32 %v1677_v23, %v419_v19  ;;  %v2387_v29 = vadd.f32 %v2386_v12, %v2385_v24  ;;  %v2450_v30 = vpop.f32.mrb[49].mxu1  ;;  %v2388_v31 = vpop.f32.mrb[50].mxu0  ;;  %v425_v19 = vld [vmem:[#allocation2 + $0x68] sm:$0xff] }
 0x1e3   : > { %v2451_v14 = vadd.f32 %v2450_v30, %v2449_v25  ;;  %v2452_v54 = vpop.f32.mrb[50].mxu1  ;;  %v2389_v32 = vpop.f32.mrb[51].mxu0 }
 0x1e4   : > { %1735 = vst [vmem:[#allocation2 + $0x38] sm:$0xff] %v1719_v27  ;;  %v1585_v33 = vadd.f32 %v2387_v29, %v3157_v4  ;;  %v2390_v34 = vadd.f32 %v2389_v32, %v2388_v31  ;;  %v2453_v35 = vpop.f32.mrb[51].mxu1 }
 0x1e5   : > { %v2454_v37 = vadd.f32 %v2453_v35, %v2452_v54 }
 0x1e6   : > { %v1682_v39 = vadd.f32 %v2451_v14, %v1585_v33  ;;  %v1588_v41 = vadd.f32 %v2390_v34, %v3159_v6  ;;  %v422_v6 = vld [vmem:[#allocation2 + $0x50] sm:$0xff] }
 0x1e8   : > { %v1720_v44 = vadd.f32 %v1682_v39, %v420_v56  ;;  %v1685_v45 = vadd.f32 %v2454_v37, %v1588_v41  ;;  %v2391_v46 = vpop.f32.mrb[52].mxu0  ;;  %v427_v39 = vld [vmem:[#allocation2 + $0x78] sm:$0xff] }
 0x1e9   : > { %v2455_v47 = vpop.f32.mrb[52].mxu1  ;;  %v2392_v48 = vpop.f32.mrb[53].mxu0 }
 0x1ea   : > { %1736 = vst [vmem:[#allocation2 + $0x40] sm:$0xff] %v1720_v44  ;;  %v1721_v49 = vadd.f32 %v1685_v45, %v421_v43  ;;  %v2393_v26 = vadd.f32 %v2392_v48, %v2391_v46  ;;  %v2456_v50 = vpop.f32.mrb[53].mxu1  ;;  %v2394_v51 = vpop.f32.mrb[54].mxu0  ;;  %v1748_v45 = vld [vmem:[#allocation2] sm:$0xff] (!%p2130_p4)  ;;  %v1749_v46 = vld [vmem:[#allocation2 + $0x8] sm:$0xff] (!%p2130_p4) }
 0x1eb   : > { %v2457_v53 = vadd.f32 %v2456_v50, %v2455_v47  ;;  %v2458_v4 = vpop.f32.mrb[54].mxu1  ;;  %v2395_v57 = vpop.f32.mrb[55].mxu0  ;;  %v2131_v47 = vld [vmem:[#allocation6] ss:$0 sm:$0xff] (!%p2130_p4) }
 0x1ec   : > { %1737 = vst [vmem:[#allocation2 + $0x48] sm:$0xff] %v1721_v49  ;;  %v1593_v28 = vadd.f32 %v2393_v26, %v3161_v20  ;;  %v2396_v58 = vadd.f32 %v2395_v57, %v2394_v51  ;;  %v2459_v59 = vpop.f32.mrb[55].mxu1  ;;  %v1772_v48 = vadd.f32 (!%p2130_p4), %v2131_v47, %v1749_v46  ;;  %v1750_v49 = vld [vmem:[#allocation2 + $0x10] sm:$0xff] (!%p2130_p4)  ;;  %v1751_v26 = vld [vmem:[#allocation2 + $0x18] sm:$0xff] (!%p2130_p4)  ;;  %v1752_v50 = vld [vmem:[#allocation2 + $0x20] sm:$0xff] (!%p2130_p4) }
 0x1ed   : > { %v2460_v60 = vadd.f32 %v2459_v59, %v2458_v4  ;;  %v1773_v51 = vadd.f32 (!%p2130_p4), %v2131_v47, %v1750_v49  ;;  %v1775_v4 = vadd.f32 (!%p2130_p4), %v2131_v47, %v1752_v50  ;;  %v1754_v57 = vld [vmem:[#allocation2 + $0x30] sm:$0xff] (!%p2130_p4) }
 0x1ee   : > { %v1690_v61 = vadd.f32 %v2457_v53, %v1593_v28  ;;  %v1596_v62 = vadd.f32 %v2396_v58, %v3163_v22  ;;  %v424_v22 = vld [vmem:[#allocation2 + $0x60] sm:$0xff]  ;;  %v1774_v53 = vadd.f32 (!%p2130_p4), %v2131_v47, %v1751_v26  ;;  %v1755_v28 = vld [vmem:[#allocation2 + $0x38] sm:$0xff] (!%p2130_p4)  ;;  %v1788_v59 = vmax.f32 (!%p2130_p4), %v1772_v48, 0.0 }
 0x1f0   : > { %v1722_v0 = vadd.f32 %v1690_v61, %v422_v6  ;;  %v1693_v1 = vadd.f32 %v2460_v60, %v1596_v62  ;;  %v2397_v2 = vpop.f32.mrb[56].mxu0  ;;  %v1777_v60 = vadd.f32 (!%p2130_p4), %v2131_v47, %v1754_v57 }
 0x1f1   : > { %v2461_v3 = vpop.f32.mrb[56].mxu1  ;;  %v2398_v5 = vpop.f32.mrb[57].mxu0  ;;  %v1756_v61 = vld [vmem:[#allocation2 + $0x40] sm:$0xff] (!%p2130_p4) }
 0x1f2   : > { %1738 = vst [vmem:[#allocation2 + $0x50] sm:$0xff] %v1722_v0  ;;  %v1723_v7 = vadd.f32 %v1693_v1, %v423_v63  ;;  %v2399_v8 = vadd.f32 %v2398_v5, %v2397_v2  ;;  %v2462_v9 = vpop.f32.mrb[57].mxu1  ;;  %v2400_v40 = vpop.f32.mrb[58].mxu0  ;;  %v1789_v0 = vmax.f32 (!%p2130_p4), %v1773_v51, 0.0  ;;  %v1790_v1 = vmax.f32 (!%p2130_p4), %v1774_v53, 0.0 }
 0x1f3   : > { %v2463_v10 = vadd.f32 %v2462_v9, %v2461_v3  ;;  %v2464_v20 = vpop.f32.mrb[58].mxu1  ;;  %v2401_v11 = vpop.f32.mrb[59].mxu0  ;;  %v1757_v62 = vld [vmem:[#allocation2 + $0x48] sm:$0xff] (!%p2130_p4)  ;;  %v1791_v2 = vmax.f32 (!%p2130_p4), %v1775_v4, 0.0  ;;  %v1778_v3 = vadd.f32 (!%p2130_p4), %v2131_v47, %v1755_v28 }
 0x1f4   : > { %1739 = vst [vmem:[#allocation2 + $0x58] sm:$0xff] %v1723_v7  ;;  %v1601_v13 = vadd.f32 %v2399_v8, %v3165_v36  ;;  %v2402_v15 = vadd.f32 %v2401_v11, %v2400_v40  ;;  %v2465_v42 = vpop.f32.mrb[59].mxu1  ;;  %v1793_v40 = vmax.f32 (!%p2130_p4), %v1777_v60, 0.0  ;;  %v2178_v11 = vpack.c.bf16 (!%p2130_p4), %v1790_v1, %v1789_v0 }
 0x1f5   : > { %v2466_v16 = vadd.f32 %v2465_v42, %v2464_v20 }
 0x1f6   : > { %v1698_v17 = vadd.f32 %v2463_v10, %v1601_v13  ;;  %v1604_v18 = vadd.f32 %v2402_v15, %v3167_v38  ;;  %v426_v38 = vld [vmem:[#allocation2 + $0x70] sm:$0xff]  ;;  %v1779_v10 = vadd.f32 (!%p2130_p4), %v2131_v47, %v1756_v61  ;;  %v1794_v13 = vmax.f32 (!%p2130_p4), %v1778_v3, 0.0  ;;  %2210 = vst [vmem:[%s3235_s3 + $0x8] sm:$0xff] (!%p2130_p4), %v2178_v11  }
 0x1f7   : > { %v1780_v15 = vadd.f32 (!%p2130_p4), %v2131_v47, %v1757_v62 }
 0x1f8   : > { %v1724_v21 = vadd.f32 %v1698_v17, %v424_v22  ;;  %v1701_v23 = vadd.f32 %v2466_v16, %v1604_v18  ;;  %v2403_v24 = vpop.f32.mrb[60].mxu0  ;;  %v1795_v18 = vmax.f32 (!%p2130_p4), %v1779_v10, 0.0 }
 0x1f9   : > { %v2467_v25 = vpop.f32.mrb[60].mxu1  ;;  %v2404_v12 = vpop.f32.mrb[61].mxu0  ;;  %v1758_v63 = vld [vmem:[#allocation2 + $0x50] sm:$0xff] (!%p2130_p4) }
 0x1fa   : > { %1740 = vst [vmem:[#allocation2 + $0x60] sm:$0xff] %v1724_v21  ;;  %v1725_v27 = vadd.f32 %v1701_v23, %v425_v19  ;;  %v2405_v29 = vadd.f32 %v2404_v12, %v2403_v24  ;;  %v2468_v30 = vpop.f32.mrb[61].mxu1  ;;  %v2406_v31 = vpop.f32.mrb[62].mxu0  ;;  %v1781_v42 = vadd.f32 (!%p2130_p4), %v2131_v47, %v1758_v63  ;;  %v2188_v23 = vpack.c.bf16 (!%p2130_p4), %v1794_v13, %v1793_v40 }
 0x1fb   : > { %v2469_v14 = vadd.f32 %v2468_v30, %v2467_v25  ;;  %v2470_v36 = vpop.f32.mrb[62].mxu1  ;;  %v2407_v54 = vpop.f32.mrb[63].mxu0  ;;  %v1759_v5 = vld [vmem:[#allocation2 + $0x58] sm:$0xff] (!%p2130_p4)  ;;  %v1796_v24 = vmax.f32 (!%p2130_p4), %v1780_v15, 0.0 }
 0x1fc   : > { %1741 = vst [vmem:[#allocation2 + $0x68] sm:$0xff] %v1725_v27  ;;  %v1609_v32 = vadd.f32 %v2405_v29, %v3169_v52  ;;  %v2408_v33 = vadd.f32 %v2407_v54, %v2406_v31  ;;  %v2471_v34 = vpop.f32.mrb[63].mxu1  ;;  %v1771_v52 = vadd.f32 (!%p2130_p4), %v2131_v47, %v1748_v45  ;;  %v1782_v19 = vadd.f32 (!%p2130_p4), %v2131_v47, %v1759_v5 }
 0x1fd   : > { %v2472_v35 = vadd.f32 %v2471_v34, %v2470_v36  ;;  %v1797_v25 = vmax.f32 (!%p2130_p4), %v1781_v42, 0.0  ;;  %2212 = vst [vmem:[%s3235_s3 + $0x18] sm:$0xff] (!%p2130_p4), %v2188_v23  }
 0x1fe   : > { %v1706_v56 = vadd.f32 %v2469_v14, %v1609_v32  ;;  %v1612_v37 = vadd.f32 %v2408_v33, %v3171_v55  ;;  %1747 = sbr.rel (%p2130_p4) target bundleno = 531 (0x213), region = 71  ;;  %v1753_v55 = vld [vmem:[#allocation2 + $0x28] sm:$0xff] (!%p2130_p4)  ;;  %v1787_v58 = vmax.f32 (!%p2130_p4), %v1771_v52, 0.0  ;;  %v1798_v27 = vmax.f32 (!%p2130_p4), %v1782_v19, 0.0 }
 0x1ff   : > { %v1776_v6 = vadd.f32 (!%p2130_p4), %v2131_v47, %v1753_v55  ;;  %v2193_v14 = vpack.c.bf16 (!%p2130_p4), %v1796_v24, %v1795_v18 }
 0x200   : > { %v1726_v41 = vadd.f32 %v1706_v56, %v426_v38  ;;  %v1709_v43 = vadd.f32 %v2472_v35, %v1612_v37  ;;  %v2173_v8 = vpack.c.bf16 (!%p2130_p4), %v1788_v59, %v1787_v58  ;;  %v2198_v54 = vpack.c.bf16 (!%p2130_p4), %v1798_v27, %v1797_v25 }
 0x201   : > { %v1760_v7 = vld [vmem:[#allocation2 + $0x60] sm:$0xff] (!%p2130_p4)  ;;  %v1792_v9 = vmax.f32 (!%p2130_p4), %v1776_v6, 0.0  ;;  %2213 = vst [vmem:[%s3235_s3 + $0x20] sm:$0xff] (!%p2130_p4), %v2193_v14  }
 0x202   : > { %1742 = vst [vmem:[#allocation2 + $0x70] sm:$0xff] %v1726_v41  ;;  %v1727_v44 = vadd.f32 %v1709_v43, %v427_v39  ;;  %2174 = vst [vmem:[%s3235_s3] sm:$0xff] (!%p2130_p4), %v2173_v8   ;;  %v1783_v21 = vadd.f32 (!%p2130_p4), %v2131_v47, %v1760_v7 }
 0x203   : > { %v1761_v20 = vld [vmem:[#allocation2 + $0x68] sm:$0xff] (!%p2130_p4)  ;;  %v2183_v17 = vpack.c.bf16 (!%p2130_p4), %v1792_v9, %v1791_v2  ;;  %2214 = vst [vmem:[%s3235_s3 + $0x28] sm:$0xff] (!%p2130_p4), %v2198_v54  }
 0x204   : > { %1743 = vst [vmem:[#allocation2 + $0x78] sm:$0xff] %v1727_v44  ;;  %v1784_v12 = vadd.f32 (!%p2130_p4), %v2131_v47, %v1761_v20  ;;  %v1799_v29 = vmax.f32 (!%p2130_p4), %v1783_v21, 0.0 }
 0x205   : > { %2211 = vst [vmem:[%s3235_s3 + $0x10] sm:$0xff] %v2183_v17  }
 0x206   : > { %v1800_v36 = vmax.f32 %v1784_v12, 0.0 }
 0x208   : > { %v2203_v34 = vpack.c.bf16 %v1800_v36, %v1799_v29 }
 0x209   : > { %v1762_v22 = vld [vmem:[#allocation2 + $0x70] sm:$0xff] }
 0x20a   : > { %v1785_v30 = vadd.f32 %v2131_v47, %v1762_v22  ;;  %2215 = vst [vmem:[%s3235_s3 + $0x30] sm:$0xff] %v2203_v34  }
 0x20b   : > { %v1763_v16 = vld [vmem:[#allocation2 + $0x78] sm:$0xff] }
 0x20c   : > { %v1786_v31 = vadd.f32 %v2131_v47, %v1763_v16  ;;  %v1801_v32 = vmax.f32 %v1785_v30, 0.0 }
 0x20e   : > { %v1802_v33 = vmax.f32 %v1786_v31, 0.0 }
 0x210   : > { %v2208_v38 = vpack.c.bf16 %v1802_v33, %v1801_v32 }
 0x212   : > { %2216 = vst [vmem:[%s3235_s3 + $0x38] sm:$0xff] %v2208_v38  }
 0x213 PF: > { %s17_s17 = sadd.s32 1, %s2711_s17   ;;  %s3251_s12 = smov %s2695_s13 }
 0x214   : > { %p14_p6 = scmp.ge.s32.totalorder %s17_s17, 5   ;;  %s3252_s13 = smov %s2699_s14 }
 0x215   : > { %s3253_s14 = smov %s2794_s25  ;;  %s3254_s15 = smov %s2707_s16 }
 0x216   : > { %s3255_s16 = smov %s3257_s19  ;;  %16 = sbr.rel (!%p14_p6) target bundleno = 5 (0x5), region = 115 }
 0x21d   :  { %1905 = vsyncpa [#allocation5], 1 }
 0x21e   :  { %1907 = vsyncpa [#allocation5 + $0x1], 1 }
 0x21f   :  { %1908 = vsyncpa [#allocation7], 1 }

// kernel: neg.19
= control target key start
LH: loop header
LB: loop body
LE: loop exit
PB: predicated region body
PF: predicated region fallthrough
CT: control target
= control target key end

     0   :  { %s24_s0 = inlined_call_operand.vmem [shape: f32[15,1], index: 0, kind: input, shape index: {}]   ;;  %s25_s1 = inlined_call_operand.vmem [shape: f32[15,1], index: 1, kind: output, shape index: {}]  }
   0x1   :  { %v2_v0 = vld [vmem:[%s24_s0] sm:$0x1] }
   0x2   :  { %v5_v1 = vxor.u32 2147483648, %v2_v0 }
   0x4   :  { %7 = vst [vmem:[%s25_s1] sm:$0x1] %v5_v1 }

// kernel: custom_rpn_forward.3
= control target key start
LH: loop header
LB: loop body
LE: loop exit
PB: predicated region body
PF: predicated region fallthrough
CT: control target
= control target key end

     0   :  { %10 = vsyncpa [#allocation3], 0  ;;  %s4397_s0 = inlined_call_operand.vmem [shape: bf16[2,96,128], index: 0, kind: input, shape index: {}]   ;;  %s4398_s1 = inlined_call_operand.hbm [shape: bf16[9,128,128], index: 1, kind: input, shape index: {}]   ;;  %s4399_s2 = inlined_call_operand.hbm [shape: f32[1,128], index: 2, kind: input, shape index: {}]   ;;  %s4400_s3 = inlined_call_operand.vmem [shape: bf16[128,128], index: 3, kind: input, shape index: {}]   ;;  %s4401_s4 = inlined_call_operand.vmem [shape: f32[1,128], index: 4, kind: input, shape index: {}]   ;;  %s4402_s5 = inlined_call_operand.vmem [shape: f32[2,64,128], index: 5, kind: output, shape index: {}]  }
   0x1   :  { %11 = vsyncpa [#allocation5], 0  ;;  %s3457_s18 = smov 0  }
   0x2 LB: > { %s3463_s19 = sadd.s32 4294967295, %s3420_s18   ;;  %p2660_p0 = scmp.ge.s32.totalorder %s3420_s18, 1  ;;  %s3420_s18 = sphi %s3457_s18, %s17_s18  }
   0x3   : > { %p158_p1 = scmp.lt.s32.totalorder %s3420_s18, 3  ;;  %s3422_s20 = smov [#allocation2]  }
   0x4   : > { %s170_s21 = sshll.u32 %s3422_s20, 4  ;;  %p4403_p3 = scmp.eq.s32.totalorder %s3463_s19, 0  ;;  %s171_s21 = int_to_ptr.vmem [resolvable:$true] %s170_s21 }
   0x5   : > { %p3467_p2 = pnand %p2660_p0, %p158_p1  ;;  %s3423_s23 = smov [#allocation4]  }
   0x6   : > { %s184_s24 = sshll.u32 %s3423_s23, 4  ;;  %s3350_s28 = scalar_lea.hbm %s4398_s1, 9216  ;;  %s3480_s24 = int_to_ptr.vmem [resolvable:$true] %s184_s24 }
   0x7   : > { %s4411_s22 = scalar_select %p3467_p2, 1, 0 }
   0x8   : > { %p3230_p4 = pneg %p3467_p2  ;;  %p3351_p6 = scmp.ne.s32.totalorder %s4398_s1, %s3350_s28 }
   0x9   : > { %p3357_p10 = scmp.lt.u32.totalorder %s3350_s28, %s4398_s1 }
   0xa   : > { %p3476_p5 = pnand %p4403_p3, %p3230_p4 }
   0xc   : > { %p3352_p7 = pneg %p3476_p5 }
   0xe   : > { %p3353_p8 = pnand %p3352_p7, %p3351_p6 }
  0x10   : > { %p3354_p9 = pneg %p3353_p8 }
  0x12   : > { %p3359_p11 = pnand %p3357_p10, %p3354_p9 }
  0x14   : > { %3362 = shalt.err (!%p3359_p11)
}
  0x15   : > { %s3363_s8 = scalar_lea.vmem %s171_s21, 9216  ;;  %p3371_p1 = scmp.lt.s32.totalorder %s171_s21, %s171_s21 }
  0x16   : > { %p3364_p12 = scmp.ne.s32.totalorder %s171_s21, %s3363_s8  ;;  %p3372_p4 = scmp.lt.s32.totalorder %s3363_s8, %s3363_s8 }
  0x18   : > { %p3366_p13 = pnand %p3364_p12, %p3352_p7  ;;  %p3373_p3 = por %p3372_p4, %p3371_p1 }
  0x1a   : > { %p3367_p0 = pneg %p3366_p13 }
  0x1c   : > { %p3374_p2 = pnand %p3373_p3, %p3367_p0 }
  0x1e   : > { %3377 = shalt.err (!%p3374_p2)
}
  0x1f   : > { %s3424_s9 = smov 64   ;;  %s3425_s10 = smov 4  }
  0x20   : > { %3233 = dma.hbm_to_vmem [thread:$0]  (!%p3476_p5), %s4398_s1, 9216, %s171_s21, [#allocation3], %s3424_s9, %s3424_s9, %s3425_s10  }
  0x21   : > { %s3378_s15 = scalar_lea.hbm %s4399_s2, 16 }
  0x22   : > { %p3379_p6 = scmp.ne.s32.totalorder %s4399_s2, %s3378_s15  ;;  %p3385_p8 = scmp.lt.u32.totalorder %s3378_s15, %s4399_s2 }
  0x24   : > { %p3381_p2 = pnand %p3379_p6, %p3352_p7 }
  0x26   : > { %p3382_p3 = pneg %p3381_p2 }
  0x28   : > { %p3387_p9 = pnand %p3385_p8, %p3382_p3 }
  0x2a   : > { %3390 = shalt.err (!%p3387_p9)
}
  0x2b   : > { %s3391_s21 = scalar_lea.vmem %s3480_s24, 16  ;;  %s3398_s26 = scalar_lea.vmem %s3480_s24, 32 }
  0x2c   : > { %p3392_p10 = scmp.ne.s32.totalorder %s3480_s24, %s3391_s21  ;;  %p3399_p13 = scmp.lt.s32.totalorder %s3480_s24, %s3480_s24 }
  0x2d   : > { %p3400_p0 = scmp.lt.s32.totalorder %s3398_s26, %s3391_s21 }
  0x2e   : > { %p3394_p11 = pnand %p3392_p10, %p3352_p7 }
  0x2f   : > { %p3401_p1 = por %p3400_p0, %p3399_p13 }
  0x30   : > { %p3395_p12 = pneg %p3394_p11 }
  0x32   : > { %p3402_p4 = pnand %p3401_p1, %p3395_p12 }
  0x34   : > { %3405 = shalt.err (!%p3402_p4)
}
  0x35   : > { %3236 = dma.hbm_to_vmem [thread:$0]  (!%p3476_p5), %s4399_s2, 16, %s3480_s24, [#allocation5]  }
  0x36   : > { %p4413_p6 = scmp.ne.s32.totalorder %s4411_s22, 0 }
  0x38   : > { %211 = sbr.rel (%p4413_p6) target bundleno = 692 (0x2b4), region = 40 }
  0x3f   : > { %p4414_p7 = scmp.eq.s32.totalorder %s3463_s19, 0 }
  0x41   : > { %3411 = dma.done.wait (%p4414_p7), [#allocation3], 9216   ;;  %p4415_p2 = pmov %p4414_p7 }
  0x43   : > { %3413 = vsyncadd (%p4415_p2), [#allocation3], 4294958080  ;;  %p4416_p3 = pmov %p4415_p2 }
  0x44   : > { %p4417_p8 = pmov %p4415_p2 }
  0x45   : > { %3415 = dma.done.wait (%p4416_p3), [#allocation5], 16  }
  0x46   : > { %3417 = vsyncadd (%p4417_p8), [#allocation5], 4294967280  ;;  %p243_p9 = scmp.lt.s32.totalorder %s3463_s19, 1  ;;  %v256_v0 = vlaneseq  ;;  %v3254_v1 = vld [vmem:[#allocation2 + $0x40] sm:$0xff]   ;;  %v3256_v3 = vld [vmem:[#allocation2 + $0x48] sm:$0xff]   ;;  %v4406_v28 = vmov 0  }
  0x47   : > { %v3255_v2 = vld [vmem:[#allocation2 + $0x100] sm:$0xff]   ;;  %2917 = vmatprep.subr.bf16.mxu1 %v3254_v1  ;;  %v3257_v4 = vld [vmem:[#allocation2 + $0x108] sm:$0xff]   ;;  %v3258_v6 = vld [vmem:[#allocation2 + $0x50] sm:$0xff]   ;;  %vm418_vm5 = vsmask.f32 3328 }
  0x48   : > { %s4495_s19 = smov (!%p243_p9, %s3463_s19), 1  ;;  %3013 = vmatprep.subr.bf16.mxu0 %v3255_v2  ;;  %2918 = vmatpush3.bf16.msra.mxu1 %v3254_v1  ;;  %v3544_v5 = vshrl.u32 %v256_v0, 7  ;;  %v3259_v7 = vld [vmem:[#allocation2 + $0x110] sm:$0xff]   ;;  %v3260_v9 = vld [vmem:[#allocation2 + $0x58] sm:$0xff]   ;;  %v3262_v15 = vld [vmem:[#allocation2 + $0x60] sm:$0xff]  }
  0x49   : > { %3014 = vmatpush3.bf16.msra.mxu0 %v3255_v2  ;;  %2919 = vmatprep.subr.bf16.mxu1 %v3256_v3  ;;  %s3221_s22 = smul.u32 48, %s4495_s19  ;;  %v3261_v11 = vld [vmem:[#allocation2 + $0x118] sm:$0xff]   ;;  %v3263_v17 = vld [vmem:[#allocation2 + $0x120] sm:$0xff]   ;;  %v3264_v21 = vld [vmem:[#allocation2 + $0x68] sm:$0xff]   ;;  %vm419_vm6 = vsmask.f32 7440 }
  0x4a   : > { %3015 = vmatprep.subr.bf16.mxu0 %v3257_v4  ;;  %v3548_v8 = vadd.s32 8, %v3544_v5  ;;  %v3551_v10 = vadd.s32 16, %v3544_v5  ;;  %v3554_v12 = vadd.s32 24, %v3544_v5  ;;  %v269_v13 = vand.u32 7, %v3544_v5  ;;  %v3265_v25 = vld [vmem:[#allocation2 + $0x128] sm:$0xff]   ;;  %v3266_v33 = vld [vmem:[#allocation2 + $0x70] sm:$0xff]   ;;  %vm3638_vm13 = vmor %vm418_vm5, %vm419_vm6 }
  0x4b   : > { %s3562_s29 = scalar_lea.vmem %s4397_s0, %s3221_s22  ;;  %v3601_v30 = vadd.s32 32, %v3544_v5  ;;  %v3604_v31 = vadd.s32 40, %v3544_v5  ;;  %v3607_v32 = vadd.s32 48, %v3544_v5  ;;  %v3267_v38 = vld [vmem:[#allocation2 + $0x130] sm:$0xff]   ;;  %v3628_v49 = vadd.s32 56, %v3544_v5  ;;  %v3268_v54 = vld [vmem:[#allocation2 + $0x78] sm:$0xff]  }
  0x4c   : > { %2920 = vmatpush3.bf16.msra.mxu1 %v3256_v3  ;;  %v276_v14 = vand.u32 7, %v3548_v8  ;;  %v283_v16 = vand.u32 7, %v3551_v10  ;;  %v290_v18 = vand.u32 7, %v3554_v12  ;;  %vm3565_vm0 = vcmp.ne.s32.totalorder %v269_v13, 0  ;;  %v3580_v23 = vld [vmem:[%s3562_s29 + $0x4] sm:$0xf] }
  0x4d   : > { %3016 = vmatpush3.bf16.msra.mxu0 %v3257_v4  ;;  %2921 = vmatprep.subr.bf16.mxu1 %v3258_v6  ;;  %v3583_v24 = vld [vmem:[%s3562_s29 + $0x8] sm:$0xf]  ;;  %vm402_vm4 = vmpackc.low %vm3565_vm0, %vm3565_vm0  ;;  %vm3613_vm9 = vcmp.ne.s32.totalorder %v269_v13, 7  ;;  %v377_v55 = vld [vmem:[%s3562_s29] sm:$0x8]  ;;  %v297_v3 = vand.u32 7, %v3601_v30 }
  0x4e   : > { %3017 = vmatprep.subr.bf16.mxu0 %v3259_v7  ;;  %vm3569_vm1 = vcmp.ne.s32.totalorder %v276_v14, 0  ;;  %vm3575_vm2 = vcmp.ne.s32.totalorder %v283_v16, 0  ;;  %vm3587_vm3 = vcmp.ne.s32.totalorder %v290_v18, 0  ;;  %v2670_v27 = vcombine.low %v3580_v23, %v3583_v24  ;;  %vm898_vm11 = vmpackc.low %vm3613_vm9, %vm3613_vm9  ;;  %v3269_v60 = vld [vmem:[#allocation2 + $0x138] sm:$0xff]   ;;  %v1809_v13 = vld [vmem:[%s3562_s29 + $0x8] sm:$0x8] }
  0x4f   : > { %vm403_vm7 = vmpackc.low %vm3569_vm1, %vm3569_vm1  ;;  %v410_v29 = vsel %vm402_vm4, 65537, %v4406_v28  ;;  %vm3631_vm12 = vcmp.ne.s32.totalorder %v276_v14, 7  ;;  %vm3645_vm15 = vcmp.ne.s32.totalorder %v283_v16, 7  ;;  %vm3651_vm0 = vcmp.ne.s32.totalorder %v290_v18, 7  ;;  %v3681_v14 = vld [vmem:[#allocation2] sm:$0xff]   ;;  %s2796_s26 = sshll.u32 %s4495_s19, 6 }
  0x50   : > { %2922 = vmatpush3.bf16.msra.mxu1 %v3258_v6  ;;  %vm404_vm8 = vmpackc.low %vm3575_vm2, %vm3575_vm2  ;;  %v411_v34 = vsel %vm403_vm7, 65537, %v4406_v28  ;;  %v422_v35 = vshll.u32 %v410_v29, 16  ;;  %v425_v36 = vshrl.u32 %v410_v29, 16  ;;  %2933 = vmatprep.mubr.bf16.mxu1 %v2670_v27  ;;  %v906_v0 = vsel %vm898_vm11, 65537, %v4406_v28  ;;  %v3696_v19 = vld [vmem:[#allocation2 + $0x140] sm:$0xff]   ;;  %s252_s25 = scalar_lea.vmem %s4402_s5, %s2796_s26 }
  0x51   : > { %3018 = vmatpush3.bf16.msra.mxu0 %v3259_v7  ;;  %2923 = vmatprep.subr.bf16.mxu1 %v3260_v9  ;;  %vm405_vm10 = vmpackc.low %vm3587_vm3, %vm3587_vm3  ;;  %v412_v39 = vsel %vm404_vm8, 65537, %v4406_v28  ;;  %v431_v40 = vshll.u32 %v411_v34, 16  ;;  %v435_v41 = vshrl.u32 %v411_v34, 16  ;;  %vm914_vm1 = vsmask.f32 256 }
  0x52   : > { %3019 = vmatprep.subr.bf16.mxu0 %v3261_v11  ;;  %v413_v42 = vsel %vm405_vm10, 65537, %v4406_v28  ;;  %v3622_v43 = vrot.slane %v422_v35, 5  ;;  %v427_v44 = vrot.slane %v425_v36, 4  ;;  %v441_v45 = vshll.u32 %v412_v39, 16  ;;  %vm899_vm3 = vmpackc.low %vm3631_vm12, %vm3631_vm12  ;;  %v873_v36 = vld [vmem:[%s3562_s29 + $0x4] sm:$0xf] }
  0x53   : > { %v433_v46 = vrot.slane %v431_v40, 5  ;;  %v437_v47 = vrot.slane %v435_v41, 4  ;;  %v445_v48 = vshrl.u32 %v412_v39, 16  ;;  %v451_v52 = vshll.u32 %v413_v42, 16  ;;  %vm900_vm5 = vmpackc.low %vm3645_vm15, %vm3645_vm15  ;;  %v4049_v34 = vld [vmem:[%s3562_s29 + $0x1c] sm:$0xf] }
  0x54   : > { %2924 = vmatpush3.bf16.msra.mxu1 %v3260_v9  ;;  %v428_v50 = vor.u32 %v427_v44, %v3622_v43  ;;  %v443_v51 = vrot.slane %v441_v45, 5  ;;  %v455_v59 = vshrl.u32 %v413_v42, 16  ;;  %vm500_vm14 = vcmp.ne.s16.totalorder %v3622_v43, 0  ;;  %vm901_vm7 = vmpackc.low %vm3651_vm0, %vm3651_vm0  ;;  %v1208_v44 = vld [vmem:[%s3562_s29 + $0x4] sm:$0x8] }
  0x55   : > { %3020 = vmatpush3.bf16.msra.mxu0 %v3261_v11  ;;  %2925 = vmatprep.subr.bf16.mxu1 %v3262_v15  ;;  %v438_v57 = vor.u32 %v437_v47, %v433_v46  ;;  %v447_v58 = vrot.slane %v445_v48, 4  ;;  %vm915_vm2 = vsmask.f32 4368  ;;  %v304_v4 = vand.u32 7, %v3604_v31 }
  0x56   : > { %3021 = vmatprep.subr.bf16.mxu0 %v3263_v17  ;;  %v429_v61 = vrot.slane %v428_v50, 4  ;;  %v3665_v6 = vrot.slane %v451_v52, 5  ;;  %v509_v7 = vsel %vm500_vm14, %v377_v55, 0  ;;  %v918_v8 = vshrl.u32 %v906_v0, 16  ;;  %v875_v55 = vld [vmem:[%s3562_s29 + $0xc] sm:$0xf]  ;;  %vm3763_vm11 = vmor %vm914_vm1, %vm915_vm2 }
  0x57   : > { %v439_v1 = vrot.slane %v438_v57, 4  ;;  %v448_v2 = vor.u32 %v447_v58, %v443_v51  ;;  %v3674_v11 = vrot.slane %v455_v59, 4  ;;  %v921_v18 = vshll.u32 %v906_v0, 16  ;;  %v3759_v57 = vld [vmem:[%s3562_s29 + $0x10] sm:$0xf] }
  0x58   : > { %2926 = vmatpush3.bf16.msra.mxu1 %v3262_v15  ;;  %v434_v5 = vsel %vm3638_vm13, %v429_v61, %v433_v46  ;;  %v907_v22 = vsel %vm899_vm3, 65537, %v4406_v28  ;;  %v908_v27 = vsel %vm900_vm5, 65537, %v4406_v28  ;;  %v3726_v30 = vsel %vm500_vm14, %v1809_v13, 0 }
  0x59   : > { %3022 = vmatpush3.bf16.msra.mxu0 %v3263_v17  ;;  %2927 = vmatprep.subr.bf16.mxu1 %v3264_v21  ;;  %v444_v9 = vsel %vm3638_vm13, %v439_v1, %v443_v51  ;;  %v449_v10 = vrot.slane %v448_v2, 4  ;;  %vm3676_vm4 = vcmp.ne.s16.totalorder %v434_v5, 0  ;;  %v920_v17 = vrot.slane %v918_v8, 7  ;;  %v3787_v8 = vld [vmem:[%s3562_s29 + $0xc] sm:$0xf]  ;;  %v3278_v1 = vld [vmem:[#allocation2 + $0x10] sm:$0xff]  }
  0x5a   : > { %3023 = vmatprep.subr.bf16.mxu0 %v3265_v25  ;;  %vm3686_vm6 = vcmp.ne.s16.totalorder %v444_v9, 0  ;;  %v510_v16 = vsel %vm3676_vm4, %v3580_v23, 0  ;;  %v3711_v23 = vld [vmem:[%s3562_s29 + $0xc] sm:$0xf]  ;;  %v929_v39 = vshll.u32 %v907_v22, 16  ;;  %v458_v40 = vor.u32 %v3674_v11, %v3665_v6 }
  0x5b   : > { %v454_v20 = vsel %vm3638_vm13, %v449_v10, %v3665_v6  ;;  %v3717_v26 = vcombine.low %v509_v7, %v510_v16  ;;  %v3739_v37 = vor.u32 %v921_v18, %v920_v17  ;;  %v935_v41 = vshrl.u32 %v908_v27, 16  ;;  %v3801_v16 = vld [vmem:[%s3562_s29 + $0x10] sm:$0xf]  ;;  %v3277_v11 = vld [vmem:[#allocation2 + $0x148] sm:$0xff]  }
  0x5c   : > { %2928 = vmatpush3.bf16.msra.mxu1 %v3264_v21  ;;  %v511_v21 = vsel %vm3686_vm6, %v3583_v24, 0  ;;  %vm3713_vm8 = vcmp.ne.s16.totalorder %v454_v20, 0  ;;  %v311_v24 = vand.u32 7, %v3607_v32  ;;  %v938_v42 = vshll.u32 %v908_v27, 16 }
  0x5d   : > { %3024 = vmatpush3.bf16.msra.mxu0 %v3265_v25  ;;  %2929 = vmatprep.subr.bf16.mxu1 %v3266_v33  ;;  %v512_v29 = vsel %vm3713_vm8, %v3711_v23, 0  ;;  %vm3745_vm9 = vcmp.ne.s32.totalorder %v297_v3, 0  ;;  %v713_v46 = vshrl.u32 %v3717_v26, 16  ;;  %v924_v47 = vrot.slane %v920_v17, 4  ;;  %v3298_v25 = vld [vmem:[#allocation2 + $0x90] sm:$0xff]  }
  0x5e   : > { %3025 = vmatprep.subr.bf16.mxu0 %v3267_v38  ;;  %v3736_v35 = vcombine.low %v511_v21, %v512_v29  ;;  %vm3750_vm10 = vcmp.ne.s32.totalorder %v297_v3, 7  ;;  %v716_v52 = vshll.u32 %v3717_v26, 16  ;;  %v937_v59 = vrot.slane %v935_v41, 7  ;;  %v2192_v41 = vld [vmem:[%s3562_s29 + $0x10] sm:$0xf] }
  0x5f   : > { %vm3769_vm12 = vcmp.ne.s32.totalorder %v304_v4, 0  ;;  %vm988_vm15 = vcmp.ne.s16.totalorder %v3739_v37, 0  ;;  %v1210_v0 = vsel %vm500_vm14, %v1208_v44, 0  ;;  %vm3778_vm0 = vcmp.ne.s32.totalorder %v311_v24, 0 }
  0x60   : > { %2930 = vmatpush3.bf16.msra.mxu1 %v3266_v33  ;;  %v909_v33 = vsel %vm901_vm7, 65537, %v4406_v28  ;;  %v721_v53 = vshrl.u32 %v3736_v35, 16  ;;  %v940_v2 = vor.u32 %v938_v42, %v937_v59  ;;  %v942_v3 = vrot.slane %v937_v59, 4  ;;  %v3852_v59 = vld [vmem:[%s3562_s29 + $0x10] sm:$0xf]  ;;  %vm406_vm7 = vmpackc.low %vm3745_vm9, %vm3745_vm9 }
  0x61   : > { %3026 = vmatpush3.bf16.msra.mxu0 %v3267_v38  ;;  %2931 = vmatprep.subr.bf16.mxu1 %v3268_v54  ;;  %v926_v38 = vshrl.u32 %v907_v22, 16  ;;  %v944_v50 = vshrl.u32 %v909_v33, 16  ;;  %v997_v7 = vsel %vm988_vm15, %v873_v36, 0  ;;  %v1212_v10 = vsel %vm3686_vm6, %v875_v55, 0  ;;  %v3811_v22 = vld [vmem:[%s3562_s29 + $0x14] sm:$0xf]  ;;  %vm407_vm9 = vmpackc.low %vm3769_vm12, %vm3769_vm12 }
  0x62   : > { %3027 = vmatprep.subr.bf16.mxu0 %v3269_v60  ;;  %v1213_v13 = vsel %vm3713_vm8, %v3759_v57, 0  ;;  %v724_v21 = vshll.u32 %v3736_v35, 16  ;;  %v2191_v35 = vld [vmem:[%s3562_s29 + $0xc] sm:$0xf]  ;;  %vm3828_vm1 = vcmp.ne.s32.totalorder %v304_v4, 7  ;;  %vm3839_vm5 = vcmp.ne.s32.totalorder %v311_v24, 7 }
  0x63   : > { %v928_v48 = vrot.slane %v926_v38, 7  ;;  %v3782_v5 = vrot.slane %v944_v50, 7  ;;  %v2709_v27 = vcombine.low %v1212_v10, %v1213_v13  ;;  %v3856_v32 = vrot.slane %v716_v52, 4  ;;  %vm903_vm12 = vmpackc.low %vm3828_vm1, %vm3828_vm1 }
  0x64   : > { %2932 = vmatpush3.bf16.msra.mxu1 %v3268_v54  ;;  %v874_v54 = vld [vmem:[%s3562_s29 + $0x8] sm:$0xf]  ;;  %v3858_v24 = vrot.slane %v721_v53, 3  ;;  %v2200_v45 = vsel %vm988_vm15, %v2191_v35, 0  ;;  %v459_v10 = vrot.slane %v458_v40, 4 }
  0x65   : > { %3028 = vmatpush3.bf16.msra.mxu0 %v3269_v60  ;;  %2941 = vmatprep.subr.bf16.mxu1 %v3681_v14  ;;  %v947_v60 = vshll.u32 %v909_v33, 16  ;;  %v931_v62 = vor.u32 %v929_v39, %v928_v48  ;;  %v933_v63 = vrot.slane %v928_v48, 4  ;;  %v1211_v9 = vsel %vm3676_vm4, %v874_v54, 0  ;;  %v3905_v40 = vld [vmem:[%s3562_s29 + $0x14] sm:$0xf] }
  0x66   : > { %3037 = vmatprep.subr.bf16.mxu0 %v3696_v19  ;;  %v2708_v20 = vcombine.low %v1210_v0, %v1211_v9  ;;  %v2721_v29 = vcombine.low %v874_v54, %v875_v55  ;;  %v414_v9 = vsel %vm406_vm7, 65537, %v4406_v28 }
  0x67   : > { %v3791_v43 = vsel %vm3763_vm11, %v924_v47, %v931_v62  ;;  %v3805_v17 = vsel %vm3763_vm11, %v933_v63, %v940_v2  ;;  %v949_v18 = vor.u32 %v947_v60, %v3782_v5  ;;  %v3854_v60 = vrot.slane %v713_v46, 3  ;;  %v3285_v63 = vld [vmem:[#allocation2 + $0x168] sm:$0xff]  }
  0x68   : > { %4452 = vst [vmem:[#allocation8_spill] sm:$0xff] %v3805_v17  ;;  %vm989_vm14 = vcmp.ne.s16.totalorder %v3791_v43, 0  ;;  %v1260_v39 = vshrl.u32 %v2708_v20, 16  ;;  %vm990_vm2 = vcmp.ne.s16.totalorder %v3805_v17, 0  ;;  %v1263_v47 = vshll.u32 %v2708_v20, 16  ;;  %3029 = vmatprep.mubr.bf16.mxu0 %v2721_v29  ;;  %v3292_v17 = vld [vmem:[#allocation2 + $0x38] sm:$0xff]  }
  0x69   : > { %v998_v26 = vsel %vm989_vm14, %v874_v54, 0  ;;  %v3820_v36 = vsel %vm3763_vm11, %v942_v3, %v949_v18  ;;  %v999_v4 = vsel %vm990_vm2, %v875_v55, 0  ;;  %v1268_v54 = vshrl.u32 %v2709_v27, 16  ;;  %v3866_v55 = vld [vmem:[%s3562_s29 + $0x14] sm:$0xf] }
  0x6a   : > { %v3822_v38 = vcombine.low %v997_v7, %v998_v26  ;;  %vm4405_vm3 = vcmp.ne.s16.totalorder %v3820_v36, 0  ;;  %v3860_v62 = vrot.slane %v724_v21, 4  ;;  %v3870_v2 = vrot.slane %v1260_v39, 3  ;;  %v3276_v26 = vld [vmem:[#allocation2 + $0x8] sm:$0xff]  }
  0x6b   : > { %v1000_v50 = vsel %vm4405_vm3, %v3759_v57, 0  ;;  %v1271_v46 = vshll.u32 %v2709_v27, 16  ;;  %vm902_vm3 = vmpackc.low %vm3750_vm10, %vm3750_vm10  ;;  %v3877_v53 = vrot.slane %v1263_v47, 4  ;;  %v2201_v3 = vsel %vm989_vm14, %v2192_v41, 0  ;;  %v3908_v41 = vld [vmem:[%s3562_s29 + $0x18] sm:$0xf] }
  0x6c   : > { %v1050_v0 = vshll.u32 %v3822_v38, 16  ;;  %v3875_v52 = vcombine.low %v999_v4, %v1000_v50  ;;  %v3886_v7 = vrot.slane %v1268_v54, 3  ;;  %v3888_v51 = vcombine.low %v2200_v45, %v2201_v3  ;;  %vm408_vm10 = vmpackc.low %vm3778_vm0, %vm3778_vm0  ;;  %v1590_v4 = vld [vmem:[%s3562_s29 + $0x8] sm:$0xf] }
  0x6d   : > { %v461_v13 = vshll.u32 %v414_v9, 16  ;;  %v465_v18 = vshrl.u32 %v414_v9, 16  ;;  %v2671_v20 = vcombine.low %v3711_v23, %v3852_v59  ;;  %v910_v21 = vsel %vm902_vm3, 65537, %v4406_v28  ;;  %vm904_vm3 = vmpackc.low %vm3839_vm5, %vm3839_vm5 }
  0x6e   : > { %4457 = vst [vmem:[#allocation9_spill] sm:$0xff] %v3888_v51  ;;  %v3900_v27 = vrot.slane %v1271_v46, 4  ;;  %v953_v29 = vshrl.u32 %v910_v21, 16  ;;  %v956_v39 = vshll.u32 %v910_v21, 16  ;;  %v2722_v6 = vcombine.low %v3759_v57, %v3866_v55 }
  0x6f   : > { %v463_v35 = vrot.slane %v461_v13, 5  ;;  %2934 = vmatmul.mubr.bf16.vlgmr.msra.gmra.mrb[0].mxu1 %v2671_v20  ;;  %v415_v23 = vsel %vm407_vm9, 65537, %v4406_v28  ;;  %v3922_v57 = vsel %vm408_vm10, 65537, %v4406_v28  ;;  %v467_v47 = vrot.slane %v465_v18, 4 }
  0x70   : > { %2942 = vmatpush3.bf16.msra.mxu1 %v3681_v14  ;;  %v951_v50 = vrot.slane %v3782_v5, 4  ;;  %v3927_v54 = vrot.slane %v953_v29, 7  ;;  %3030 = vmatmul.mubr.bf16.vlgmr.msra.gmra.mrb[0].mxu0 %v2722_v6  ;;  %v471_v61 = vshll.u32 %v415_v23, 16  ;;  %v475_v46 = vshrl.u32 %v415_v23, 16 }
  0x71   : > { %v464_v45 = vsel %vm3638_vm13, %v459_v10, %v463_v35  ;;  %3038 = vmatpush3.bf16.msra.mxu0 %v3696_v19  ;;  %2943 = vmatprep.subr.bf16.mxu1 %v3276_v26  ;;  %v468_v3 = vor.u32 %v467_v47, %v463_v35  ;;  %v481_v9 = vshll.u32 %v3922_v57, 16  ;;  %v2672_v14 = vcombine.low %v3905_v40, %v3908_v41  ;;  %v3279_v19 = vld [vmem:[#allocation2 + $0x150] sm:$0xff]   ;;  %v4013_v47 = vld [vmem:[%s3562_s29 + $0x1c] sm:$0xf] }
  0x72   : > { %vm3938_vm0 = vcmp.ne.s16.totalorder %v464_v45, 0  ;;  %v958_v10 = vor.u32 %v956_v39, %v3927_v54  ;;  %3039 = vmatprep.subr.bf16.mxu0 %v3277_v11  ;;  %v473_v13 = vrot.slane %v471_v61, 5  ;;  %v477_v18 = vrot.slane %v475_v46, 4  ;;  %v2195_v45 = vld [vmem:[%s3562_s29 + $0x1c] sm:$0xf] }
  0x73   : > { %v3946_v20 = vrot.slane %v1050_v0, 1  ;;  %v3950_v21 = vsel %vm988_vm15, %v1590_v4, 0  ;;  %v1214_v29 = vsel %vm3938_vm0, %v3866_v55, 0  ;;  %v469_v39 = vrot.slane %v468_v3, 4  ;;  %2937 = vmatprep.mubr.bf16.mxu1 %v2672_v14  ;;  %v3280_v0 = vld [vmem:[#allocation2 + $0x18] sm:$0xff]  }
  0x74   : > { %v3958_v6 = vsel %vm989_vm14, %v3787_v8, 0  ;;  %v959_v35 = vsel %vm3763_vm11, %v951_v50, %v958_v10  ;;  %2944 = vmatpush3.bf16.msra.mxu1 %v3276_v26  ;;  %v478_v37 = vor.u32 %v477_v18, %v473_v13  ;;  %v911_v23 = vsel %vm903_vm12, 65537, %v4406_v28  ;;  %v3975_v4 = vld [vmem:[%s3562_s29 + $0x18] sm:$0xf] }
  0x75   : > { %v3972_v43 = vsel %vm990_vm2, %v3801_v16, 0  ;;  %4460 = vst [vmem:[#allocation10_spill] sm:$0xff] %v3975_v4  ;;  %3040 = vmatpush3.bf16.msra.mxu0 %v3277_v11  ;;  %2945 = vmatprep.subr.bf16.mxu1 %v3278_v1  ;;  %v3281_v26 = vld [vmem:[#allocation2 + $0x158] sm:$0xff]   ;;  %v474_v50 = vsel %vm3638_vm13, %v469_v39, %v473_v13  ;;  %v912_v42 = vsel %vm904_vm3, 65537, %v4406_v28  ;;  %v513_v61 = vsel %vm3938_vm0, %v3852_v59, 0  ;;  %v3282_v59 = vld [vmem:[#allocation2 + $0x20] sm:$0xff]  }
  0x76   : > { %vm992_vm15 = vcmp.ne.s16.totalorder %v959_v35, 0  ;;  %3041 = vmatprep.subr.bf16.mxu0 %v3279_v19  ;;  %v479_v11 = vrot.slane %v478_v37, 4  ;;  %v3988_v46 = vrot.slane %v481_v9, 5  ;;  %vm3991_vm14 = vcmp.ne.s16.totalorder %v474_v50, 0  ;;  %v4006_v37 = vld [vmem:[%s3562_s29 + $0x18] sm:$0xf] }
  0x77   : > { %v962_v14 = vshrl.u32 %v911_v23, 16  ;;  %v965_v48 = vshll.u32 %v911_v23, 16  ;;  %v971_v10 = vshrl.u32 %v912_v42, 16  ;;  %v485_v18 = vshrl.u32 %v3922_v57, 16 }
  0x78   : > { %2946 = vmatpush3.bf16.msra.mxu1 %v3278_v1  ;;  %v484_v9 = vsel %vm3638_vm13, %v479_v11, %v3988_v46  ;;  %v514_v39 = vsel %vm3991_vm14, %v3905_v40, 0  ;;  %v4010_v23 = vsel %vm992_vm15, %v3866_v55, 0  ;;  %v3283_v1 = vld [vmem:[#allocation2 + $0x160] sm:$0xff]   ;;  %v960_v11 = vrot.slane %v3927_v54, 4 }
  0x79   : > { %4463 = vst [vmem:[#allocation11_spill] sm:$0xff] %v4010_v23  ;;  %3042 = vmatpush3.bf16.msra.mxu0 %v3279_v19  ;;  %2947 = vmatprep.subr.bf16.mxu1 %v3280_v0  ;;  %v2684_v50 = vcombine.low %v513_v61, %v514_v39  ;;  %v4016_v57 = vrot.slane %v962_v14, 7  ;;  %v4020_v40 = vsel %vm992_vm15, %v3975_v4, 0  ;;  %v4023_v13 = vsel %vm992_vm15, %v2195_v45, 0  ;;  %v4030_v19 = vld [vmem:[%s3562_s29 + $0x1c] sm:$0xf] }
  0x7a   : > { %4464 = vst [vmem:[#allocation12_spill] sm:$0xff] %v4023_v13  ;;  %3043 = vmatprep.subr.bf16.mxu0 %v3281_v26  ;;  %vm4025_vm1 = vcmp.ne.s16.totalorder %v484_v9, 0  ;;  %v1215_v54 = vsel %vm3991_vm14, %v4006_v37, 0  ;;  %vm711_vm5 = vsmask.f32 4352  ;;  %v3284_v61 = vld [vmem:[#allocation2 + $0x28] sm:$0xff]   ;;  %v2723_v28 = vcombine.low %v4006_v37, %v4013_v47 }
  0x7b   : > { %v4036_v14 = vld [vmem:[%s3562_s29 + $0x20] sm:$0xf]  ;;  %v967_v45 = vor.u32 %v965_v48, %v4016_v57  ;;  %v4042_v9 = vrot.slane %v971_v10, 7  ;;  %v974_v39 = vshll.u32 %v912_v42, 16  ;;  %v730_v44 = vshrl.u32 %v2684_v50, 16  ;;  %v3289_v48 = vld [vmem:[#allocation2 + $0x170] sm:$0xff]  }
  0x7c   : > { %2948 = vmatpush3.bf16.msra.mxu1 %v3280_v0  ;;  %v733_v31 = vshll.u32 %v2684_v50, 16  ;;  %v4044_v33 = vcombine.low %v1214_v29, %v1215_v54  ;;  %v4467_v42 = vand.u32 7, %v3628_v49  ;;  %v4065_v10 = vld [vmem:[%s3562_s29 + $0x20] sm:$0xf]  ;;  %3033 = vmatprep.mubr.bf16.mxu0 %v2723_v28  ;;  %v969_v54 = vrot.slane %v4016_v57, 4 }
  0x7d   : > { %3044 = vmatpush3.bf16.msra.mxu0 %v3281_v26  ;;  %2949 = vmatprep.subr.bf16.mxu1 %v3282_v59  ;;  %v4056_v0 = vsel %vm3763_vm11, %v960_v11, %v967_v45  ;;  %v4075_v50 = vld [vmem:[%s3562_s29 + $0x20] sm:$0xf]  ;;  %v4079_v11 = vcombine.low %v3950_v21, %v3958_v6  ;;  %v976_v45 = vor.u32 %v974_v39, %v4042_v9  ;;  %v4087_v26 = vld [vmem:[%s3562_s29 + $0x24] sm:$0xf]  ;;  %v732_v28 = vrot.slane %v730_v44, 3  ;;  %v3287_v6 = vld [vmem:[#allocation2 + $0x30] sm:$0xff]  }
  0x7e   : > { %vm4060_vm7 = vcmp.ne.s32.totalorder %v4467_v42, 0  ;;  %3045 = vmatprep.subr.bf16.mxu0 %v3283_v1  ;;  %vm993_vm9 = vcmp.ne.s16.totalorder %v4056_v0, 0  ;;  %v735_v35 = vrot.slane %v733_v31, 4  ;;  %v4470_v57 = vmov %v4467_v42  ;;  %v4485_v0 = vld [vmem:[#allocation10_spill] sm:$0xff] }
  0x7f   : > { %vm409_vm10 = vmpackc.low %vm4060_vm7, %vm4060_vm7  ;;  %v1604_v21 = vsel %vm993_vm9, %v4030_v19, 0  ;;  %vm376_vm12 = vcmp.ne.s32.totalorder %v4470_v57, 7  ;;  %v4471_v39 = vmov 0   ;;  %v487_v31 = vrot.slane %v485_v18, 4 }
  0x80   : > { %2950 = vmatpush3.bf16.msra.mxu1 %v3282_v59  ;;  %v417_v44 = vsel %vm409_vm10, 65537, %v4471_v39  ;;  %v2673_v59 = vcombine.low %v4049_v34, %v4065_v10  ;;  %vm905_vm3 = vmpackc.low %vm376_vm12, %vm376_vm12  ;;  %v978_v51 = vrot.slane %v4042_v9, 4  ;;  %v2724_v49 = vcombine.low %v4075_v50, %v4087_v26  ;;  %v4487_v5 = vld [vmem:[#allocation11_spill] sm:$0xff] }
  0x81   : > { %3046 = vmatpush3.bf16.msra.mxu0 %v3283_v1  ;;  %2951 = vmatprep.subr.bf16.mxu1 %v3284_v61  ;;  %v491_v42 = vshll.u32 %v417_v44, 16  ;;  %v495_v1 = vshrl.u32 %v417_v44, 16  ;;  %v488_v57 = vor.u32 %v487_v31, %v3988_v46  ;;  %v913_v29 = vsel %vm905_vm3, 65537, %v4471_v39  ;;  %v3293_v31 = vld [vmem:[#allocation2 + $0x178] sm:$0xff]  }
  0x82   : > { %3047 = vmatprep.subr.bf16.mxu0 %v3285_v63  ;;  %2938 = vmatmul.mubr.bf16.gmra.mrb[4].mxu1 %v2673_v59  ;;  %v719_v18 = vor.u32 %v3856_v32, %v3854_v60  ;;  %v727_v13 = vor.u32 %v3860_v62, %v3858_v24  ;;  %v980_v4 = vshrl.u32 %v913_v29, 16  ;;  %v983_v9 = vshll.u32 %v913_v29, 16 }
  0x83   : > { %v493_v44 = vrot.slane %v491_v42, 5  ;;  %v497_v23 = vrot.slane %v495_v1, 4  ;;  %3034 = vmatmul.mubr.bf16.gmra.mrb[4].mxu0 %v2724_v49  ;;  %vm1046_vm15 = vsmask.f32 7424  ;;  %v489_v46 = vrot.slane %v488_v57, 4 }
  0x84   : > { %2952 = vmatpush3.bf16.msra.mxu1 %v3284_v61  ;;  %v728_v39 = vsel %vm711_vm5, %v719_v18, %v727_v13  ;;  %vm4472_vm7 = vcmp.ne.s16.totalorder %v3820_v36, 0  ;;  %v1649_v32 = vshrl.u32 %v4079_v11, 16  ;;  %v4117_v62 = vrot.slane %v980_v4, 7  ;;  %v3294_v4 = vld [vmem:[#allocation2 + $0x80] sm:$0xff]  }
  0x85   : > { %3048 = vmatpush3.bf16.msra.mxu0 %v3285_v63  ;;  %2953 = vmatprep.subr.bf16.mxu1 %v3287_v6  ;;  %v1602_v60 = vsel %vm4472_vm7, %v3811_v22, 0  ;;  %v498_v24 = vor.u32 %v497_v23, %v493_v44  ;;  %v1651_v63 = vshll.u32 %v4079_v11, 16  ;;  %v4123_v42 = vsel %vm3763_vm11, %v969_v54, %v976_v45  ;;  %v3295_v45 = vld [vmem:[#allocation2 + $0x180] sm:$0xff]  }
  0x86   : > { %3049 = vmatprep.subr.bf16.mxu0 %v3289_v48  ;;  %2957 = vmatprep.mubr.bf16.mxu1 %v728_v39  ;;  %v2734_v61 = vcombine.low %v3972_v43, %v1602_v60  ;;  %v494_v59 = vsel %vm3638_vm13, %v489_v46, %v493_v44  ;;  %v4127_v1 = vor.u32 %v735_v35, %v732_v28  ;;  %v4475_v57 = vsel %vm4025_vm1, %v4013_v47, 0 }
  0x87   : > { %v4129_v49 = vrot.slane %v498_v24, 4  ;;  %vm4131_vm10 = vcmp.ne.s16.totalorder %v494_v59, 0  ;;  %v985_v43 = vor.u32 %v983_v9, %v4117_v62  ;;  %v1653_v11 = vrot.slane %v1651_v63, 1  ;;  %v3296_v24 = vld [vmem:[#allocation2 + $0x88] sm:$0xff]  }
  0x88   : > { %2954 = vmatpush3.bf16.msra.mxu1 %v3287_v6  ;;  %v516_v54 = vsel %vm4131_vm10, %v4049_v34, 0  ;;  %v1217_v56 = vsel %vm4131_vm10, %v4075_v50, 0  ;;  %v1656_v35 = vshll.u32 %v2734_v61, 16  ;;  %v2735_v28 = vcombine.low %v4020_v40, %v1604_v21  ;;  %v3297_v59 = vld [vmem:[#allocation2 + $0x188] sm:$0xff]  }
  0x89   : > { %3050 = vmatpush3.bf16.msra.mxu0 %v3289_v48  ;;  %2955 = vmatprep.subr.bf16.mxu1 %v3292_v17  ;;  %v1280_v6 = vshll.u32 %v4044_v33, 16  ;;  %vm508_vm13 = vcmp.ne.s16.totalorder %v4129_v49, 0  ;;  %v4149_v34 = vcombine.low %v4475_v57, %v1217_v56  ;;  %vm994_vm12 = vcmp.ne.s16.totalorder %v4123_v42, 0 }
  0x8a   : > { %3051 = vmatprep.subr.bf16.mxu0 %v3293_v31  ;;  %v517_v48 = vsel %vm508_vm13, %v4065_v10, 0  ;;  %v4476_v40 = vsel %vm4025_vm1, %v3908_v41, 0  ;;  %v4161_v29 = vsel %vm3763_vm11, %v978_v51, %v985_v43  ;;  %v4166_v18 = vsel %vm993_vm9, %v4006_v37, 0  ;;  %v4173_v10 = vld [vmem:[%s3562_s29 + $0x24] sm:$0xf] }
  0x8b   : > { %v2685_v21 = vcombine.low %v4476_v40, %v516_v54  ;;  %v4477_v44 = vshrl.u32 %v4044_v33, 16  ;;  %v2686_v46 = vcombine.low %v517_v48, %v517_v48  ;;  %v1654_v39 = vor.u32 %v1653_v11, %v1649_v32  ;;  %v3300_v40 = vld [vmem:[#allocation2 + $0x98] sm:$0xff]  }
  0x8c   : > { %2956 = vmatpush3.bf16.msra.mxu1 %v3292_v17  ;;  %v1658_v41 = vrot.slane %v1656_v35, 1  ;;  %v1660_v58 = vshrl.u32 %v2734_v61, 16  ;;  %v737_v51 = vsel %vm711_vm5, %v727_v13, %v4127_v1  ;;  %v1664_v60 = vshll.u32 %v2735_v28, 16 }
  0x8d   : > { %v4170_v9 = vrot.slane %v4477_v44, 3  ;;  %3052 = vmatpush3.bf16.msra.mxu0 %v3293_v31  ;;  %2965 = vmatprep.subr.bf16.mxu1 %v3294_v4  ;;  %v4177_v37 = vrot.slane %v1280_v6, 4  ;;  %v748_v63 = vshrl.u32 %v2686_v46, 16  ;;  %v751_v33 = vshll.u32 %v2686_v46, 16  ;;  %v1598_v46 = vld [vmem:[%s3562_s29 + $0x28] sm:$0x1] }
  0x8e   : > { %vm995_vm11 = vcmp.ne.s16.totalorder %v4161_v29, 0  ;;  %3061 = vmatprep.subr.bf16.mxu0 %v3295_v45  ;;  %v1659_v17 = vsel %vm1046_vm15, %v1654_v39, %v1658_v41  ;;  %v1662_v32 = vor.u32 %v1660_v58, %v1658_v41  ;;  %v1666_v31 = vrot.slane %v1664_v60, 1 }
  0x8f   : > { %2958 = vmatmul.mubr.bf16.vlgmr.msra.gmra.mrb[0].mxu1 %v737_v51  ;;  %v739_v43 = vshrl.u32 %v2685_v21, 16  ;;  %v4478_v13 = vsel %vm3676_vm4, %v3787_v8, 0  ;;  %v4479_v11 = vsel %vm3713_vm8, %v3811_v22, 0  ;;  %v4480_v54 = vsel %vm3686_vm6, %v3801_v16, 0  ;;  %3053 = vmatprep.mubr.bf16.mxu0 %v1659_v17  ;;  %v3299_v22 = vld [vmem:[#allocation2 + $0x190] sm:$0xff]   ;;  %vm4493_vm6 = vmmov %vm4472_vm7 }
  0x90   : > { %v2746_v61 = vcombine.low %v3726_v30, %v4478_v13  ;;  %v4194_v56 = vcombine.low %v4480_v54, %v4479_v11  ;;  %2966 = vmatpush3.bf16.msra.mxu1 %v3294_v4  ;;  %v742_v35 = vshll.u32 %v2685_v21, 16  ;;  %v1605_v12 = vsel %vm994_vm12, %v4036_v14, 0 }
  0x91   : > { %v1667_v8 = vsel %vm1046_vm15, %v1662_v32, %v1666_v31  ;;  %2967 = vmatprep.subr.bf16.mxu1 %v3296_v24  ;;  %v741_v30 = vrot.slane %v739_v43, 3  ;;  %v1606_v15 = vsel %vm995_vm11, %v4173_v10, 0  ;;  %v1668_v16 = vshrl.u32 %v2735_v28, 16  ;;  %v3301_v32 = vld [vmem:[#allocation2 + $0x198] sm:$0xff]  }
  0x92   : > { %3054 = vmatmul.mubr.bf16.vlgmr.msra.gmra.mrb[0].mxu0 %v1667_v8  ;;  %v744_v6 = vrot.slane %v742_v35, 4  ;;  %v2736_v4 = vcombine.low %v1605_v12, %v1606_v15  ;;  %v750_v57 = vrot.slane %v748_v63, 3  ;;  %v753_v48 = vrot.slane %v751_v33, 4  ;;  %v2196_v63 = vld [vmem:[%s3562_s29 + $0x20] sm:$0xf] }
  0x93   : > { %3062 = vmatpush3.bf16.msra.mxu0 %v3295_v45  ;;  %v1670_v21 = vor.u32 %v1668_v16, %v1666_v31  ;;  %v987_v44 = vrot.slane %v4117_v62, 4  ;;  %v4481_v39 = vshrl.u32 %v3822_v38, 16  ;;  %v1055_v58 = vshll.u32 %v3875_v52, 16  ;;  %v3303_v16 = vld [vmem:[#allocation2 + $0x1a0] sm:$0xff]  }
  0x94   : > { %3063 = vmatprep.subr.bf16.mxu0 %v3297_v59  ;;  %2968 = vmatpush3.bf16.msra.mxu1 %v3296_v24  ;;  %v745_v28 = vor.u32 %v744_v6, %v741_v30  ;;  %v1672_v51 = vshll.u32 %v2736_v4, 16  ;;  %v754_v60 = vor.u32 %v753_v48, %v750_v57  ;;  %v1676_v17 = vshrl.u32 %v2736_v4, 16 }
  0x95   : > { %v1053_v41 = vor.u32 %v3946_v20, %v4481_v39  ;;  %2969 = vmatprep.subr.bf16.mxu1 %v3298_v25  ;;  %vm4210_vm4 = vcmp.ne.s16.totalorder %v987_v44, 0  ;;  %v4214_v62 = vrot.slane %v1055_v58, 1  ;;  %v1266_v24 = vor.u32 %v3877_v53, %v3870_v2  ;;  %v3302_v53 = vld [vmem:[#allocation2 + $0xa0] sm:$0xff]   ;;  %v3305_v58 = vld [vmem:[#allocation2 + $0x1a8] sm:$0xff]  }
  0x96   : > { %v746_v38 = vsel %vm711_vm5, %v4127_v1, %v745_v28  ;;  %v1674_v20 = vrot.slane %v1672_v51, 1  ;;  %v1607_v33 = vsel %vm4210_vm4, %v1598_v46, 0  ;;  %v755_v31 = vsel %vm711_vm5, %v745_v28, %v754_v60  ;;  %v4489_v60 = vld [vmem:[#allocation12_spill] sm:$0xff] }
  0x97   : > { %3064 = vmatpush3.bf16.msra.mxu0 %v3297_v59  ;;  %2961 = vmatprep.mubr.bf16.mxu1 %v746_v38  ;;  %v2737_v43 = vcombine.low %v1607_v33, %v1607_v33  ;;  %v1861_v13 = vshrl.u32 %v2746_v61, 16  ;;  %v1274_v11 = vor.u32 %v3900_v27, %v3886_v7  ;;  %v1058_v54 = vsel %vm1046_vm15, %v1053_v41, %v4214_v62  ;;  %v4262_v41 = vld [vmem:[%s3562_s29 + $0x28] sm:$0xf]  ;;  %v3307_v33 = vld [vmem:[#allocation2 + $0x1b0] sm:$0xff]  }
  0x98   : > { %3065 = vmatprep.subr.bf16.mxu0 %v3299_v22  ;;  %2970 = vmatpush3.bf16.msra.mxu1 %v3298_v25  ;;  %v1675_v1 = vsel %vm1046_vm15, %v1670_v21, %v1674_v20  ;;  %v1864_v35 = vshll.u32 %v2746_v61, 16  ;;  %v1869_v2 = vshrl.u32 %v4194_v56, 16  ;;  %v1678_v59 = vor.u32 %v1676_v17, %v1674_v20 }
  0x99   : > { %2971 = vmatprep.subr.bf16.mxu1 %v3300_v40  ;;  %3057 = vmatprep.mubr.bf16.mxu0 %v1675_v1  ;;  %v1680_v12 = vshll.u32 %v2737_v43, 16  ;;  %v1863_v8 = vrot.slane %v1861_v13, 3  ;;  %v1872_v30 = vshll.u32 %v4194_v56, 16  ;;  %v1003_v7 = vsel %vm994_vm12, %v4013_v47, 0  ;;  %v3308_v1 = vld [vmem:[#allocation2 + $0xb8] sm:$0xff]  }
  0x9a   : > { %v2205_v27 = vsel %vm993_vm9, %v2196_v63, 0  ;;  %2962 = vmatmul.mubr.bf16.gmra.mrb[4].mxu1 %v755_v31  ;;  %v1866_v25 = vrot.slane %v1864_v35, 4  ;;  %v1871_v61 = vrot.slane %v1869_v2, 3  ;;  %v1218_v15 = vsel %vm508_vm13, %v4087_v26, 0  ;;  %v3306_v63 = vld [vmem:[#allocation2 + $0xb0] sm:$0xff]  }
  0x9b   : > { %3066 = vmatpush3.bf16.msra.mxu0 %v3299_v22  ;;  %v1682_v6 = vrot.slane %v1680_v12, 1  ;;  %2981 = vmatprep.mubr.bf16.mxu1 %v1058_v54  ;;  %v1874_v56 = vrot.slane %v1872_v30, 4  ;;  %v4239_v4 = vsel %vm711_vm5, %v1266_v24, %v1274_v11  ;;  %v4484_v47 = vsel %vm3991_vm14, %v4030_v19, 0  ;;  %v3304_v22 = vld [vmem:[#allocation2 + $0xa8] sm:$0xff]   ;;  %v881_v31 = vld [vmem:[%s3562_s29 + $0x24] sm:$0x1] }
  0x9c   : > { %v4486_v57 = vsel %vm3938_vm0, %v4485_v0, 0  ;;  %v1818_v26 = vsel %vm4131_vm10, %v4173_v10, 0  ;;  %3067 = vmatprep.subr.bf16.mxu0 %v3301_v32  ;;  %2972 = vmatpush3.bf16.msra.mxu1 %v3300_v40  ;;  %v1867_v21 = vor.u32 %v1866_v25, %v1863_v8  ;;  %v4254_v44 = vor.u32 %v4177_v37, %v4170_v9 }
  0x9d   : > { %v2748_v48 = vcombine.low %v4486_v57, %v4484_v47  ;;  %2973 = vmatprep.subr.bf16.mxu1 %v3302_v53  ;;  %v1683_v3 = vsel %vm1046_vm15, %v1678_v59, %v1682_v6  ;;  %v4257_v46 = vor.u32 %v1874_v56, %v1871_v61  ;;  %v2697_v39 = vcombine.low %v4487_v5, %v4166_v18  ;;  %v3309_v59 = vld [vmem:[#allocation2 + $0x1b8] sm:$0xff]   ;;  %v2193_v6 = vld [vmem:[%s3562_s29 + $0x14] sm:$0xf]  ;;  %v3310_v56 = vld [vmem:[#allocation2 + $0xc0] sm:$0xff]  }
  0x9e   : > { %v4264_v23 = vcombine.low %v1218_v15, %v1218_v15  ;;  %3058 = vmatmul.mubr.bf16.gmra.mrb[4].mxu0 %v1683_v3  ;;  %v4268_v40 = vsel %vm711_vm5, %v1274_v11, %v4254_v44  ;;  %v2761_v9 = vcombine.low %v4030_v19, %v4036_v14  ;;  %v1004_v37 = vsel %vm995_vm11, %v4075_v50, 0  ;;  %v3312_v3 = vld [vmem:[#allocation2 + $0xc8] sm:$0xff]   ;;  %v3336_v19 = vld [vmem:[#allocation2 + $0x230] sm:$0xff]  }
  0x9f   : > { %3068 = vmatpush3.bf16.msra.mxu0 %v3301_v32  ;;  %v1876_v18 = vsel %vm711_vm5, %v1867_v21, %v4257_v46  ;;  %v4488_v28 = vsel %vm4025_vm1, %v4036_v14, 0  ;;  %v4282_v17 = vcombine.low %v4489_v60, %v2205_v27  ;;  %v1878_v38 = vshrl.u32 %v2748_v48, 16  ;;  %v3320_v60 = vld [vmem:[#allocation2 + $0xe8] sm:$0xff]   ;;  %v3337_v14 = vld [vmem:[#allocation2 + $0x238] sm:$0xff]  }
  0xa0   : > { %v2749_v51 = vcombine.low %v4488_v28, %v1818_v26  ;;  %3069 = vmatprep.subr.bf16.mxu0 %v3303_v16  ;;  %2974 = vmatpush3.bf16.msra.mxu1 %v3302_v53  ;;  %v1819_v50 = vsel %vm508_vm13, %v4262_v41, 0  ;;  %v1881_v20 = vshll.u32 %v2748_v48, 16  ;;  %v1295_v55 = vshrl.u32 %v4264_v23, 16  ;;  %v3311_v48 = vld [vmem:[#allocation2 + $0x1c0] sm:$0xff]  }
  0xa1   : > { %2975 = vmatprep.subr.bf16.mxu1 %v3304_v22  ;;  %3077 = vmatprep.mubr.bf16.mxu0 %v1876_v18  ;;  %v1063_v24 = vshll.u32 %v2697_v39, 16  ;;  %v2698_v32 = vcombine.low %v1003_v7, %v1004_v37  ;;  %v1298_v11 = vshll.u32 %v4264_v23, 16  ;;  %v1880_v54 = vrot.slane %v1878_v38, 3  ;;  %v3313_v38 = vld [vmem:[#allocation2 + $0x1c8] sm:$0xff]  }
  0xa2   : > { %v1887_v43 = vshrl.u32 %v2749_v51, 16  ;;  %v1890_v13 = vshll.u32 %v2749_v51, 16  ;;  %v1005_v49 = vsel %vm4210_vm4, %v881_v31, 0  ;;  %v2750_v35 = vcombine.low %v1819_v50, %v1819_v50  ;;  %v4492_v31 = vld [vmem:[#allocation9_spill] sm:$0xff] }
  0xa3   : > { %3070 = vmatpush3.bf16.msra.mxu0 %v3303_v16  ;;  %v1883_v2 = vrot.slane %v1881_v20, 4  ;;  %v1067_v53 = vshrl.u32 %v2697_v39, 16  ;;  %v1065_v12 = vrot.slane %v1063_v24, 1  ;;  %v1071_v8 = vshll.u32 %v2698_v32, 16 }
  0xa4   : > { %3071 = vmatprep.subr.bf16.mxu0 %v3305_v58  ;;  %2976 = vmatpush3.bf16.msra.mxu1 %v3304_v22  ;;  %v4490_v30 = vshrl.u32 %v3875_v52, 16  ;;  %v2699_v27 = vcombine.low %v1005_v49, %v1005_v49  ;;  %v1889_v25 = vrot.slane %v1887_v43, 3  ;;  %v1892_v61 = vrot.slane %v1890_v13, 4 }
  0xa5   : > { %2977 = vmatprep.subr.bf16.mxu1 %v3306_v63  ;;  %v1896_v15 = vshrl.u32 %v2750_v35, 16  ;;  %v1899_v16 = vshll.u32 %v2750_v35, 16  ;;  %v1884_v47 = vor.u32 %v1883_v2, %v1880_v54  ;;  %v1069_v0 = vor.u32 %v1067_v53, %v1065_v12  ;;  %v2197_v53 = vld [vmem:[%s3562_s29 + $0x24] sm:$0xf] }
  0xa6   : > { %v1061_v7 = vor.u32 %v4490_v30, %v4214_v62  ;;  %v1075_v57 = vshrl.u32 %v2698_v32, 16  ;;  %v1073_v26 = vrot.slane %v1071_v8, 1  ;;  %v1286_v22 = vshrl.u32 %v4149_v34, 16 }
  0xa7   : > { %3072 = vmatpush3.bf16.msra.mxu0 %v3305_v58  ;;  %v1289_v52 = vshll.u32 %v4149_v34, 16  ;;  %v1297_v62 = vrot.slane %v1295_v55, 3  ;;  %v1079_v5 = vshll.u32 %v2699_v27, 16  ;;  %v4299_v39 = vor.u32 %v1892_v61, %v1889_v25  ;;  %v3314_v55 = vld [vmem:[#allocation2 + $0xd0] sm:$0xff]   ;;  %v2199_v27 = vld [vmem:[%s3562_s29 + $0x2c] sm:$0x1] }
  0xa8   : > { %3073 = vmatprep.subr.bf16.mxu0 %v3307_v33  ;;  %2978 = vmatpush3.bf16.msra.mxu1 %v3306_v63  ;;  %v1066_v21 = vsel %vm1046_vm15, %v1061_v7, %v1065_v12  ;;  %v1300_v23 = vrot.slane %v1298_v11, 4  ;;  %v4301_v37 = vrot.slane %v1896_v15, 3  ;;  %v1901_v58 = vrot.slane %v1899_v16, 4  ;;  %v2194_v11 = vld [vmem:[%s3562_s29 + $0x18] sm:$0xf] }
  0xa9   : > { %2979 = vmatprep.subr.bf16.mxu1 %v3308_v1  ;;  %v1288_v18 = vrot.slane %v1286_v22, 3  ;;  %v1291_v28 = vrot.slane %v1289_v52, 4  ;;  %v2202_v34 = vsel %vm990_vm2, %v2193_v6, 0  ;;  %v1885_v63 = vsel %vm711_vm5, %v4257_v46, %v1884_v47  ;;  %v3316_v25 = vld [vmem:[#allocation2 + $0xd8] sm:$0xff]   ;;  %v3347_v52 = vld [vmem:[%s3562_s29 + $0x10] sm:$0xf] }
  0xaa   : > { %v1301_v51 = vor.u32 %v1300_v23, %v1297_v62  ;;  %v1074_v50 = vsel %vm1046_vm15, %v1069_v0, %v1073_v26  ;;  %v1081_v24 = vrot.slane %v1079_v5, 1  ;;  %v1894_v32 = vsel %vm711_vm5, %v1884_v47, %v4299_v39  ;;  %v3317_v22 = vld [vmem:[#allocation2 + $0x1d8] sm:$0xff]  }
  0xab   : > { %3074 = vmatpush3.bf16.msra.mxu0 %v3307_v33  ;;  %v1292_v20 = vor.u32 %v1291_v28, %v1288_v18  ;;  %v1077_v33 = vor.u32 %v1075_v57, %v1073_v26  ;;  %v2252_v43 = vshll.u32 %v4492_v31, 16  ;;  %v2265_v54 = vshll.u32 %v4282_v17, 16 }
  0xac   : > { %3075 = vmatprep.subr.bf16.mxu0 %v3309_v59  ;;  %2980 = vmatpush3.bf16.msra.mxu1 %v3308_v1  ;;  %v2250_v1 = vshrl.u32 %v4492_v31, 16  ;;  %v1902_v49 = vor.u32 %v1901_v58, %v4301_v37  ;;  %v2203_v35 = vsel %vm4493_vm6, %v2194_v11, 0  ;;  %v2206_v30 = vsel %vm994_vm12, %v2197_v53, 0  ;;  %v3330_v31 = vld [vmem:[#allocation2 + $0x210] sm:$0xff]   ;;  %v3333_v11 = vld [vmem:[#allocation2 + $0x228] sm:$0xff]  }
  0xad   : > { %2989 = vmatprep.subr.bf16.mxu1 %v3310_v56  ;;  %v4313_v46 = vsel %vm711_vm5, %v4254_v44, %v1292_v20  ;;  %v4316_v13 = vsel %vm711_vm5, %v1292_v20, %v1301_v51  ;;  %v2254_v2 = vrot.slane %v2252_v43, 1  ;;  %v2198_v44 = vld [vmem:[%s3562_s29 + $0x28] sm:$0xf]  ;;  %v2772_v12 = vcombine.low %v2202_v34, %v2203_v35  ;;  %v3319_v51 = vld [vmem:[#allocation2 + $0x1e0] sm:$0xff]   ;;  %v3322_v34 = vld [vmem:[#allocation2 + $0xf0] sm:$0xff]  }
  0xae   : > { %v2267_v8 = vrot.slane %v2265_v54, 1  ;;  %v2207_v7 = vsel %vm995_vm11, %v2198_v44, 0  ;;  %v1082_v61 = vsel %vm1046_vm15, %v1077_v33, %v1081_v24  ;;  %v2269_v15 = vshrl.u32 %v4282_v17, 16  ;;  %v3346_v17 = vld [vmem:[%s3562_s29 + $0xc] sm:$0xf]  ;;  %v3327_v20 = vld [vmem:[#allocation2 + $0x200] sm:$0xff]  }
  0xaf   : > { %3076 = vmatpush3.bf16.msra.mxu0 %v3309_v59  ;;  %2982 = vmatmul.mubr.bf16.vlgmr.msra.gmra.mrb[0].mxu1 %v1066_v21  ;;  %v3315_v59 = vld [vmem:[#allocation2 + $0x1d0] sm:$0xff]   ;;  %v2774_v36 = vcombine.low %v2206_v30, %v2207_v7  ;;  %v2208_v16 = vsel %vm4210_vm4, %v2199_v27, 0  ;;  %v2255_v42 = vor.u32 %v2254_v2, %v2250_v1  ;;  %v2257_v6 = vshll.u32 %v2772_v12, 16  ;;  %v3349_v33 = vld [vmem:[%s3562_s29 + $0x18] sm:$0xf]  ;;  %v3342_v1 = vld [vmem:[%s4400_s3 + $0x20] sm:$0xff]  }
  0xb0   : > { %3085 = vmatprep.subr.bf16.mxu0 %v3311_v48  ;;  %2990 = vmatpush3.bf16.msra.mxu1 %v3310_v56  ;;  %v2261_v29 = vshrl.u32 %v2772_v12, 16  ;;  %v2775_v56 = vcombine.low %v2208_v16, %v2208_v16  ;;  %v2271_v47 = vor.u32 %v2269_v15, %v2267_v8  ;;  %v1903_v45 = vsel %vm711_vm5, %v4299_v39, %v1902_v49  ;;  %v3343_v54 = vld [vmem:[%s4400_s3 + $0x28] sm:$0xff]   ;;  %v3344_v49 = vld [vmem:[%s4400_s3 + $0x30] sm:$0xff]   ;;  %v3345_v35 = vld [vmem:[%s4400_s3 + $0x38] sm:$0xff]  }
  0xb1   : > { %2991 = vmatprep.subr.bf16.mxu1 %v3312_v3  ;;  %2985 = vmatprep.mubr.bf16.mxu1 %v1074_v50  ;;  %v2273_v0 = vshll.u32 %v2774_v36, 16  ;;  %v2277_v57 = vshrl.u32 %v2774_v36, 16  ;;  %v2759_v62 = vcombine.low %v3346_v17, %v3347_v52  ;;  %v3325_v50 = vld [vmem:[#allocation2 + $0x1f8] sm:$0xff]   ;;  %v2762_v43 = vcombine.low %v4173_v10, %v4262_v41  ;;  %v3338_v10 = vld [vmem:[%s4400_s3] sm:$0xff]   ;;  %v3339_v41 = vld [vmem:[%s4400_s3 + $0x8] sm:$0xff]  }
  0xb2   : > { %3078 = vmatmul.mubr.bf16.vlgmr.msra.gmra.mrb[0].mxu0 %v1885_v63  ;;  %v2281_v26 = vshll.u32 %v2775_v56, 16  ;;  %v3323_v63 = vld [vmem:[#allocation2 + $0x1f0] sm:$0xff]  }
  0xb3   : > { %3086 = vmatpush3.bf16.msra.mxu0 %v3311_v48  ;;  %3081 = vmatprep.mubr.bf16.mxu0 %v1894_v32  ;;  %v2259_v48 = vrot.slane %v2257_v6, 1  ;;  %v2275_v21 = vrot.slane %v2273_v0, 1  ;;  %v3329_v32 = vld [vmem:[#allocation2 + $0x208] sm:$0xff]  }
  0xb4   : > { %3087 = vmatprep.subr.bf16.mxu0 %v3313_v38  ;;  %2992 = vmatpush3.bf16.msra.mxu1 %v3312_v3  ;;  %v3318_v3 = vld [vmem:[#allocation2 + $0xe0] sm:$0xff]   ;;  %v2283_v37 = vrot.slane %v2281_v26, 1 }
  0xb5   : > { %2993 = vmatprep.subr.bf16.mxu1 %v3314_v55  ;;  %v2260_v5 = vsel %vm1046_vm15, %v2255_v42, %v2259_v48  ;;  %v2263_v23 = vor.u32 %v2261_v29, %v2259_v48  ;;  %v4342_v58 = vsel %vm1046_vm15, %v2271_v47, %v2275_v21  ;;  %v2279_v18 = vor.u32 %v2277_v57, %v2275_v21 }
  0xb7   : > { %3088 = vmatpush3.bf16.msra.mxu0 %v3313_v38  ;;  %2986 = vmatmul.mubr.bf16.gmra.mrb[4].mxu1 %v1082_v61  ;;  %v4345_v39 = vsel %vm1046_vm15, %v2263_v23, %v2267_v8  ;;  %v4348_v28 = vsel %vm1046_vm15, %v2279_v18, %v2283_v37  ;;  %v3324_v38 = vld [vmem:[#allocation2 + $0xf8] sm:$0xff]  }
  0xb8   : > { %3089 = vmatprep.subr.bf16.mxu0 %v3315_v59  ;;  %2994 = vmatpush3.bf16.msra.mxu1 %v3314_v55  ;;  %v3348_v55 = vld [vmem:[%s3562_s29 + $0x14] sm:$0xf] }
  0xb9   : > { %2995 = vmatprep.subr.bf16.mxu1 %v3316_v25  ;;  %3005 = vmatprep.mubr.bf16.mxu1 %v4239_v4  ;;  %v3321_v4 = vld [vmem:[#allocation2 + $0x1e8] sm:$0xff]   ;;  %v2760_v24 = vcombine.low %v3348_v55, %v3349_v33  ;;  %v2785_v55 = vld [vmem:[%s4401_s4] ss:$0 sm:$0xff] }
  0xba   : > { %3082 = vmatmul.mubr.bf16.gmra.mrb[4].mxu0 %v1903_v45 }
  0xbb   : > { %3090 = vmatpush3.bf16.msra.mxu0 %v3315_v59  ;;  %3101 = vmatprep.mubr.bf16.mxu0 %v2759_v62 }
  0xbc   : > { %3091 = vmatprep.subr.bf16.mxu0 %v3317_v22  ;;  %2996 = vmatpush3.bf16.msra.mxu1 %v3316_v25  ;;  %v2784_v25 = vld [vmem:[#allocation4] ss:$0 sm:$0xff] }
  0xbd   : > { %2997 = vmatprep.subr.bf16.mxu1 %v3318_v3 }
  0xbf   : > { %3092 = vmatpush3.bf16.msra.mxu0 %v3317_v22 }
  0xc0   : > { %3093 = vmatprep.subr.bf16.mxu0 %v3319_v51  ;;  %2998 = vmatpush3.bf16.msra.mxu1 %v3318_v3 }
  0xc1   : > { %2999 = vmatprep.subr.bf16.mxu1 %v3320_v60 }
  0xc3   : > { %3094 = vmatpush3.bf16.msra.mxu0 %v3319_v51 }
  0xc4   : > { %3095 = vmatprep.subr.bf16.mxu0 %v3321_v4  ;;  %3000 = vmatpush3.bf16.msra.mxu1 %v3320_v60 }
  0xc5   : > { %3001 = vmatprep.subr.bf16.mxu1 %v3322_v34 }
  0xc7   : > { %3096 = vmatpush3.bf16.msra.mxu0 %v3321_v4 }
  0xc8   : > { %3097 = vmatprep.subr.bf16.mxu0 %v3323_v63  ;;  %3002 = vmatpush3.bf16.msra.mxu1 %v3322_v34 }
  0xc9   : > { %3003 = vmatprep.subr.bf16.mxu1 %v3324_v38 }
  0xcb   : > { %3098 = vmatpush3.bf16.msra.mxu0 %v3323_v63 }
  0xcc   : > { %3099 = vmatprep.subr.bf16.mxu0 %v3325_v50  ;;  %3004 = vmatpush3.bf16.msra.mxu1 %v3324_v38 }
  0xcd   : > { %3133 = vmatprep.subr.bf16.mxu1 %v3338_v10 }
  0xcf   : > { %3100 = vmatpush3.bf16.msra.mxu0 %v3325_v50  ;;  %3006 = vmatmul.mubr.bf16.vlgmr.msra.gmra.mrb[0].mxu1 %v4268_v40  ;;  %v3331_v40 = vld [vmem:[#allocation2 + $0x218] sm:$0xff]  }
  0xd0   : > { %3109 = vmatprep.subr.bf16.mxu0 %v3327_v20  ;;  %3009 = vmatprep.mubr.bf16.mxu1 %v4313_v46  ;;  %v3332_v46 = vld [vmem:[#allocation2 + $0x220] sm:$0xff]  }
  0xd1   : > { %3134 = vmatpush3.bf16.msra.mxu1 %v3338_v10 }
  0xd2   : > { %3102 = vmatmul.mubr.bf16.vlgmr.msra.gmra.mrb[0].mxu0 %v2760_v24  ;;  %3135 = vmatprep.subr.bf16.mxu1 %v3339_v41 }
  0xd3   : > { %3110 = vmatpush3.bf16.msra.mxu0 %v3327_v20  ;;  %3105 = vmatprep.mubr.bf16.mxu0 %v2761_v9  ;;  %v3340_v9 = vld [vmem:[%s4400_s3 + $0x10] sm:$0xff]  }
  0xd4   : > { %3111 = vmatprep.subr.bf16.mxu0 %v3329_v32 }
  0xd5   : > { %3136 = vmatpush3.bf16.msra.mxu1 %v3339_v41 }
  0xd6   : > { %3137 = vmatprep.subr.bf16.mxu1 %v3340_v9 }
  0xd7   : > { %3112 = vmatpush3.bf16.msra.mxu0 %v3329_v32  ;;  %3010 = vmatmul.mubr.bf16.gmra.mrb[4].mxu1 %v4316_v13  ;;  %v3341_v13 = vld [vmem:[%s4400_s3 + $0x18] sm:$0xff]  }
  0xd8   : > { %3113 = vmatprep.subr.bf16.mxu0 %v3330_v31 }
  0xd9   : > { %3138 = vmatpush3.bf16.msra.mxu1 %v3340_v9 }
  0xda   : > { %3106 = vmatmul.mubr.bf16.gmra.mrb[4].mxu0 %v2762_v43  ;;  %3139 = vmatprep.subr.bf16.mxu1 %v3341_v13 }
  0xdb   : > { %3114 = vmatpush3.bf16.msra.mxu0 %v3330_v31  ;;  %3125 = vmatprep.mubr.bf16.mxu0 %v2260_v5 }
  0xdc   : > { %3115 = vmatprep.subr.bf16.mxu0 %v3331_v40 }
  0xdd   : > { %3140 = vmatpush3.bf16.msra.mxu1 %v3341_v13 }
  0xde   : > { %3141 = vmatprep.subr.bf16.mxu1 %v3342_v1 }
  0xdf   : > { %3116 = vmatpush3.bf16.msra.mxu0 %v3331_v40 }
  0xe0   : > { %3117 = vmatprep.subr.bf16.mxu0 %v3332_v46 }
  0xe1   : > { %3142 = vmatpush3.bf16.msra.mxu1 %v3342_v1 }
  0xe2   : > { %3143 = vmatprep.subr.bf16.mxu1 %v3343_v54 }
  0xe3   : > { %3118 = vmatpush3.bf16.msra.mxu0 %v3332_v46 }
  0xe4   : > { %3119 = vmatprep.subr.bf16.mxu0 %v3333_v11 }
  0xe5   : > { %3144 = vmatpush3.bf16.msra.mxu1 %v3343_v54 }
  0xe6   : > { %3145 = vmatprep.subr.bf16.mxu1 %v3344_v49 }
  0xe7   : > { %3120 = vmatpush3.bf16.msra.mxu0 %v3333_v11 }
  0xe8   : > { %3121 = vmatprep.subr.bf16.mxu0 %v3336_v19 }
  0xe9   : > { %3146 = vmatpush3.bf16.msra.mxu1 %v3344_v49 }
  0xea   : > { %3147 = vmatprep.subr.bf16.mxu1 %v3345_v35 }
  0xeb   : > { %3122 = vmatpush3.bf16.msra.mxu0 %v3336_v19 }
  0xec   : > { %3123 = vmatprep.subr.bf16.mxu0 %v3337_v14 }
  0xed   : > { %3148 = vmatpush3.bf16.msra.mxu1 %v3345_v35 }
  0xef   : > { %3124 = vmatpush3.bf16.msra.mxu0 %v3337_v14 }
  0xf2   : > { %3126 = vmatmul.mubr.bf16.vlgmr.msra.gmra.mrb[0].mxu0 %v4345_v39 }
  0xf3   : > { %3129 = vmatprep.mubr.bf16.mxu0 %v4342_v58 }
  0xfa   : > { %3130 = vmatmul.mubr.bf16.gmra.mrb[4].mxu0 %v4348_v28 }
 0x1a2   : > { %v3007_v2 = vpop.f32.mrb[0].mxu1 }
 0x1a3   : > { %v1389_v53 = vpop.f32.mrb[1].mxu1 }
 0x1a4   : > { %v3008_v44 = vpop.f32.mrb[2].mxu1 }
 0x1a5   : > { %v1392_v59 = vpop.f32.mrb[3].mxu1 }
 0x1aa   : > { %v3011_v12 = vpop.f32.mrb[4].mxu1 }
 0x1ab   : > { %v1405_v8 = vpop.f32.mrb[5].mxu1 }
 0x1ac   : > { %v3012_v30 = vpop.f32.mrb[6].mxu1 }
 0x1ad   : > { %v1408_v7 = vpop.f32.mrb[7].mxu1 }
 0x1c5   : > { %v3127_v27 = vpop.f32.mrb[0].mxu0 }
 0x1c6   : > { %v3157_v61 = vadd.f32 %v3127_v27, %v3007_v2  ;;  %v2371_v36 = vpop.f32.mrb[1].mxu0 }
 0x1c7   : > { %v3158_v15 = vadd.f32 %v2371_v36, %v1389_v53  ;;  %v3128_v16 = vpop.f32.mrb[2].mxu0 }
 0x1c8   : > { %v2419_v42 = vadd.f32 %v3157_v61, %v2784_v25  ;;  %v3159_v6 = vadd.f32 %v3128_v16, %v3008_v44  ;;  %v2374_v29 = vpop.f32.mrb[3].mxu0 }
 0x1c9   : > { %v2417_v56 = vadd.f32 %v3158_v15, %v2784_v25  ;;  %v3160_v47 = vadd.f32 %v2374_v29, %v1392_v59 }
 0x1ca   : > { %v2420_v0 = vadd.f32 %v3159_v6, %v2784_v25  ;;  %v2427_v48 = vmax.f32 %v2419_v42, 0.0 }
 0x1cb   : > { %v2418_v57 = vadd.f32 %v3160_v47, %v2784_v25  ;;  %v2425_v22 = vmax.f32 %v2417_v56, 0.0 }
 0x1cc   : > { %v2428_v26 = vmax.f32 %v2420_v0, 0.0 }
 0x1cd   : > { %v2426_v45 = vmax.f32 %v2418_v57, 0.0  ;;  %v3131_v17 = vpop.f32.mrb[4].mxu0 }
 0x1ce   : > { %v2434_v52 = vpack.c.bf16 %v2428_v26, %v2427_v48  ;;  %v3161_v62 = vadd.f32 %v3131_v17, %v3011_v12  ;;  %v2387_v21 = vpop.f32.mrb[5].mxu0 }
 0x1cf   : > { %v3162_v3 = vadd.f32 %v2387_v21, %v1405_v8  ;;  %v3132_v5 = vpop.f32.mrb[6].mxu0  ;;  %v2433_v23 = vpack.c.bf16 %v2426_v45, %v2425_v22 }
 0x1d0   : > { %v2423_v37 = vadd.f32 %v3161_v62, %v2784_v25  ;;  %v3163_v58 = vadd.f32 %v3132_v5, %v3012_v30  ;;  %v2390_v18 = vpop.f32.mrb[7].mxu0 }
 0x1d1   : > { %v2421_v39 = vadd.f32 %v3162_v3, %v2784_v25  ;;  %v3164_v28 = vadd.f32 %v2390_v18, %v1408_v7  ;;  %3149 = vmatprep.mubr.bf16.mxu1 %v2433_v23 }
 0x1d2   : > { %v2424_v51 = vadd.f32 %v3163_v58, %v2784_v25  ;;  %3150 = vmatmul.mubr.bf16.vlgmr.msra.gmra.mrb[8].mxu1 %v2434_v52  ;;  %v2431_v4 = vmax.f32 %v2423_v37, 0.0 }
 0x1d3   : > { %v2422_v60 = vadd.f32 %v3164_v28, %v2784_v25  ;;  %v2429_v63 = vmax.f32 %v2421_v39, 0.0 }
 0x1d4   : > { %v2432_v34 = vmax.f32 %v2424_v51, 0.0 }
 0x1d5   : > { %v2430_v38 = vmax.f32 %v2422_v60, 0.0 }
 0x1d6   : > { %v2436_v50 = vpack.c.bf16 %v2432_v34, %v2431_v4 }
 0x1d7   : > { %v2435_v20 = vpack.c.bf16 %v2430_v38, %v2429_v63 }
 0x1d9   : > { %3153 = vmatprep.mubr.bf16.mxu1 %v2435_v20 }
 0x1da   : > { %3154 = vmatmul.mubr.bf16.gmra.mrb[12].mxu1 %v2436_v50 }
 0x2a5   : > { %v3151_v33 = vpop.f32.mrb[8].mxu1 }
 0x2a6   : > { %v2551_v24 = vadd.f32 %v3151_v33, %v2785_v55  ;;  %v2542_v32 = vpop.f32.mrb[9].mxu1 }
 0x2a7   : > { %v2543_v31 = vadd.f32 %v2785_v55, %v2542_v32  ;;  %v3152_v43 = vpop.f32.mrb[10].mxu1 }
 0x2a8   : > { %2575 = vst [vmem:[%s252_s25 + $0x10] sm:$0xff] %v2551_v24  ;;  %v2554_v40 = vadd.f32 %v3152_v43, %v2785_v55  ;;  %v2545_v46 = vpop.f32.mrb[11].mxu1 }
 0x2a9   : > { %2573 = vst [vmem:[%s252_s25] sm:$0xff] %v2543_v31  ;;  %v2546_v11 = vadd.f32 %v2785_v55, %v2545_v46 }
 0x2aa   : > { %2576 = vst [vmem:[%s252_s25 + $0x18] sm:$0xff] %v2554_v40 }
 0x2ab   : > { %2574 = vst [vmem:[%s252_s25 + $0x8] sm:$0xff] %v2546_v11 }
 0x2ad   : > { %v3155_v19 = vpop.f32.mrb[12].mxu1 }
 0x2ae   : > { %v2567_v14 = vadd.f32 %v3155_v19, %v2785_v55  ;;  %v2558_v10 = vpop.f32.mrb[13].mxu1 }
 0x2af   : > { %v2559_v41 = vadd.f32 %v2785_v55, %v2558_v10  ;;  %v3156_v9 = vpop.f32.mrb[14].mxu1 }
 0x2b0   : > { %2579 = vst [vmem:[%s252_s25 + $0x30] sm:$0xff] %v2567_v14  ;;  %v2570_v13 = vadd.f32 %v3156_v9, %v2785_v55  ;;  %v2561_v1 = vpop.f32.mrb[15].mxu1 }
 0x2b1   : > { %2577 = vst [vmem:[%s252_s25 + $0x20] sm:$0xff] %v2559_v41  ;;  %v2562_v54 = vadd.f32 %v2785_v55, %v2561_v1 }
 0x2b2   : > { %2580 = vst [vmem:[%s252_s25 + $0x38] sm:$0xff] %v2570_v13 }
 0x2b3   : > { %2578 = vst [vmem:[%s252_s25 + $0x28] sm:$0xff] %v2562_v54 }
 0x2b4 PF: > { %s17_s18 = sadd.s32 1, %s3420_s18  }
 0x2b5   : > { %p14_p5 = scmp.ge.s32.totalorder %s17_s18, 4  }
 0x2b7   :  { %16 = sbr.rel (!%p14_p5) target bundleno = 2 (0x2), region = 87 }
 0x2be   :  { %2602 = vsyncpa [#allocation3], 1 }
 0x2bf   :  { %2604 = vsyncpa [#allocation3 + $0x1], 1 }
 0x2c0   :  { %2605 = vsyncpa [#allocation5], 1 }

</bundles_post_ra>
